<compile_context>
chip_gen: v6e
topology: v6e:2x2x1
jax: 0.10.0
libtpu: 0.0.40
codegen_flags: <defaults>
</compile_context>

<pallas_src>
import functools

import jax
import jax.numpy as jnp
from jax.experimental import pallas as pl
from jax.experimental.pallas import tpu as pltpu

LANE = 128


def _round_up(n, m):
    return ((n + m - 1) // m) * m


# ----------------------------- Pallas kernels -----------------------------

def _matmul_bias_kernel(x_ref, w_ref, b_ref, o_ref, *, relu):
    """o = x @ w + b (optional ReLU), MXU matmul, f32 accumulate."""
    y = jnp.dot(x_ref[...], w_ref[...], preferred_element_type=jnp.float32)
    y = y + b_ref[...]
    if relu:
        y = jnp.maximum(y, 0.0)
    o_ref[...] = y.astype(o_ref.dtype)


def pallas_matmul_bias(x, w, b, *, relu, tm=None):
    """y = x @ w + b (optional ReLU).

    The output channel dim is zero-padded to a multiple of 128 so stores are
    lane-dense (unmasked vst); the caller gets the sliced [:, :N] view.
    Optionally tiled over M (grid pipelining + megacore parallelism)."""
    M, K = x.shape
    K2, N = w.shape
    assert K == K2
    Np = _round_up(N, LANE)
    if Np != N:
        w = jnp.pad(w, ((0, 0), (0, Np - N)))
        b = jnp.pad(b, (0, Np - N))
    b2d = b.reshape(1, Np)

    # Fall back to a single full block if the requested tile doesn't divide M.
    if tm is None or tm >= M or (M % tm) != 0 or (tm % 8) != 0:
        tm = M
    grid = (M // tm,)

    kernel = functools.partial(_matmul_bias_kernel, relu=relu)
    out = pl.pallas_call(
        kernel,
        out_shape=jax.ShapeDtypeStruct((M, Np), jnp.float32),
        grid=grid,
        in_specs=[
            pl.BlockSpec((tm, K), lambda i: (i, 0)),
            pl.BlockSpec((K, Np), lambda i: (0, 0)),
            pl.BlockSpec((1, Np), lambda i: (0, 0)),
        ],
        out_specs=pl.BlockSpec((tm, Np), lambda i: (i, 0)),
        compiler_params=pltpu.CompilerParams(
            dimension_semantics=("parallel",)),
    )(x, w, b2d)
    return out[:, :N] if Np != N else out


def _max9_kernel(x_ref, o_ref):
    """Elementwise max over the 9 pooling-window slabs (VPU max tree)."""
    m = x_ref[0]
    for i in range(1, 9):
        m = jnp.maximum(m, x_ref[i])
    o_ref[...] = m


def _fc_head_kernel(x_ref, w1_ref, b1_ref, w2_ref, b2_ref, w3_ref, b3_ref,
                    o_ref):
    """Fused fc1+ReLU -> fc2+ReLU -> fc3; intermediates never leave VMEM."""
    h = jnp.dot(x_ref[...], w1_ref[...],
                preferred_element_type=jnp.float32) + b1_ref[...]
    h = jnp.maximum(h, 0.0)
    h = jnp.dot(h, w2_ref[...],
                preferred_element_type=jnp.float32) + b2_ref[...]
    h = jnp.maximum(h, 0.0)
    h = jnp.dot(h, w3_ref[...],
                preferred_element_type=jnp.float32) + b3_ref[...]
    o_ref[...] = h.astype(o_ref.dtype)


def pallas_fc_head(x, w1, b1, w2, b2, w3, b3):
    """All three FC layers in one pallas_call; weights/bias zero-padded to 128
    output lanes so every matmul stays lane-dense; final slice drops padding."""
    B, K1 = x.shape
    n_out = w3.shape[1]

    w1p = jnp.pad(w1, ((0, 0), (0, LANE - w1.shape[1])))              # (425,128)
    b1p = jnp.pad(b1, (0, LANE - b1.shape[0])).reshape(1, LANE)
    w2p = jnp.pad(w2, ((0, LANE - w2.shape[0]), (0, LANE - w2.shape[1])))
    b2p = jnp.pad(b2, (0, LANE - b2.shape[0])).reshape(1, LANE)
    w3p = jnp.pad(w3, ((0, LANE - w3.shape[0]), (0, LANE - w3.shape[1])))
    b3p = jnp.pad(b3, (0, LANE - b3.shape[0])).reshape(1, LANE)

    out = pl.pallas_call(
        _fc_head_kernel,
        out_shape=jax.ShapeDtypeStruct((B, LANE), jnp.float32),
        grid=(1,),
        in_specs=[
            pl.BlockSpec((B, K1), lambda i: (0, 0)),
            pl.BlockSpec((K1, LANE), lambda i: (0, 0)),
            pl.BlockSpec((1, LANE), lambda i: (0, 0)),
            pl.BlockSpec((LANE, LANE), lambda i: (0, 0)),
            pl.BlockSpec((1, LANE), lambda i: (0, 0)),
            pl.BlockSpec((LANE, LANE), lambda i: (0, 0)),
            pl.BlockSpec((1, LANE), lambda i: (0, 0)),
        ],
        out_specs=pl.BlockSpec((B, LANE), lambda i: (0, 0)),
    )(x, w1p, b1p, w2p, b2p, w3p, b3p)
    return out[:, :n_out]


# ------------------------------ JAX glue ops -------------------------------

def im2col(x, k):
    """x: (B,H,W,C) -> patches (B*Ho*Wo, k*k*C) with feature order (kh,kw,cin)."""
    B, H, W, C = x.shape
    Ho, Wo = H - k + 1, W - k + 1
    cols = []
    for i in range(k):
        for j in range(k):
            cols.append(x[:, i:i + Ho, j:j + Wo, :])
    p = jnp.concatenate(cols, axis=-1)
    return p.reshape(B * Ho * Wo, k * k * C), (B, Ho, Wo)


def conv2d_relu(x, w, b, *, tm=None):
    """Valid conv, stride 1, + ReLU.  x: (B,H,W,Cin), w: (kh,kw,Cin,Cout)."""
    k, _, cin, cout = w.shape
    patches, (B, Ho, Wo) = im2col(x, k)
    wmat = w.reshape(k * k * cin, cout)
    y = pallas_matmul_bias(patches, wmat, b, relu=True, tm=tm)
    return y.reshape(B, Ho, Wo, cout)


def maxpool3(x):
    """Non-overlapping 3x3 max pool (kernel=stride=3), NHWC.

    Lowered to an elementwise max over 9 shifted, lane-dense slabs:
    last dim of the Pallas op is Hp*Wp*C (lane-dense), not the 9-wide window."""
    B, H, W, C = x.shape
    Hp, Wp = H // 3, W // 3
    nf = Hp * Wp * C
    slabs = [x[:, i:Hp * 3:3, j:Wp * 3:3, :].reshape(B, nf)
             for i in range(3) for j in range(3)]
    stacked = jnp.stack(slabs, axis=0)                       # (9, B, Hp*Wp*C)
    y = pl.pallas_call(
        _max9_kernel,
        out_shape=jax.ShapeDtypeStruct((B, nf), jnp.float32),
        grid=(1,),
        in_specs=[pl.BlockSpec((9, B, nf), lambda i: (0, 0, 0))],
        out_specs=pl.BlockSpec((B, nf), lambda i: (0, 0)),
    )(stacked)
    return y.reshape(B, Hp, Wp, C)


# ------------------------------ model wiring -------------------------------

def init_params(key):
    ks = jax.random.split(key, 10)

    def u(k, shape, fan_in):
        bound = 1.0 / jnp.sqrt(jnp.float32(fan_in))
        return jax.random.uniform(k, shape, jnp.float32, -bound, bound)

    return dict(
        conv_w=u(ks[0], (6, 6, 4, 7), 4 * 36),      # HWIO
        conv_b=u(ks[1], (7,), 4 * 36),
        conv1_w=u(ks[2], (6, 6, 7, 17), 7 * 36),
        conv1_b=u(ks[3], (17,), 7 * 36),
        fc1_w=u(ks[4], (17 * 5 * 5, 120), 17 * 5 * 5),
        fc1_b=u(ks[5], (120,), 17 * 5 * 5),
        fc2_w=u(ks[6], (120, 84), 120),
        fc2_b=u(ks[7], (84,), 120),
        fc3_w=u(ks[8], (84, 10), 84),
        fc3_b=u(ks[9], (10,), 84),
    )


def forward(params, x_nchw):
    """Reproduces TheModelClass.forward compute.  Input is NCHW (PyTorch)."""
    x = jnp.transpose(x_nchw, (0, 2, 3, 1))                            # -> NHWC
    # conv1: im2col M = B*60*60 = 7200 -> tile M by 720 for DMA/MXU pipelining.
    x = conv2d_relu(x, params["conv_w"], params["conv_b"], tm=720)     # (B,60,60,7)
    x = maxpool3(x)                                                    # (B,20,20,7)
    x = conv2d_relu(x, params["conv1_w"], params["conv1_b"])           # (B,15,15,17)
    x = maxpool3(x)                                                    # (B,5,5,17)
    # PyTorch's X.view(-1, 17*5*5) flattens in (C, H, W) order.
    x = jnp.transpose(x, (0, 3, 1, 2)).reshape(x.shape[0], 17 * 5 * 5)
    x = pallas_fc_head(x, params["fc1_w"], params["fc1_b"],
                       params["fc2_w"], params["fc2_b"],
                       params["fc3_w"], params["fc3_b"])
    # TODO(synk): the reference forward() returns the class `X_train_gray`
    # (a placeholder/bug with no tensor semantics); we return the fc3 logits.
    return x


def reference_forward(params, x_nchw):
    """Pure-JAX (XLA) reference for correctness checking."""
    def conv(x, w, b):
        w_oihw = jnp.transpose(w, (3, 2, 0, 1))
        y = jax.lax.conv_general_dilated(
            x, w_oihw, window_strides=(1, 1), padding="VALID",
            dimension_numbers=("NCHW", "OIHW", "NCHW"))
        return jax.nn.relu(y + b[None, :, None, None])

    def pool(x):
        return jax.lax.reduce_window(
            x, -jnp.inf, jax.lax.max, (1, 1, 3, 3), (1, 1, 3, 3), "VALID")

    x = pool(conv(x_nchw, params["conv_w"], params["conv_b"]))
    x = pool(conv(x, params["conv1_w"], params["conv1_b"]))
    x = x.reshape(x.shape[0], 17 * 5 * 5)
    x = jax.nn.relu(x @ params["fc1_w"] + params["fc1_b"])
    x = jax.nn.relu(x @ params["fc2_w"] + params["fc2_b"])
    return x @ params["fc3_w"] + params["fc3_b"]


if __name__ == "__main__":
    key = jax.random.PRNGKey(0)
    k_param, k_data = jax.random.split(key)
    params = init_params(k_param)

    # Input spatial size must be 65 so that the flatten is exactly 17*5*5.
    x = jax.random.normal(k_data, (2, 4, 65, 65), dtype=jnp.float32)

    fwd = jax.jit(forward)
    ref_fn = jax.jit(reference_forward)

    out = jax.block_until_ready(fwd(params, x))
    ref = jax.block_until_ready(ref_fn(params, x))

    assert out.shape == (2, 10), out.shape
    assert jnp.allclose(out, ref, atol=1e-4, rtol=1e-4), "mismatch vs JAX reference"
    print("KERNEL_OK")
</pallas_src>

<mosaic_0001>
module attributes {stable_mosaic.version = 11 : i64} {
  func.func @_matmul_bias_kernel(%arg0: i32, %arg1: memref<720x144xf32, #tpu.memory_space<vmem>>, %arg2: memref<144x128xf32, #tpu.memory_space<vmem>>, %arg3: memref<1x128xf32, #tpu.memory_space<vmem>>, %arg4: memref<720x128xf32, #tpu.memory_space<vmem>>) attributes {dimension_semantics = [#tpu.dimension_semantics<parallel>], iteration_bounds = array<i64: 10>, scalar_prefetch = 0 : i64, scratch_operands = 0 : i64, tpu.core_type = #tpu.core_type<tc>, window_params = [{transform_indices = @transform_0, window_bounds = array<i64: 720, 144>}, {pipeline_mode = #tpu.pipeline_mode<synchronous>, transform_indices = @transform_1, window_bounds = array<i64: 144, 128>}, {pipeline_mode = #tpu.pipeline_mode<synchronous>, transform_indices = @transform_2, window_bounds = array<i64: 1, 128>}, {transform_indices = @transform_3, window_bounds = array<i64: 720, 128>}]} {
    %c0 = arith.constant 0 : index
    %c0_0 = arith.constant 0 : index
    %0 = vector.load %arg1[%c0, %c0_0] : memref<720x144xf32, #tpu.memory_space<vmem>>, vector<720x144xf32>
    %c0_1 = arith.constant 0 : index
    %c0_2 = arith.constant 0 : index
    %1 = vector.load %arg2[%c0_1, %c0_2] : memref<144x128xf32, #tpu.memory_space<vmem>>, vector<144x128xf32>
    %cst = arith.constant dense<0.000000e+00> : vector<720x128xf32>
    %2 = tpu.matmul %0, %1, %cst {dimension_numbers = #tpu.dot_dimension_numbers<[1], [0], [0], [1], [0, 0, 1, 1], [], []>} : vector<720x144xf32>, vector<144x128xf32>, vector<720x128xf32> -> vector<720x128xf32>
    %c0_3 = arith.constant 0 : index
    %c0_4 = arith.constant 0 : index
    %3 = vector.load %arg3[%c0_3, %c0_4] : memref<1x128xf32, #tpu.memory_space<vmem>>, vector<1x128xf32>
    %4 = vector.broadcast %3 : vector<1x128xf32> to vector<720x128xf32>
    %5 = arith.addf %2, %4 : vector<720x128xf32>
    %cst_5 = arith.constant 0.000000e+00 : f32
    %6 = vector.broadcast %cst_5 : f32 to vector<720x128xf32>
    %7 = arith.maximumf %5, %6 : vector<720x128xf32>
    %c0_6 = arith.constant 0 : index
    %c0_7 = arith.constant 0 : index
    %8 = vector.load %arg4[%c0_6, %c0_7] : memref<720x128xf32, #tpu.memory_space<vmem>>, vector<720x128xf32>
    tpu.vector_store %arg4[%c0_6, %c0_7], %7 {strides = array<i32>} : memref<720x128xf32, #tpu.memory_space<vmem>>, vector<720x128xf32>,
    return
  }
  func.func @transform_0(%arg0: i32) -> (i32, i32) {
    %c0_i32 = arith.constant 0 : i32
    %c0_i32_0 = arith.constant 0 : i32
    return %arg0, %c0_i32 : i32, i32
  }
  func.func @transform_1(%arg0: i32) -> (i32, i32) {
    %c0_i32 = arith.constant 0 : i32
    %c0_i32_0 = arith.constant 0 : i32
    %c0_i32_1 = arith.constant 0 : i32
    return %c0_i32, %c0_i32_0 : i32, i32
  }
  func.func @transform_2(%arg0: i32) -> (i32, i32) {
    %c0_i32 = arith.constant 0 : i32
    %c0_i32_0 = arith.constant 0 : i32
    %c0_i32_1 = arith.constant 0 : i32
    return %c0_i32, %c0_i32_0 : i32, i32
  }
  func.func @transform_3(%arg0: i32) -> (i32, i32) {
    %c0_i32 = arith.constant 0 : i32
    %c0_i32_0 = arith.constant 0 : i32
    return %arg0, %c0_i32 : i32, i32
  }
}

module attributes {stable_mosaic.version = 11 : i64} {
  func.func @_max9_kernel(%arg0: i32, %arg1: memref<9x2x2800xf32, #tpu.memory_space<vmem>>, %arg2: memref<2x2800xf32, #tpu.memory_space<vmem>>) attributes {dimension_semantics = [#tpu.dimension_semantics<arbitrary>], iteration_bounds = array<i64: 1>, scalar_prefetch = 0 : i64, scratch_operands = 0 : i64, tpu.core_type = #tpu.core_type<tc>, window_params = [{pipeline_mode = #tpu.pipeline_mode<synchronous>, transform_indices = @transform_0, window_bounds = array<i64: 9, 2, 2800>}, {pipeline_mode = #tpu.pipeline_mode<synchronous>, transform_indices = @transform_1, window_bounds = array<i64: 2, 2800>}]} {
    %c0 = arith.constant 0 : index
    %c0_0 = arith.constant 0 : index
    %c0_1 = arith.constant 0 : index
    %0 = vector.load %arg1[%c0, %c0_0, %c0_1] : memref<9x2x2800xf32, #tpu.memory_space<vmem>>, vector<1x2x2800xf32>
    %1 = vector.shape_cast %0 : vector<1x2x2800xf32> to vector<2x2800xf32>
    %c1 = arith.constant 1 : index
    %c0_2 = arith.constant 0 : index
    %c0_3 = arith.constant 0 : index
    %2 = vector.load %arg1[%c1, %c0_2, %c0_3] : memref<9x2x2800xf32, #tpu.memory_space<vmem>>, vector<1x2x2800xf32>
    %3 = vector.shape_cast %2 : vector<1x2x2800xf32> to vector<2x2800xf32>
    %4 = arith.maximumf %1, %3 : vector<2x2800xf32>
    %c2 = arith.constant 2 : index
    %c0_4 = arith.constant 0 : index
    %c0_5 = arith.constant 0 : index
    %5 = vector.load %arg1[%c2, %c0_4, %c0_5] : memref<9x2x2800xf32, #tpu.memory_space<vmem>>, vector<1x2x2800xf32>
    %6 = vector.shape_cast %5 : vector<1x2x2800xf32> to vector<2x2800xf32>
    %7 = arith.maximumf %4, %6 : vector<2x2800xf32>
    %c3 = arith.constant 3 : index
    %c0_6 = arith.constant 0 : index
    %c0_7 = arith.constant 0 : index
    %8 = vector.load %arg1[%c3, %c0_6, %c0_7] : memref<9x2x2800xf32, #tpu.memory_space<vmem>>, vector<1x2x2800xf32>
    %9 = vector.shape_cast %8 : vector<1x2x2800xf32> to vector<2x2800xf32>
    %10 = arith.maximumf %7, %9 : vector<2x2800xf32>
    %c4 = arith.constant 4 : index
    %c0_8 = arith.constant 0 : index
    %c0_9 = arith.constant 0 : index
    %11 = vector.load %arg1[%c4, %c0_8, %c0_9] : memref<9x2x2800xf32, #tpu.memory_space<vmem>>, vector<1x2x2800xf32>
    %12 = vector.shape_cast %11 : vector<1x2x2800xf32> to vector<2x2800xf32>
    %13 = arith.maximumf %10, %12 : vector<2x2800xf32>
    %c5 = arith.constant 5 : index
    %c0_10 = arith.constant 0 : index
    %c0_11 = arith.constant 0 : index
    %14 = vector.load %arg1[%c5, %c0_10, %c0_11] : memref<9x2x2800xf32, #tpu.memory_space<vmem>>, vector<1x2x2800xf32>
    %15 = vector.shape_cast %14 : vector<1x2x2800xf32> to vector<2x2800xf32>
    %16 = arith.maximumf %13, %15 : vector<2x2800xf32>
    %c6 = arith.constant 6 : index
    %c0_12 = arith.constant 0 : index
    %c0_13 = arith.constant 0 : index
    %17 = vector.load %arg1[%c6, %c0_12, %c0_13] : memref<9x2x2800xf32, #tpu.memory_space<vmem>>, vector<1x2x2800xf32>
    %18 = vector.shape_cast %17 : vector<1x2x2800xf32> to vector<2x2800xf32>
    %19 = arith.maximumf %16, %18 : vector<2x2800xf32>
    %c7 = arith.constant 7 : index
    %c0_14 = arith.constant 0 : index
    %c0_15 = arith.constant 0 : index
    %20 = vector.load %arg1[%c7, %c0_14, %c0_15] : memref<9x2x2800xf32, #tpu.memory_space<vmem>>, vector<1x2x2800xf32>
    %21 = vector.shape_cast %20 : vector<1x2x2800xf32> to vector<2x2800xf32>
    %22 = arith.maximumf %19, %21 : vector<2x2800xf32>
    %c8 = arith.constant 8 : index
    %c0_16 = arith.constant 0 : index
    %c0_17 = arith.constant 0 : index
    %23 = vector.load %arg1[%c8, %c0_16, %c0_17] : memref<9x2x2800xf32, #tpu.memory_space<vmem>>, vector<1x2x2800xf32>
    %24 = vector.shape_cast %23 : vector<1x2x2800xf32> to vector<2x2800xf32>
    %25 = arith.maximumf %22, %24 : vector<2x2800xf32>
    %c0_18 = arith.constant 0 : index
    %c0_19 = arith.constant 0 : index
    %26 = vector.load %arg2[%c0_18, %c0_19] : memref<2x2800xf32, #tpu.memory_space<vmem>>, vector<2x2800xf32>
    tpu.vector_store %arg2[%c0_18, %c0_19], %25 {strides = array<i32>} : memref<2x2800xf32, #tpu.memory_space<vmem>>, vector<2x2800xf32>,
    return
  }
  func.func @transform_0(%arg0: i32) -> (i32, i32, i32) {
    %c0_i32 = arith.constant 0 : i32
    %c0_i32_0 = arith.constant 0 : i32
    %c0_i32_1 = arith.constant 0 : i32
    %c0_i32_2 = arith.constant 0 : i32
    return %c0_i32, %c0_i32_0, %c0_i32_1 : i32, i32, i32
  }
  func.func @transform_1(%arg0: i32) -> (i32, i32) {
    %c0_i32 = arith.constant 0 : i32
    %c0_i32_0 = arith.constant 0 : i32
    %c0_i32_1 = arith.constant 0 : i32
    return %c0_i32, %c0_i32_0 : i32, i32
  }
}

module attributes {stable_mosaic.version = 11 : i64} {
  func.func @_matmul_bias_kernel(%arg0: i32, %arg1: memref<450x252xf32, #tpu.memory_space<vmem>>, %arg2: memref<252x128xf32, #tpu.memory_space<vmem>>, %arg3: memref<1x128xf32, #tpu.memory_space<vmem>>, %arg4: memref<450x128xf32, #tpu.memory_space<vmem>>) attributes {dimension_semantics = [#tpu.dimension_semantics<parallel>], iteration_bounds = array<i64: 1>, scalar_prefetch = 0 : i64, scratch_operands = 0 : i64, tpu.core_type = #tpu.core_type<tc>, window_params = [{transform_indices = @transform_0, window_bounds = array<i64: 450, 252>}, {pipeline_mode = #tpu.pipeline_mode<synchronous>, transform_indices = @transform_1, window_bounds = array<i64: 252, 128>}, {pipeline_mode = #tpu.pipeline_mode<synchronous>, transform_indices = @transform_2, window_bounds = array<i64: 1, 128>}, {transform_indices = @transform_3, window_bounds = array<i64: 450, 128>}]} {
    %c0 = arith.constant 0 : index
    %c0_0 = arith.constant 0 : index
    %0 = vector.load %arg1[%c0, %c0_0] : memref<450x252xf32, #tpu.memory_space<vmem>>, vector<450x252xf32>
    %c0_1 = arith.constant 0 : index
    %c0_2 = arith.constant 0 : index
    %1 = vector.load %arg2[%c0_1, %c0_2] : memref<252x128xf32, #tpu.memory_space<vmem>>, vector<252x128xf32>
    %cst = arith.constant dense<0.000000e+00> : vector<450x128xf32>
    %2 = tpu.matmul %0, %1, %cst {dimension_numbers = #tpu.dot_dimension_numbers<[1], [0], [0], [1], [0, 0, 1, 1], [], []>} : vector<450x252xf32>, vector<252x128xf32>, vector<450x128xf32> -> vector<450x128xf32>
    %c0_3 = arith.constant 0 : index
    %c0_4 = arith.constant 0 : index
    %3 = vector.load %arg3[%c0_3, %c0_4] : memref<1x128xf32, #tpu.memory_space<vmem>>, vector<1x128xf32>
    %4 = vector.broadcast %3 : vector<1x128xf32> to vector<450x128xf32>
    %5 = arith.addf %2, %4 : vector<450x128xf32>
    %cst_5 = arith.constant 0.000000e+00 : f32
    %6 = vector.broadcast %cst_5 : f32 to vector<450x128xf32>
    %7 = arith.maximumf %5, %6 : vector<450x128xf32>
    %c0_6 = arith.constant 0 : index
    %c0_7 = arith.constant 0 : index
    %8 = vector.load %arg4[%c0_6, %c0_7] : memref<450x128xf32, #tpu.memory_space<vmem>>, vector<450x128xf32>
    tpu.vector_store %arg4[%c0_6, %c0_7], %7 {strides = array<i32>} : memref<450x128xf32, #tpu.memory_space<vmem>>, vector<450x128xf32>,
    return
  }
  func.func @transform_0(%arg0: i32) -> (i32, i32) {
    %c0_i32 = arith.constant 0 : i32
    %c0_i32_0 = arith.constant 0 : i32
    return %arg0, %c0_i32 : i32, i32
  }
  func.func @transform_1(%arg0: i32) -> (i32, i32) {
    %c0_i32 = arith.constant 0 : i32
    %c0_i32_0 = arith.constant 0 : i32
    %c0_i32_1 = arith.constant 0 : i32
    return %c0_i32, %c0_i32_0 : i32, i32
  }
  func.func @transform_2(%arg0: i32) -> (i32, i32) {
    %c0_i32 = arith.constant 0 : i32
    %c0_i32_0 = arith.constant 0 : i32
    %c0_i32_1 = arith.constant 0 : i32
    return %c0_i32, %c0_i32_0 : i32, i32
  }
  func.func @transform_3(%arg0: i32) -> (i32, i32) {
    %c0_i32 = arith.constant 0 : i32
    %c0_i32_0 = arith.constant 0 : i32
    return %arg0, %c0_i32 : i32, i32
  }
}

module attributes {stable_mosaic.version = 11 : i64} {
  func.func @_max9_kernel(%arg0: i32, %arg1: memref<9x2x425xf32, #tpu.memory_space<vmem>>, %arg2: memref<2x425xf32, #tpu.memory_space<vmem>>) attributes {dimension_semantics = [#tpu.dimension_semantics<arbitrary>], iteration_bounds = array<i64: 1>, scalar_prefetch = 0 : i64, scratch_operands = 0 : i64, tpu.core_type = #tpu.core_type<tc>, window_params = [{pipeline_mode = #tpu.pipeline_mode<synchronous>, transform_indices = @transform_0, window_bounds = array<i64: 9, 2, 425>}, {pipeline_mode = #tpu.pipeline_mode<synchronous>, transform_indices = @transform_1, window_bounds = array<i64: 2, 425>}]} {
    %c0 = arith.constant 0 : index
    %c0_0 = arith.constant 0 : index
    %c0_1 = arith.constant 0 : index
    %0 = vector.load %arg1[%c0, %c0_0, %c0_1] : memref<9x2x425xf32, #tpu.memory_space<vmem>>, vector<1x2x425xf32>
    %1 = vector.shape_cast %0 : vector<1x2x425xf32> to vector<2x425xf32>
    %c1 = arith.constant 1 : index
    %c0_2 = arith.constant 0 : index
    %c0_3 = arith.constant 0 : index
    %2 = vector.load %arg1[%c1, %c0_2, %c0_3] : memref<9x2x425xf32, #tpu.memory_space<vmem>>, vector<1x2x425xf32>
    %3 = vector.shape_cast %2 : vector<1x2x425xf32> to vector<2x425xf32>
    %4 = arith.maximumf %1, %3 : vector<2x425xf32>
    %c2 = arith.constant 2 : index
    %c0_4 = arith.constant 0 : index
    %c0_5 = arith.constant 0 : index
    %5 = vector.load %arg1[%c2, %c0_4, %c0_5] : memref<9x2x425xf32, #tpu.memory_space<vmem>>, vector<1x2x425xf32>
    %6 = vector.shape_cast %5 : vector<1x2x425xf32> to vector<2x425xf32>
    %7 = arith.maximumf %4, %6 : vector<2x425xf32>
    %c3 = arith.constant 3 : index
    %c0_6 = arith.constant 0 : index
    %c0_7 = arith.constant 0 : index
    %8 = vector.load %arg1[%c3, %c0_6, %c0_7] : memref<9x2x425xf32, #tpu.memory_space<vmem>>, vector<1x2x425xf32>
    %9 = vector.shape_cast %8 : vector<1x2x425xf32> to vector<2x425xf32>
    %10 = arith.maximumf %7, %9 : vector<2x425xf32>
    %c4 = arith.constant 4 : index
    %c0_8 = arith.constant 0 : index
    %c0_9 = arith.constant 0 : index
    %11 = vector.load %arg1[%c4, %c0_8, %c0_9] : memref<9x2x425xf32, #tpu.memory_space<vmem>>, vector<1x2x425xf32>
    %12 = vector.shape_cast %11 : vector<1x2x425xf32> to vector<2x425xf32>
    %13 = arith.maximumf %10, %12 : vector<2x425xf32>
    %c5 = arith.constant 5 : index
    %c0_10 = arith.constant 0 : index
    %c0_11 = arith.constant 0 : index
    %14 = vector.load %arg1[%c5, %c0_10, %c0_11] : memref<9x2x425xf32, #tpu.memory_space<vmem>>, vector<1x2x425xf32>
    %15 = vector.shape_cast %14 : vector<1x2x425xf32> to vector<2x425xf32>
    %16 = arith.maximumf %13, %15 : vector<2x425xf32>
    %c6 = arith.constant 6 : index
    %c0_12 = arith.constant 0 : index
    %c0_13 = arith.constant 0 : index
    %17 = vector.load %arg1[%c6, %c0_12, %c0_13] : memref<9x2x425xf32, #tpu.memory_space<vmem>>, vector<1x2x425xf32>
    %18 = vector.shape_cast %17 : vector<1x2x425xf32> to vector<2x425xf32>
    %19 = arith.maximumf %16, %18 : vector<2x425xf32>
    %c7 = arith.constant 7 : index
    %c0_14 = arith.constant 0 : index
    %c0_15 = arith.constant 0 : index
    %20 = vector.load %arg1[%c7, %c0_14, %c0_15] : memref<9x2x425xf32, #tpu.memory_space<vmem>>, vector<1x2x425xf32>
    %21 = vector.shape_cast %20 : vector<1x2x425xf32> to vector<2x425xf32>
    %22 = arith.maximumf %19, %21 : vector<2x425xf32>
    %c8 = arith.constant 8 : index
    %c0_16 = arith.constant 0 : index
    %c0_17 = arith.constant 0 : index
    %23 = vector.load %arg1[%c8, %c0_16, %c0_17] : memref<9x2x425xf32, #tpu.memory_space<vmem>>, vector<1x2x425xf32>
    %24 = vector.shape_cast %23 : vector<1x2x425xf32> to vector<2x425xf32>
    %25 = arith.maximumf %22, %24 : vector<2x425xf32>
    %c0_18 = arith.constant 0 : index
    %c0_19 = arith.constant 0 : index
    %26 = vector.load %arg2[%c0_18, %c0_19] : memref<2x425xf32, #tpu.memory_space<vmem>>, vector<2x425xf32>
    tpu.vector_store %arg2[%c0_18, %c0_19], %25 {strides = array<i32>} : memref<2x425xf32, #tpu.memory_space<vmem>>, vector<2x425xf32>,
    return
  }
  func.func @transform_0(%arg0: i32) -> (i32, i32, i32) {
    %c0_i32 = arith.constant 0 : i32
    %c0_i32_0 = arith.constant 0 : i32
    %c0_i32_1 = arith.constant 0 : i32
    %c0_i32_2 = arith.constant 0 : i32
    return %c0_i32, %c0_i32_0, %c0_i32_1 : i32, i32, i32
  }
  func.func @transform_1(%arg0: i32) -> (i32, i32) {
    %c0_i32 = arith.constant 0 : i32
    %c0_i32_0 = arith.constant 0 : i32
    %c0_i32_1 = arith.constant 0 : i32
    return %c0_i32, %c0_i32_0 : i32, i32
  }
}

module attributes {stable_mosaic.version = 11 : i64} {
  func.func @_fc_head_kernel(%arg0: i32, %arg1: memref<2x425xf32, #tpu.memory_space<vmem>>, %arg2: memref<425x128xf32, #tpu.memory_space<vmem>>, %arg3: memref<1x128xf32, #tpu.memory_space<vmem>>, %arg4: memref<128x128xf32, #tpu.memory_space<vmem>>, %arg5: memref<1x128xf32, #tpu.memory_space<vmem>>, %arg6: memref<128x128xf32, #tpu.memory_space<vmem>>, %arg7: memref<1x128xf32, #tpu.memory_space<vmem>>, %arg8: memref<2x128xf32, #tpu.memory_space<vmem>>) attributes {dimension_semantics = [#tpu.dimension_semantics<arbitrary>], iteration_bounds = array<i64: 1>, scalar_prefetch = 0 : i64, scratch_operands = 0 : i64, tpu.core_type = #tpu.core_type<tc>, window_params = [{pipeline_mode = #tpu.pipeline_mode<synchronous>, transform_indices = @transform_0, window_bounds = array<i64: 2, 425>}, {pipeline_mode = #tpu.pipeline_mode<synchronous>, transform_indices = @transform_1, window_bounds = array<i64: 425, 128>}, {pipeline_mode = #tpu.pipeline_mode<synchronous>, transform_indices = @transform_2, window_bounds = array<i64: 1, 128>}, {pipeline_mode = #tpu.pipeline_mode<synchronous>, transform_indices = @transform_3, window_bounds = array<i64: 128, 128>}, {pipeline_mode = #tpu.pipeline_mode<synchronous>, transform_indices = @transform_4, window_bounds = array<i64: 1, 128>}, {pipeline_mode = #tpu.pipeline_mode<synchronous>, transform_indices = @transform_5, window_bounds = array<i64: 128, 128>}, {pipeline_mode = #tpu.pipeline_mode<synchronous>, transform_indices = @transform_6, window_bounds = array<i64: 1, 128>}, {pipeline_mode = #tpu.pipeline_mode<synchronous>, transform_indices = @transform_7, window_bounds = array<i64: 2, 128>}]} {
    %c0 = arith.constant 0 : index
    %c0_0 = arith.constant 0 : index
    %0 = vector.load %arg1[%c0, %c0_0] : memref<2x425xf32, #tpu.memory_space<vmem>>, vector<2x425xf32>
    %c0_1 = arith.constant 0 : index
    %c0_2 = arith.constant 0 : index
    %1 = vector.load %arg2[%c0_1, %c0_2] : memref<425x128xf32, #tpu.memory_space<vmem>>, vector<425x128xf32>
    %cst = arith.constant dense<0.000000e+00> : vector<2x128xf32>
    %2 = tpu.matmul %0, %1, %cst {dimension_numbers = #tpu.dot_dimension_numbers<[1], [0], [0], [1], [0, 0, 1, 1], [], []>} : vector<2x425xf32>, vector<425x128xf32>, vector<2x128xf32> -> vector<2x128xf32>
    %c0_3 = arith.constant 0 : index
    %c0_4 = arith.constant 0 : index
    %3 = vector.load %arg3[%c0_3, %c0_4] : memref<1x128xf32, #tpu.memory_space<vmem>>, vector<1x128xf32>
    %4 = vector.broadcast %3 : vector<1x128xf32> to vector<2x128xf32>
    %5 = arith.addf %2, %4 : vector<2x128xf32>
    %cst_5 = arith.constant 0.000000e+00 : f32
    %6 = vector.broadcast %cst_5 : f32 to vector<2x128xf32>
    %7 = arith.maximumf %5, %6 : vector<2x128xf32>
    %c0_6 = arith.constant 0 : index
    %c0_7 = arith.constant 0 : index
    %8 = vector.load %arg4[%c0_6, %c0_7] : memref<128x128xf32, #tpu.memory_space<vmem>>, vector<128x128xf32>
    %cst_8 = arith.constant dense<0.000000e+00> : vector<2x128xf32>
    %9 = tpu.matmul %7, %8, %cst_8 {dimension_numbers = #tpu.dot_dimension_numbers<[1], [0], [0], [1], [0, 0, 1, 1], [], []>} : vector<2x128xf32>, vector<128x128xf32>, vector<2x128xf32> -> vector<2x128xf32>
    %c0_9 = arith.constant 0 : index
    %c0_10 = arith.constant 0 : index
    %10 = vector.load %arg5[%c0_9, %c0_10] : memref<1x128xf32, #tpu.memory_space<vmem>>, vector<1x128xf32>
    %11 = vector.broadcast %10 : vector<1x128xf32> to vector<2x128xf32>
    %12 = arith.addf %9, %11 : vector<2x128xf32>
    %cst_11 = arith.constant 0.000000e+00 : f32
    %13 = vector.broadcast %cst_11 : f32 to vector<2x128xf32>
    %14 = arith.maximumf %12, %13 : vector<2x128xf32>
    %c0_12 = arith.constant 0 : index
    %c0_13 = arith.constant 0 : index
    %15 = vector.load %arg6[%c0_12, %c0_13] : memref<128x128xf32, #tpu.memory_space<vmem>>, vector<128x128xf32>
    %cst_14 = arith.constant dense<0.000000e+00> : vector<2x128xf32>
    %16 = tpu.matmul %14, %15, %cst_14 {dimension_numbers = #tpu.dot_dimension_numbers<[1], [0], [0], [1], [0, 0, 1, 1], [], []>} : vector<2x128xf32>, vector<128x128xf32>, vector<2x128xf32> -> vector<2x128xf32>
    %c0_15 = arith.constant 0 : index
    %c0_16 = arith.constant 0 : index
    %17 = vector.load %arg7[%c0_15, %c0_16] : memref<1x128xf32, #tpu.memory_space<vmem>>, vector<1x128xf32>
    %18 = vector.broadcast %17 : vector<1x128xf32> to vector<2x128xf32>
    %19 = arith.addf %16, %18 : vector<2x128xf32>
    %c0_17 = arith.constant 0 : index
    %c0_18 = arith.constant 0 : index
    %20 = vector.load %arg8[%c0_17, %c0_18] : memref<2x128xf32, #tpu.memory_space<vmem>>, vector<2x128xf32>
    tpu.vector_store %arg8[%c0_17, %c0_18], %19 {strides = array<i32>} : memref<2x128xf32, #tpu.memory_space<vmem>>, vector<2x128xf32>,
    return
  }
  func.func @transform_0(%arg0: i32) -> (i32, i32) {
    %c0_i32 = arith.constant 0 : i32
    %c0_i32_0 = arith.constant 0 : i32
    %c0_i32_1 = arith.constant 0 : i32
    return %c0_i32, %c0_i32_0 : i32, i32
  }
  func.func @transform_1(%arg0: i32) -> (i32, i32) {
    %c0_i32 = arith.constant 0 : i32
    %c0_i32_0 = arith.constant 0 : i32
    %c0_i32_1 = arith.constant 0 : i32
    return %c0_i32, %c0_i32_0 : i32, i32
  }
  func.func @transform_2(%arg0: i32) -> (i32, i32) {
    %c0_i32 = arith.constant 0 : i32
    %c0_i32_0 = arith.constant 0 : i32
    %c0_i32_1 = arith.constant 0 : i32
    return %c0_i32, %c0_i32_0 : i32, i32
  }
  func.func @transform_3(%arg0: i32) -> (i32, i32) {
    %c0_i32 = arith.constant 0 : i32
    %c0_i32_0 = arith.constant 0 : i32
    %c0_i32_1 = arith.constant 0 : i32
    return %c0_i32, %c0_i32_0 : i32, i32
  }
  func.func @transform_4(%arg0: i32) -> (i32, i32) {
    %c0_i32 = arith.constant 0 : i32
    %c0_i32_0 = arith.constant 0 : i32
    %c0_i32_1 = arith.constant 0 : i32
    return %c0_i32, %c0_i32_0 : i32, i32
  }
  func.func @transform_5(%arg0: i32) -> (i32, i32) {
    %c0_i32 = arith.constant 0 : i32
    %c0_i32_0 = arith.constant 0 : i32
    %c0_i32_1 = arith.constant 0 : i32
    return %c0_i32, %c0_i32_0 : i32, i32
  }
  func.func @transform_6(%arg0: i32) -> (i32, i32) {
    %c0_i32 = arith.constant 0 : i32
    %c0_i32_0 = arith.constant 0 : i32
    %c0_i32_1 = arith.constant 0 : i32
    return %c0_i32, %c0_i32_0 : i32, i32
  }
  func.func @transform_7(%arg0: i32) -> (i32, i32) {
    %c0_i32 = arith.constant 0 : i32
    %c0_i32_0 = arith.constant 0 : i32
    %c0_i32_1 = arith.constant 0 : i32
    return %c0_i32, %c0_i32_0 : i32, i32
  }
}

</mosaic_0001>

<bundles_post_ra>
// kernel: forward.5
= control target key start
LH: loop header
LB: loop body
LE: loop exit
PB: predicated region body
PF: predicated region fallthrough
CT: control target
= control target key end

     0   :  { %s1580_s12 = smov 0   ;;  %s2152_s0 = inlined_call_operand.vmem [shape: f32[7200,144], index: 0, kind: input, shape index: {}]   ;;  %s2153_s1 = inlined_call_operand.vmem [shape: f32[144,128], index: 1, kind: input, shape index: {}]   ;;  %s2154_s2 = inlined_call_operand.vmem [shape: f32[1,128], index: 2, kind: input, shape index: {}]   ;;  %s2155_s3 = inlined_call_operand.vmem [shape: f32[7200,128], index: 3, kind: output, shape index: {}]  }
   0x1 LB: > { %s1404_s13 = sadd.s32 4294967295, %s1557_s12   ;;  %p1408_p0 = scmp.ge.s32.totalorder %s1557_s12, 1  ;;  %s1557_s12 = sphi %s1580_s12, %s13_s12  }
   0x2   : > { %p139_p1 = scmp.lt.s32.totalorder %s1557_s12, 11 }
   0x4   : > { %p140_p2 = pnand %p1408_p0, %p139_p1 }
   0x5   : > { %s164_s5 = smul.u32 (!%p140_p2), 90, %s1404_s13 }
   0x6   : > { %143 = sbr.rel (%p140_p2) target bundleno = 423 (0x1a7), region = 32 }
   0x7   : > { %p165_p3 = scmp.lt.s32.totalorder (!%p140_p2), %s164_s5, 899 }
   0xb   : > { %v372_v0 = vld [vmem:[%s2153_s1 + $0x78] sm:$0xff]  ;;  %v1559_v1 = vmov 0.0   ;;  %v371_v2 = vld [vmem:[%s2153_s1 + $0x70] sm:$0xff]  ;;  %v370_v3 = vld [vmem:[%s2153_s1 + $0x68] sm:$0xff]  ;;  %s2157_s5 = smov (!%p165_p3, %s164_s5), 899  ;;  %vm382_vm0 = vcmask 130048  }
   0xc   : > { %653 = vmatprep.subr.mxu0 %v1559_v1  ;;  %1506 = vmatprep.subr.mxu1 %v1559_v1  ;;  %v369_v4 = vld [vmem:[%s2153_s1 + $0x60] sm:$0xff]  ;;  %v368_v5 = vld [vmem:[%s2153_s1 + $0x58] sm:$0xff]  ;;  %v367_v6 = vld [vmem:[%s2153_s1 + $0x50] sm:$0xff]  ;;  %s1505_s19 = sshll.u32 %s2157_s5, 4  ;;  %s1411_s4 = sshll.u32 %s2157_s5, 3 }
   0xd   : > { %654 = vmatpush1.msra.mxu0 %v372_v0  ;;  %1524 = vmatpush1.msra.mxu1 %v372_v0  ;;  %v366_v7 = vld [vmem:[%s2153_s1 + $0x48] sm:$0xff]  ;;  %v365_v8 = vld [vmem:[%s2153_s1 + $0x40] sm:$0xff]  ;;  %v364_v9 = vld [vmem:[%s2153_s1 + $0x38] sm:$0xff]  ;;  %s1679_s26 = scalar_lea.vmem %s2152_s0, %s1505_s19  ;;  %s1969_s8 = scalar_lea.vmem %s2155_s3, %s1411_s4 }
   0xe   : > { %655 = vmatprep.subr.mxu0 %v1559_v1  ;;  %1507 = vmatprep.subr.mxu1 %v1559_v1  ;;  %v363_v10 = vld [vmem:[%s2153_s1 + $0x30] sm:$0xff]  ;;  %v362_v11 = vld [vmem:[%s2153_s1 + $0x28] sm:$0xff]  ;;  %v361_v12 = vld [vmem:[%s2153_s1 + $0x20] sm:$0xff] }
   0xf   : > { %656 = vmatpush1.msra.mxu0 %v371_v2  ;;  %1525 = vmatpush1.msra.mxu1 %v371_v2  ;;  %v360_v13 = vld [vmem:[%s2153_s1 + $0x18] sm:$0xff]  ;;  %v359_v14 = vld [vmem:[%s2153_s1 + $0x10] sm:$0xff]  ;;  %v358_v15 = vld [vmem:[%s2153_s1 + $0x8] sm:$0xff] }
  0x10   : > { %657 = vmatprep.subr.mxu0 %v1559_v1  ;;  %1508 = vmatprep.subr.mxu1 %v1559_v1  ;;  %v357_v16 = vld [vmem:[%s2153_s1] sm:$0xff]  ;;  %v374_v17 = vld [vmem:[%s2153_s1 + $0x88] sm:$0xff]  ;;  %v268_v20 = vld [vmem:[%s1679_s26 + $0x2d8] sm:$0xff] }
  0x11   : > { %658 = vmatpush1.msra.mxu0 %v370_v3  ;;  %1526 = vmatpush1.msra.mxu1 %v370_v3  ;;  %v373_v18 = vld [vmem:[%s2153_s1 + $0x80] sm:$0xff]  ;;  %v178_v19 = vld [vmem:[%s1679_s26 + $0x8] sm:$0xff]  ;;  %v267_v22 = vld [vmem:[%s1679_s26 + $0x2d0] sm:$0xff] }
  0x12   : > { %659 = vmatprep.subr.mxu0 %v1559_v1  ;;  %1509 = vmatprep.subr.mxu1 %v1559_v1  ;;  %v177_v21 = vld [vmem:[%s1679_s26] sm:$0xff]  ;;  %v180_v23 = vld [vmem:[%s1679_s26 + $0x18] sm:$0xff]  ;;  %v270_v24 = vld [vmem:[%s1679_s26 + $0x2e8] sm:$0xff] }
  0x13   : > { %660 = vmatpush1.msra.mxu0 %v369_v4  ;;  %1527 = vmatpush1.msra.mxu1 %v369_v4  ;;  %v179_v25 = vld [vmem:[%s1679_s26 + $0x10] sm:$0xff]  ;;  %v269_v26 = vld [vmem:[%s1679_s26 + $0x2e0] sm:$0xff]  ;;  %v182_v27 = vld [vmem:[%s1679_s26 + $0x28] sm:$0xff] }
  0x14   : > { %661 = vmatprep.subr.mxu0 %v1559_v1  ;;  %1510 = vmatprep.subr.mxu1 %v1559_v1  ;;  %v272_v28 = vld [vmem:[%s1679_s26 + $0x2f8] sm:$0xff]  ;;  %v181_v29 = vld [vmem:[%s1679_s26 + $0x20] sm:$0xff]  ;;  %v271_v30 = vld [vmem:[%s1679_s26 + $0x2f0] sm:$0xff] }
  0x15   : > { %662 = vmatpush1.msra.mxu0 %v368_v5  ;;  %1528 = vmatpush1.msra.mxu1 %v368_v5  ;;  %v184_v31 = vld [vmem:[%s1679_s26 + $0x38] sm:$0xff]  ;;  %v274_v32 = vld [vmem:[%s1679_s26 + $0x308] sm:$0xff]  ;;  %v183_v33 = vld [vmem:[%s1679_s26 + $0x30] sm:$0xff] }
  0x16   : > { %663 = vmatprep.subr.mxu0 %v1559_v1  ;;  %1511 = vmatprep.subr.mxu1 %v1559_v1  ;;  %v273_v34 = vld [vmem:[%s1679_s26 + $0x300] sm:$0xff]  ;;  %v186_v35 = vld [vmem:[%s1679_s26 + $0x48] sm:$0xff]  ;;  %v276_v36 = vld [vmem:[%s1679_s26 + $0x318] sm:$0xff] }
  0x17   : > { %664 = vmatpush1.msra.mxu0 %v367_v6  ;;  %1529 = vmatpush1.msra.mxu1 %v367_v6  ;;  %v185_v37 = vld [vmem:[%s1679_s26 + $0x40] sm:$0xff]  ;;  %v275_v38 = vld [vmem:[%s1679_s26 + $0x310] sm:$0xff]  ;;  %v188_v39 = vld [vmem:[%s1679_s26 + $0x58] sm:$0xff] }
  0x18   : > { %665 = vmatprep.subr.mxu0 %v1559_v1  ;;  %1512 = vmatprep.subr.mxu1 %v1559_v1  ;;  %v278_v40 = vld [vmem:[%s1679_s26 + $0x328] sm:$0xff]  ;;  %v187_v41 = vld [vmem:[%s1679_s26 + $0x50] sm:$0xff]  ;;  %v277_v42 = vld [vmem:[%s1679_s26 + $0x320] sm:$0xff] }
  0x19   : > { %666 = vmatpush1.msra.mxu0 %v366_v7  ;;  %1530 = vmatpush1.msra.mxu1 %v366_v7  ;;  %v190_v43 = vld [vmem:[%s1679_s26 + $0x68] sm:$0xff]  ;;  %v280_v44 = vld [vmem:[%s1679_s26 + $0x338] sm:$0xff]  ;;  %v189_v45 = vld [vmem:[%s1679_s26 + $0x60] sm:$0xff] }
  0x1a   : > { %667 = vmatprep.subr.mxu0 %v1559_v1  ;;  %1513 = vmatprep.subr.mxu1 %v1559_v1  ;;  %v279_v46 = vld [vmem:[%s1679_s26 + $0x330] sm:$0xff]  ;;  %v192_v47 = vld [vmem:[%s1679_s26 + $0x78] sm:$0xff]  ;;  %v282_v48 = vld [vmem:[%s1679_s26 + $0x348] sm:$0xff] }
  0x1b   : > { %668 = vmatpush1.msra.mxu0 %v365_v8  ;;  %1531 = vmatpush1.msra.mxu1 %v365_v8  ;;  %v191_v49 = vld [vmem:[%s1679_s26 + $0x70] sm:$0xff]  ;;  %v281_v50 = vld [vmem:[%s1679_s26 + $0x340] sm:$0xff]  ;;  %v194_v51 = vld [vmem:[%s1679_s26 + $0x88] sm:$0xff] }
  0x1c   : > { %669 = vmatprep.subr.mxu0 %v1559_v1  ;;  %1514 = vmatprep.subr.mxu1 %v1559_v1  ;;  %v284_v52 = vld [vmem:[%s1679_s26 + $0x358] sm:$0xff]  ;;  %v193_v53 = vld [vmem:[%s1679_s26 + $0x80] sm:$0xff]  ;;  %v283_v54 = vld [vmem:[%s1679_s26 + $0x350] sm:$0xff] }
  0x1d   : > { %670 = vmatpush1.msra.mxu0 %v364_v9  ;;  %1532 = vmatpush1.msra.mxu1 %v364_v9  ;;  %v196_v55 = vld [vmem:[%s1679_s26 + $0x98] sm:$0xff]  ;;  %v286_v56 = vld [vmem:[%s1679_s26 + $0x368] sm:$0xff]  ;;  %v195_v57 = vld [vmem:[%s1679_s26 + $0x90] sm:$0xff] }
  0x1e   : > { %671 = vmatprep.subr.mxu0 %v1559_v1  ;;  %1515 = vmatprep.subr.mxu1 %v1559_v1  ;;  %v285_v58 = vld [vmem:[%s1679_s26 + $0x360] sm:$0xff]  ;;  %v198_v59 = vld [vmem:[%s1679_s26 + $0xa8] sm:$0xff]  ;;  %v288_v60 = vld [vmem:[%s1679_s26 + $0x378] sm:$0xff] }
  0x1f   : > { %672 = vmatpush1.msra.mxu0 %v363_v10  ;;  %1533 = vmatpush1.msra.mxu1 %v363_v10  ;;  %v197_v61 = vld [vmem:[%s1679_s26 + $0xa0] sm:$0xff]  ;;  %v287_v62 = vld [vmem:[%s1679_s26 + $0x370] sm:$0xff]  ;;  %v200_v63 = vld [vmem:[%s1679_s26 + $0xb8] sm:$0xff] }
  0x20   : > { %673 = vmatprep.subr.mxu0 %v1559_v1  ;;  %1516 = vmatprep.subr.mxu1 %v1559_v1  ;;  %v290_v0 = vld [vmem:[%s1679_s26 + $0x388] sm:$0xff]  ;;  %v289_v2 = vld [vmem:[%s1679_s26 + $0x380] sm:$0xff]  ;;  %v292_v4 = vld [vmem:[%s1679_s26 + $0x398] sm:$0xff] }
  0x21   : > { %674 = vmatpush1.msra.mxu0 %v362_v11  ;;  %1534 = vmatpush1.msra.mxu1 %v362_v11  ;;  %v202_v3 = vld [vmem:[%s1679_s26 + $0xc8] sm:$0xff]  ;;  %v201_v5 = vld [vmem:[%s1679_s26 + $0xc0] sm:$0xff]  ;;  %v291_v6 = vld [vmem:[%s1679_s26 + $0x390] sm:$0xff] }
  0x22   : > { %675 = vmatprep.subr.mxu0 %v1559_v1  ;;  %1517 = vmatprep.subr.mxu1 %v1559_v1  ;;  %v204_v7 = vld [vmem:[%s1679_s26 + $0xd8] sm:$0xff]  ;;  %v294_v8 = vld [vmem:[%s1679_s26 + $0x3a8] sm:$0xff]  ;;  %v203_v9 = vld [vmem:[%s1679_s26 + $0xd0] sm:$0xff] }
  0x23   : > { %676 = vmatpush1.msra.mxu0 %v361_v12  ;;  %1535 = vmatpush1.msra.mxu1 %v361_v12  ;;  %v293_v10 = vld [vmem:[%s1679_s26 + $0x3a0] sm:$0xff]  ;;  %v206_v11 = vld [vmem:[%s1679_s26 + $0xe8] sm:$0xff]  ;;  %v296_v12 = vld [vmem:[%s1679_s26 + $0x3b8] sm:$0xff] }
  0x24   : > { %677 = vmatprep.subr.mxu0 %v1559_v1  ;;  %1518 = vmatprep.subr.mxu1 %v1559_v1 }
  0x25   : > { %678 = vmatpush1.msra.mxu0 %v360_v13  ;;  %1536 = vmatpush1.msra.mxu1 %v360_v13  ;;  %v205_v13 = vld [vmem:[%s1679_s26 + $0xe0] sm:$0xff] }
  0x26   : > { %679 = vmatprep.subr.mxu0 %v1559_v1  ;;  %1519 = vmatprep.subr.mxu1 %v1559_v1 }
  0x27   : > { %680 = vmatpush1.msra.mxu0 %v359_v14  ;;  %1537 = vmatpush1.msra.mxu1 %v359_v14  ;;  %v295_v14 = vld [vmem:[%s1679_s26 + $0x3b0] sm:$0xff] }
  0x28   : > { %681 = vmatprep.subr.mxu0 %v1559_v1  ;;  %1520 = vmatprep.subr.mxu1 %v1559_v1 }
  0x29   : > { %682 = vmatpush1.msra.mxu0 %v358_v15  ;;  %1538 = vmatpush1.msra.mxu1 %v358_v15  ;;  %v208_v15 = vld [vmem:[%s1679_s26 + $0xf8] sm:$0xff] }
  0x2a   : > { %683 = vmatprep.subr.mxu0 %v1559_v1  ;;  %1521 = vmatprep.subr.mxu1 %v1559_v1 }
  0x2b   : > { %684 = vmatpush1.msra.mxu0 %v357_v16  ;;  %1539 = vmatpush1.msra.mxu1 %v357_v16  ;;  %v298_v16 = vld [vmem:[%s1679_s26 + $0x3c8] sm:$0xff] }
  0x2c   : > { %713 = vmatprep.subr.mxu0 %v1559_v1  ;;  %1522 = vmatprep.subr.mxu1 %v1559_v1 }
  0x2d   : > { %714 = vmatpush2.msra.mxu0 %v374_v17  ;;  %1540 = vmatpush2.msra.mxu1 %v374_v17  ;;  %v207_v17 = vld [vmem:[%s1679_s26 + $0xf0] sm:$0xff] }
  0x2e   : > { %715 = vmatprep.subr.mxu0 %v1559_v1  ;;  %1523 = vmatprep.subr.mxu1 %v1559_v1  ;;  %v199_v1 = vld [vmem:[%s1679_s26 + $0xb0] sm:$0xff] }
  0x2f   : > { %716 = vmatpush2.msra.mxu0 %v373_v18  ;;  %1541 = vmatpush2.msra.mxu1 %v373_v18  ;;  %v297_v18 = vld [vmem:[%s1679_s26 + $0x3c0] sm:$0xff] }
  0x30   : > { %1413 = vmatprep.mubr.msk.f32.mxu0 %vm382_vm0, %v178_v19  ;;  %1458 = vmatprep.mubr.msk.f32.mxu1 %vm382_vm0, %v268_v20  ;;  %v210_v19 = vld [vmem:[%s1679_s26 + $0x108] sm:$0xff]  ;;  %v300_v20 = vld [vmem:[%s1679_s26 + $0x3d8] sm:$0xff] }
  0x31   : > { %718 = vmatmul.mubr.f32.vlgmr.msra.gmra.mxu0 %v177_v21  ;;  %943 = vmatmul.mubr.f32.vlgmr.msra.gmra.mxu1 %v267_v22  ;;  %v209_v21 = vld [vmem:[%s1679_s26 + $0x100] sm:$0xff]  ;;  %v299_v22 = vld [vmem:[%s1679_s26 + $0x3d0] sm:$0xff] }
  0x32   : > { %1414 = vmatprep.mubr.msk.f32.mxu0 %vm382_vm0, %v180_v23  ;;  %1459 = vmatprep.mubr.msk.f32.mxu1 %vm382_vm0, %v270_v24  ;;  %v212_v23 = vld [vmem:[%s1679_s26 + $0x118] sm:$0xff]  ;;  %v302_v24 = vld [vmem:[%s1679_s26 + $0x3e8] sm:$0xff] }
  0x35   : > { %723 = vmatmul.mubr.f32.gmra.mxu0 %v179_v25  ;;  %948 = vmatmul.mubr.f32.gmra.mxu1 %v269_v26  ;;  %v211_v25 = vld [vmem:[%s1679_s26 + $0x110] sm:$0xff]  ;;  %v301_v26 = vld [vmem:[%s1679_s26 + $0x3e0] sm:$0xff] }
  0x36   : > { %1415 = vmatprep.mubr.msk.f32.mxu0 %vm382_vm0, %v182_v27  ;;  %1460 = vmatprep.mubr.msk.f32.mxu1 %vm382_vm0, %v272_v28  ;;  %v214_v27 = vld [vmem:[%s1679_s26 + $0x128] sm:$0xff]  ;;  %v304_v28 = vld [vmem:[%s1679_s26 + $0x3f8] sm:$0xff] }
  0x39   : > { %728 = vmatmul.mubr.f32.gmra.mxu0 %v181_v29  ;;  %953 = vmatmul.mubr.f32.gmra.mxu1 %v271_v30  ;;  %v213_v29 = vld [vmem:[%s1679_s26 + $0x120] sm:$0xff]  ;;  %v303_v30 = vld [vmem:[%s1679_s26 + $0x3f0] sm:$0xff] }
  0x3a   : > { %1416 = vmatprep.mubr.msk.f32.mxu0 %vm382_vm0, %v184_v31  ;;  %1461 = vmatprep.mubr.msk.f32.mxu1 %vm382_vm0, %v274_v32  ;;  %v216_v31 = vld [vmem:[%s1679_s26 + $0x138] sm:$0xff]  ;;  %v306_v32 = vld [vmem:[%s1679_s26 + $0x408] sm:$0xff] }
  0x3d   : > { %733 = vmatmul.mubr.f32.gmra.mxu0 %v183_v33  ;;  %958 = vmatmul.mubr.f32.gmra.mxu1 %v273_v34  ;;  %v215_v33 = vld [vmem:[%s1679_s26 + $0x130] sm:$0xff]  ;;  %v305_v34 = vld [vmem:[%s1679_s26 + $0x400] sm:$0xff] }
  0x3e   : > { %1417 = vmatprep.mubr.msk.f32.mxu0 %vm382_vm0, %v186_v35  ;;  %1462 = vmatprep.mubr.msk.f32.mxu1 %vm382_vm0, %v276_v36  ;;  %v218_v35 = vld [vmem:[%s1679_s26 + $0x148] sm:$0xff]  ;;  %v308_v36 = vld [vmem:[%s1679_s26 + $0x418] sm:$0xff] }
  0x41   : > { %738 = vmatmul.mubr.f32.gmra.mxu0 %v185_v37  ;;  %963 = vmatmul.mubr.f32.gmra.mxu1 %v275_v38  ;;  %v217_v37 = vld [vmem:[%s1679_s26 + $0x140] sm:$0xff]  ;;  %v307_v38 = vld [vmem:[%s1679_s26 + $0x410] sm:$0xff] }
  0x42   : > { %1418 = vmatprep.mubr.msk.f32.mxu0 %vm382_vm0, %v188_v39  ;;  %1463 = vmatprep.mubr.msk.f32.mxu1 %vm382_vm0, %v278_v40  ;;  %v220_v39 = vld [vmem:[%s1679_s26 + $0x158] sm:$0xff]  ;;  %v310_v40 = vld [vmem:[%s1679_s26 + $0x428] sm:$0xff] }
  0x45   : > { %743 = vmatmul.mubr.f32.gmra.mxu0 %v187_v41  ;;  %968 = vmatmul.mubr.f32.gmra.mxu1 %v277_v42  ;;  %v219_v41 = vld [vmem:[%s1679_s26 + $0x150] sm:$0xff]  ;;  %v309_v42 = vld [vmem:[%s1679_s26 + $0x420] sm:$0xff] }
  0x46   : > { %1419 = vmatprep.mubr.msk.f32.mxu0 %vm382_vm0, %v190_v43  ;;  %1464 = vmatprep.mubr.msk.f32.mxu1 %vm382_vm0, %v280_v44  ;;  %v222_v43 = vld [vmem:[%s1679_s26 + $0x168] sm:$0xff]  ;;  %v312_v44 = vld [vmem:[%s1679_s26 + $0x438] sm:$0xff] }
  0x49   : > { %748 = vmatmul.mubr.f32.gmra.mxu0 %v189_v45  ;;  %973 = vmatmul.mubr.f32.gmra.mxu1 %v279_v46  ;;  %v221_v45 = vld [vmem:[%s1679_s26 + $0x160] sm:$0xff]  ;;  %v311_v46 = vld [vmem:[%s1679_s26 + $0x430] sm:$0xff] }
  0x4a   : > { %1420 = vmatprep.mubr.msk.f32.mxu0 %vm382_vm0, %v192_v47  ;;  %1465 = vmatprep.mubr.msk.f32.mxu1 %vm382_vm0, %v282_v48  ;;  %v224_v47 = vld [vmem:[%s1679_s26 + $0x178] sm:$0xff]  ;;  %v314_v48 = vld [vmem:[%s1679_s26 + $0x448] sm:$0xff] }
  0x4d   : > { %753 = vmatmul.mubr.f32.gmra.mxu0 %v191_v49  ;;  %978 = vmatmul.mubr.f32.gmra.mxu1 %v281_v50  ;;  %v223_v49 = vld [vmem:[%s1679_s26 + $0x170] sm:$0xff]  ;;  %v313_v50 = vld [vmem:[%s1679_s26 + $0x440] sm:$0xff] }
  0x4e   : > { %1421 = vmatprep.mubr.msk.f32.mxu0 %vm382_vm0, %v194_v51  ;;  %1466 = vmatprep.mubr.msk.f32.mxu1 %vm382_vm0, %v284_v52  ;;  %v226_v51 = vld [vmem:[%s1679_s26 + $0x188] sm:$0xff]  ;;  %v316_v52 = vld [vmem:[%s1679_s26 + $0x458] sm:$0xff] }
  0x51   : > { %758 = vmatmul.mubr.f32.gmra.mxu0 %v193_v53  ;;  %983 = vmatmul.mubr.f32.gmra.mxu1 %v283_v54  ;;  %v225_v53 = vld [vmem:[%s1679_s26 + $0x180] sm:$0xff]  ;;  %v315_v54 = vld [vmem:[%s1679_s26 + $0x450] sm:$0xff] }
  0x52   : > { %1422 = vmatprep.mubr.msk.f32.mxu0 %vm382_vm0, %v196_v55  ;;  %1467 = vmatprep.mubr.msk.f32.mxu1 %vm382_vm0, %v286_v56  ;;  %v228_v55 = vld [vmem:[%s1679_s26 + $0x198] sm:$0xff]  ;;  %v318_v56 = vld [vmem:[%s1679_s26 + $0x468] sm:$0xff] }
  0x55   : > { %763 = vmatmul.mubr.f32.gmra.mxu0 %v195_v57  ;;  %988 = vmatmul.mubr.f32.gmra.mxu1 %v285_v58  ;;  %v227_v57 = vld [vmem:[%s1679_s26 + $0x190] sm:$0xff]  ;;  %v317_v58 = vld [vmem:[%s1679_s26 + $0x460] sm:$0xff] }
  0x56   : > { %1423 = vmatprep.mubr.msk.f32.mxu0 %vm382_vm0, %v198_v59  ;;  %1468 = vmatprep.mubr.msk.f32.mxu1 %vm382_vm0, %v288_v60  ;;  %v230_v59 = vld [vmem:[%s1679_s26 + $0x1a8] sm:$0xff]  ;;  %v320_v60 = vld [vmem:[%s1679_s26 + $0x478] sm:$0xff] }
  0x59   : > { %768 = vmatmul.mubr.f32.gmra.mxu0 %v197_v61  ;;  %993 = vmatmul.mubr.f32.gmra.mxu1 %v287_v62  ;;  %v229_v61 = vld [vmem:[%s1679_s26 + $0x1a0] sm:$0xff]  ;;  %v319_v62 = vld [vmem:[%s1679_s26 + $0x470] sm:$0xff] }
  0x5a   : > { %1424 = vmatprep.mubr.msk.f32.mxu0 %vm382_vm0, %v200_v63  ;;  %1469 = vmatprep.mubr.msk.f32.mxu1 %vm382_vm0, %v290_v0  ;;  %v232_v63 = vld [vmem:[%s1679_s26 + $0x1b8] sm:$0xff]  ;;  %v322_v0 = vld [vmem:[%s1679_s26 + $0x488] sm:$0xff] }
  0x5d   : > { %773 = vmatmul.mubr.f32.gmra.mxu0 %v199_v1  ;;  %998 = vmatmul.mubr.f32.gmra.mxu1 %v289_v2  ;;  %v231_v1 = vld [vmem:[%s1679_s26 + $0x1b0] sm:$0xff]  ;;  %v321_v2 = vld [vmem:[%s1679_s26 + $0x480] sm:$0xff] }
  0x5e   : > { %1425 = vmatprep.mubr.msk.f32.mxu0 %vm382_vm0, %v202_v3  ;;  %1470 = vmatprep.mubr.msk.f32.mxu1 %vm382_vm0, %v292_v4  ;;  %v234_v3 = vld [vmem:[%s1679_s26 + $0x1c8] sm:$0xff]  ;;  %v324_v4 = vld [vmem:[%s1679_s26 + $0x498] sm:$0xff] }
  0x61   : > { %778 = vmatmul.mubr.f32.gmra.mxu0 %v201_v5  ;;  %1003 = vmatmul.mubr.f32.gmra.mxu1 %v291_v6  ;;  %v233_v5 = vld [vmem:[%s1679_s26 + $0x1c0] sm:$0xff]  ;;  %v323_v6 = vld [vmem:[%s1679_s26 + $0x490] sm:$0xff] }
  0x62   : > { %1426 = vmatprep.mubr.msk.f32.mxu0 %vm382_vm0, %v204_v7  ;;  %1471 = vmatprep.mubr.msk.f32.mxu1 %vm382_vm0, %v294_v8  ;;  %v236_v7 = vld [vmem:[%s1679_s26 + $0x1d8] sm:$0xff]  ;;  %v326_v8 = vld [vmem:[%s1679_s26 + $0x4a8] sm:$0xff] }
  0x65   : > { %783 = vmatmul.mubr.f32.gmra.mxu0 %v203_v9  ;;  %1008 = vmatmul.mubr.f32.gmra.mxu1 %v293_v10  ;;  %v235_v9 = vld [vmem:[%s1679_s26 + $0x1d0] sm:$0xff]  ;;  %v325_v10 = vld [vmem:[%s1679_s26 + $0x4a0] sm:$0xff] }
  0x66   : > { %1427 = vmatprep.mubr.msk.f32.mxu0 %vm382_vm0, %v206_v11  ;;  %1472 = vmatprep.mubr.msk.f32.mxu1 %vm382_vm0, %v296_v12  ;;  %v238_v11 = vld [vmem:[%s1679_s26 + $0x1e8] sm:$0xff]  ;;  %v328_v12 = vld [vmem:[%s1679_s26 + $0x4b8] sm:$0xff] }
  0x69   : > { %788 = vmatmul.mubr.f32.gmra.mxu0 %v205_v13  ;;  %1013 = vmatmul.mubr.f32.gmra.mxu1 %v295_v14  ;;  %v237_v13 = vld [vmem:[%s1679_s26 + $0x1e0] sm:$0xff]  ;;  %v327_v14 = vld [vmem:[%s1679_s26 + $0x4b0] sm:$0xff] }
  0x6a   : > { %1428 = vmatprep.mubr.msk.f32.mxu0 %vm382_vm0, %v208_v15  ;;  %1473 = vmatprep.mubr.msk.f32.mxu1 %vm382_vm0, %v298_v16  ;;  %v240_v15 = vld [vmem:[%s1679_s26 + $0x1f8] sm:$0xff]  ;;  %v330_v16 = vld [vmem:[%s1679_s26 + $0x4c8] sm:$0xff] }
  0x6d   : > { %793 = vmatmul.mubr.f32.gmra.mxu0 %v207_v17  ;;  %1018 = vmatmul.mubr.f32.gmra.mxu1 %v297_v18  ;;  %v239_v17 = vld [vmem:[%s1679_s26 + $0x1f0] sm:$0xff]  ;;  %v329_v18 = vld [vmem:[%s1679_s26 + $0x4c0] sm:$0xff] }
  0x6e   : > { %1429 = vmatprep.mubr.msk.f32.mxu0 %vm382_vm0, %v210_v19  ;;  %1474 = vmatprep.mubr.msk.f32.mxu1 %vm382_vm0, %v300_v20  ;;  %v242_v19 = vld [vmem:[%s1679_s26 + $0x208] sm:$0xff]  ;;  %v332_v20 = vld [vmem:[%s1679_s26 + $0x4d8] sm:$0xff] }
  0x71   : > { %798 = vmatmul.mubr.f32.gmra.mxu0 %v209_v21  ;;  %1023 = vmatmul.mubr.f32.gmra.mxu1 %v299_v22  ;;  %v241_v21 = vld [vmem:[%s1679_s26 + $0x200] sm:$0xff]  ;;  %v331_v22 = vld [vmem:[%s1679_s26 + $0x4d0] sm:$0xff] }
  0x72   : > { %1430 = vmatprep.mubr.msk.f32.mxu0 %vm382_vm0, %v212_v23  ;;  %1475 = vmatprep.mubr.msk.f32.mxu1 %vm382_vm0, %v302_v24  ;;  %v244_v23 = vld [vmem:[%s1679_s26 + $0x218] sm:$0xff]  ;;  %v334_v24 = vld [vmem:[%s1679_s26 + $0x4e8] sm:$0xff] }
  0x75   : > { %803 = vmatmul.mubr.f32.gmra.mxu0 %v211_v25  ;;  %1028 = vmatmul.mubr.f32.gmra.mxu1 %v301_v26  ;;  %v243_v25 = vld [vmem:[%s1679_s26 + $0x210] sm:$0xff]  ;;  %v333_v26 = vld [vmem:[%s1679_s26 + $0x4e0] sm:$0xff] }
  0x76   : > { %1431 = vmatprep.mubr.msk.f32.mxu0 %vm382_vm0, %v214_v27  ;;  %1476 = vmatprep.mubr.msk.f32.mxu1 %vm382_vm0, %v304_v28  ;;  %v246_v27 = vld [vmem:[%s1679_s26 + $0x228] sm:$0xff]  ;;  %v336_v28 = vld [vmem:[%s1679_s26 + $0x4f8] sm:$0xff] }
  0x79   : > { %808 = vmatmul.mubr.f32.gmra.mxu0 %v213_v29  ;;  %1033 = vmatmul.mubr.f32.gmra.mxu1 %v303_v30  ;;  %v245_v29 = vld [vmem:[%s1679_s26 + $0x220] sm:$0xff]  ;;  %v335_v30 = vld [vmem:[%s1679_s26 + $0x4f0] sm:$0xff] }
  0x7a   : > { %1432 = vmatprep.mubr.msk.f32.mxu0 %vm382_vm0, %v216_v31  ;;  %1477 = vmatprep.mubr.msk.f32.mxu1 %vm382_vm0, %v306_v32  ;;  %v248_v31 = vld [vmem:[%s1679_s26 + $0x238] sm:$0xff]  ;;  %v338_v32 = vld [vmem:[%s1679_s26 + $0x508] sm:$0xff] }
  0x7d   : > { %813 = vmatmul.mubr.f32.gmra.mxu0 %v215_v33  ;;  %1038 = vmatmul.mubr.f32.gmra.mxu1 %v305_v34  ;;  %v247_v33 = vld [vmem:[%s1679_s26 + $0x230] sm:$0xff]  ;;  %v337_v34 = vld [vmem:[%s1679_s26 + $0x500] sm:$0xff] }
  0x7e   : > { %1433 = vmatprep.mubr.msk.f32.mxu0 %vm382_vm0, %v218_v35  ;;  %1478 = vmatprep.mubr.msk.f32.mxu1 %vm382_vm0, %v308_v36  ;;  %v250_v35 = vld [vmem:[%s1679_s26 + $0x248] sm:$0xff]  ;;  %v340_v36 = vld [vmem:[%s1679_s26 + $0x518] sm:$0xff] }
  0x81   : > { %818 = vmatmul.mubr.f32.gmra.mxu0 %v217_v37  ;;  %1043 = vmatmul.mubr.f32.gmra.mxu1 %v307_v38  ;;  %v249_v37 = vld [vmem:[%s1679_s26 + $0x240] sm:$0xff]  ;;  %v339_v38 = vld [vmem:[%s1679_s26 + $0x510] sm:$0xff] }
  0x82   : > { %1434 = vmatprep.mubr.msk.f32.mxu0 %vm382_vm0, %v220_v39  ;;  %1479 = vmatprep.mubr.msk.f32.mxu1 %vm382_vm0, %v310_v40  ;;  %v252_v39 = vld [vmem:[%s1679_s26 + $0x258] sm:$0xff]  ;;  %v342_v40 = vld [vmem:[%s1679_s26 + $0x528] sm:$0xff] }
  0x85   : > { %823 = vmatmul.mubr.f32.gmra.mxu0 %v219_v41  ;;  %1048 = vmatmul.mubr.f32.gmra.mxu1 %v309_v42  ;;  %v251_v41 = vld [vmem:[%s1679_s26 + $0x250] sm:$0xff]  ;;  %v341_v42 = vld [vmem:[%s1679_s26 + $0x520] sm:$0xff] }
  0x86   : > { %1435 = vmatprep.mubr.msk.f32.mxu0 %vm382_vm0, %v222_v43  ;;  %1480 = vmatprep.mubr.msk.f32.mxu1 %vm382_vm0, %v312_v44  ;;  %v254_v43 = vld [vmem:[%s1679_s26 + $0x268] sm:$0xff]  ;;  %v344_v44 = vld [vmem:[%s1679_s26 + $0x538] sm:$0xff] }
  0x89   : > { %828 = vmatmul.mubr.f32.gmra.mxu0 %v221_v45  ;;  %1053 = vmatmul.mubr.f32.gmra.mxu1 %v311_v46  ;;  %v253_v45 = vld [vmem:[%s1679_s26 + $0x260] sm:$0xff]  ;;  %v343_v46 = vld [vmem:[%s1679_s26 + $0x530] sm:$0xff] }
  0x8a   : > { %1436 = vmatprep.mubr.msk.f32.mxu0 %vm382_vm0, %v224_v47  ;;  %1481 = vmatprep.mubr.msk.f32.mxu1 %vm382_vm0, %v314_v48  ;;  %v256_v47 = vld [vmem:[%s1679_s26 + $0x278] sm:$0xff]  ;;  %v346_v48 = vld [vmem:[%s1679_s26 + $0x548] sm:$0xff] }
  0x8d   : > { %833 = vmatmul.mubr.f32.gmra.mxu0 %v223_v49  ;;  %1058 = vmatmul.mubr.f32.gmra.mxu1 %v313_v50  ;;  %v255_v49 = vld [vmem:[%s1679_s26 + $0x270] sm:$0xff]  ;;  %v345_v50 = vld [vmem:[%s1679_s26 + $0x540] sm:$0xff] }
  0x8e   : > { %1437 = vmatprep.mubr.msk.f32.mxu0 %vm382_vm0, %v226_v51  ;;  %1482 = vmatprep.mubr.msk.f32.mxu1 %vm382_vm0, %v316_v52  ;;  %v258_v51 = vld [vmem:[%s1679_s26 + $0x288] sm:$0xff]  ;;  %v348_v52 = vld [vmem:[%s1679_s26 + $0x558] sm:$0xff] }
  0x91   : > { %838 = vmatmul.mubr.f32.gmra.mxu0 %v225_v53  ;;  %1063 = vmatmul.mubr.f32.gmra.mxu1 %v315_v54  ;;  %v257_v53 = vld [vmem:[%s1679_s26 + $0x280] sm:$0xff]  ;;  %v347_v54 = vld [vmem:[%s1679_s26 + $0x550] sm:$0xff] }
  0x92   : > { %1438 = vmatprep.mubr.msk.f32.mxu0 %vm382_vm0, %v228_v55  ;;  %1483 = vmatprep.mubr.msk.f32.mxu1 %vm382_vm0, %v318_v56  ;;  %v260_v55 = vld [vmem:[%s1679_s26 + $0x298] sm:$0xff]  ;;  %v350_v56 = vld [vmem:[%s1679_s26 + $0x568] sm:$0xff] }
  0x95   : > { %843 = vmatmul.mubr.f32.gmra.mxu0 %v227_v57  ;;  %1068 = vmatmul.mubr.f32.gmra.mxu1 %v317_v58  ;;  %v259_v57 = vld [vmem:[%s1679_s26 + $0x290] sm:$0xff]  ;;  %v349_v58 = vld [vmem:[%s1679_s26 + $0x560] sm:$0xff] }
  0x96   : > { %1439 = vmatprep.mubr.msk.f32.mxu0 %vm382_vm0, %v230_v59  ;;  %1484 = vmatprep.mubr.msk.f32.mxu1 %vm382_vm0, %v320_v60  ;;  %v262_v59 = vld [vmem:[%s1679_s26 + $0x2a8] sm:$0xff]  ;;  %v352_v60 = vld [vmem:[%s1679_s26 + $0x578] sm:$0xff] }
  0x99   : > { %848 = vmatmul.mubr.f32.gmra.mxu0 %v229_v61  ;;  %1073 = vmatmul.mubr.f32.gmra.mxu1 %v319_v62  ;;  %v261_v61 = vld [vmem:[%s1679_s26 + $0x2a0] sm:$0xff]  ;;  %v351_v62 = vld [vmem:[%s1679_s26 + $0x570] sm:$0xff] }
  0x9a   : > { %1440 = vmatprep.mubr.msk.f32.mxu0 %vm382_vm0, %v232_v63  ;;  %1485 = vmatprep.mubr.msk.f32.mxu1 %vm382_vm0, %v322_v0  ;;  %v264_v63 = vld [vmem:[%s1679_s26 + $0x2b8] sm:$0xff]  ;;  %v354_v0 = vld [vmem:[%s1679_s26 + $0x588] sm:$0xff] }
  0x9d   : > { %853 = vmatmul.mubr.f32.gmra.mxu0 %v231_v1  ;;  %1078 = vmatmul.mubr.f32.gmra.mxu1 %v321_v2  ;;  %v263_v1 = vld [vmem:[%s1679_s26 + $0x2b0] sm:$0xff]  ;;  %v353_v2 = vld [vmem:[%s1679_s26 + $0x580] sm:$0xff] }
  0x9e   : > { %1441 = vmatprep.mubr.msk.f32.mxu0 %vm382_vm0, %v234_v3  ;;  %1486 = vmatprep.mubr.msk.f32.mxu1 %vm382_vm0, %v324_v4  ;;  %v266_v3 = vld [vmem:[%s1679_s26 + $0x2c8] sm:$0xff]  ;;  %v356_v4 = vld [vmem:[%s1679_s26 + $0x598] sm:$0xff] }
  0xa1   : > { %858 = vmatmul.mubr.f32.gmra.mxu0 %v233_v5  ;;  %1083 = vmatmul.mubr.f32.gmra.mxu1 %v323_v6  ;;  %v265_v5 = vld [vmem:[%s1679_s26 + $0x2c0] sm:$0xff]  ;;  %v355_v6 = vld [vmem:[%s1679_s26 + $0x590] sm:$0xff] }
  0xa2   : > { %1442 = vmatprep.mubr.msk.f32.mxu0 %vm382_vm0, %v236_v7  ;;  %1487 = vmatprep.mubr.msk.f32.mxu1 %vm382_vm0, %v326_v8  ;;  %v1961_v7 = vld [vmem:[%s2154_s2] ss:$0 sm:$0xff] }
  0xa5   : > { %863 = vmatmul.mubr.f32.gmra.mxu0 %v235_v9  ;;  %1088 = vmatmul.mubr.f32.gmra.mxu1 %v325_v10 }
  0xa6   : > { %1443 = vmatprep.mubr.msk.f32.mxu0 %vm382_vm0, %v238_v11  ;;  %1488 = vmatprep.mubr.msk.f32.mxu1 %vm382_vm0, %v328_v12 }
  0xa9   : > { %868 = vmatmul.mubr.f32.gmra.mxu0 %v237_v13  ;;  %1093 = vmatmul.mubr.f32.gmra.mxu1 %v327_v14 }
  0xaa   : > { %1444 = vmatprep.mubr.msk.f32.mxu0 %vm382_vm0, %v240_v15  ;;  %1489 = vmatprep.mubr.msk.f32.mxu1 %vm382_vm0, %v330_v16 }
  0xad   : > { %873 = vmatmul.mubr.f32.gmra.mxu0 %v239_v17  ;;  %1098 = vmatmul.mubr.f32.gmra.mxu1 %v329_v18 }
  0xae   : > { %1445 = vmatprep.mubr.msk.f32.mxu0 %vm382_vm0, %v242_v19  ;;  %1490 = vmatprep.mubr.msk.f32.mxu1 %vm382_vm0, %v332_v20 }
  0xb1   : > { %878 = vmatmul.mubr.f32.gmra.mxu0 %v241_v21  ;;  %1103 = vmatmul.mubr.f32.gmra.mxu1 %v331_v22 }
  0xb2   : > { %1446 = vmatprep.mubr.msk.f32.mxu0 %vm382_vm0, %v244_v23  ;;  %1491 = vmatprep.mubr.msk.f32.mxu1 %vm382_vm0, %v334_v24 }
  0xb5   : > { %883 = vmatmul.mubr.f32.gmra.mxu0 %v243_v25  ;;  %1108 = vmatmul.mubr.f32.gmra.mxu1 %v333_v26 }
  0xb6   : > { %1447 = vmatprep.mubr.msk.f32.mxu0 %vm382_vm0, %v246_v27  ;;  %1492 = vmatprep.mubr.msk.f32.mxu1 %vm382_vm0, %v336_v28 }
  0xb9   : > { %888 = vmatmul.mubr.f32.gmra.mxu0 %v245_v29  ;;  %1113 = vmatmul.mubr.f32.gmra.mxu1 %v335_v30 }
  0xba   : > { %1448 = vmatprep.mubr.msk.f32.mxu0 %vm382_vm0, %v248_v31  ;;  %1493 = vmatprep.mubr.msk.f32.mxu1 %vm382_vm0, %v338_v32 }
  0xbd   : > { %893 = vmatmul.mubr.f32.gmra.mxu0 %v247_v33  ;;  %1118 = vmatmul.mubr.f32.gmra.mxu1 %v337_v34 }
  0xbe   : > { %1449 = vmatprep.mubr.msk.f32.mxu0 %vm382_vm0, %v250_v35  ;;  %1494 = vmatprep.mubr.msk.f32.mxu1 %vm382_vm0, %v340_v36 }
  0xc1   : > { %898 = vmatmul.mubr.f32.gmra.mxu0 %v249_v37  ;;  %1123 = vmatmul.mubr.f32.gmra.mxu1 %v339_v38 }
  0xc2   : > { %1450 = vmatprep.mubr.msk.f32.mxu0 %vm382_vm0, %v252_v39  ;;  %1495 = vmatprep.mubr.msk.f32.mxu1 %vm382_vm0, %v342_v40 }
  0xc5   : > { %903 = vmatmul.mubr.f32.gmra.mxu0 %v251_v41  ;;  %1128 = vmatmul.mubr.f32.gmra.mxu1 %v341_v42 }
  0xc6   : > { %1451 = vmatprep.mubr.msk.f32.mxu0 %vm382_vm0, %v254_v43  ;;  %1496 = vmatprep.mubr.msk.f32.mxu1 %vm382_vm0, %v344_v44 }
  0xc9   : > { %908 = vmatmul.mubr.f32.gmra.mxu0 %v253_v45  ;;  %1133 = vmatmul.mubr.f32.gmra.mxu1 %v343_v46 }
  0xca   : > { %1452 = vmatprep.mubr.msk.f32.mxu0 %vm382_vm0, %v256_v47  ;;  %1497 = vmatprep.mubr.msk.f32.mxu1 %vm382_vm0, %v346_v48 }
  0xcd   : > { %913 = vmatmul.mubr.f32.gmra.mxu0 %v255_v49  ;;  %1138 = vmatmul.mubr.f32.gmra.mxu1 %v345_v50 }
  0xce   : > { %1453 = vmatprep.mubr.msk.f32.mxu0 %vm382_vm0, %v258_v51  ;;  %1498 = vmatprep.mubr.msk.f32.mxu1 %vm382_vm0, %v348_v52 }
  0xd1   : > { %918 = vmatmul.mubr.f32.gmra.mxu0 %v257_v53  ;;  %1143 = vmatmul.mubr.f32.gmra.mxu1 %v347_v54 }
  0xd2   : > { %1454 = vmatprep.mubr.msk.f32.mxu0 %vm382_vm0, %v260_v55  ;;  %1499 = vmatprep.mubr.msk.f32.mxu1 %vm382_vm0, %v350_v56 }
  0xd5   : > { %923 = vmatmul.mubr.f32.gmra.mxu0 %v259_v57  ;;  %1148 = vmatmul.mubr.f32.gmra.mxu1 %v349_v58 }
  0xd6   : > { %1455 = vmatprep.mubr.msk.f32.mxu0 %vm382_vm0, %v262_v59  ;;  %1500 = vmatprep.mubr.msk.f32.mxu1 %vm382_vm0, %v352_v60 }
  0xd9   : > { %928 = vmatmul.mubr.f32.gmra.mxu0 %v261_v61  ;;  %1153 = vmatmul.mubr.f32.gmra.mxu1 %v351_v62 }
  0xda   : > { %1456 = vmatprep.mubr.msk.f32.mxu0 %vm382_vm0, %v264_v63  ;;  %1501 = vmatprep.mubr.msk.f32.mxu1 %vm382_vm0, %v354_v0 }
  0xdd   : > { %933 = vmatmul.mubr.f32.gmra.mxu0 %v263_v1  ;;  %1158 = vmatmul.mubr.f32.gmra.mxu1 %v353_v2 }
  0xde   : > { %1457 = vmatprep.mubr.msk.f32.mxu0 %vm382_vm0, %v266_v3  ;;  %1502 = vmatprep.mubr.msk.f32.mxu1 %vm382_vm0, %v356_v4 }
  0xe1   : > { %938 = vmatmul.mubr.f32.gmra.mxu0 %v265_v5  ;;  %1163 = vmatmul.mubr.f32.gmra.mxu1 %v355_v6 }
  0xf1   : > { %v719_v8 = vpop.f32.mrf.mxu0  ;;  %v944_v9 = vpop.f32.mrf.mxu1 }
  0xf2   : > { %v720_v10 = vadd.f32 %v1961_v7, %v719_v8  ;;  %v945_v11 = vadd.f32 %v1961_v7, %v944_v9 }
  0xf3   : > { %v721_v12 = vpop.f32.mrf.mxu0  ;;  %v946_v13 = vpop.f32.mrf.mxu1 }
  0xf4   : > { %v1168_v14 = vmax.f32 %v720_v10, 0.0  ;;  %v1213_v15 = vmax.f32 %v945_v11, 0.0 }
  0xf5   : > { %v724_v16 = vpop.f32.mrf.mxu0  ;;  %v949_v17 = vpop.f32.mrf.mxu1 }
  0xf6   : > { %1258 = vst [vmem:[%s1969_s8] sm:$0xff] %v1168_v14  ;;  %1303 = vst [vmem:[%s1969_s8 + $0x168] sm:$0xff] %v1213_v15  ;;  %v725_v18 = vadd.f32 %v1961_v7, %v724_v16  ;;  %v950_v19 = vadd.f32 %v1961_v7, %v949_v17 }
  0xf7   : > { %v726_v20 = vpop.f32.mrf.mxu0  ;;  %v951_v21 = vpop.f32.mrf.mxu1 }
  0xf8   : > { %v1169_v22 = vmax.f32 %v725_v18, 0.0  ;;  %v1214_v23 = vmax.f32 %v950_v19, 0.0 }
  0xf9   : > { %v729_v24 = vpop.f32.mrf.mxu0  ;;  %v954_v25 = vpop.f32.mrf.mxu1 }
  0xfa   : > { %1259 = vst [vmem:[%s1969_s8 + $0x8] sm:$0xff] %v1169_v22  ;;  %1304 = vst [vmem:[%s1969_s8 + $0x170] sm:$0xff] %v1214_v23  ;;  %v730_v26 = vadd.f32 %v1961_v7, %v729_v24  ;;  %v955_v27 = vadd.f32 %v1961_v7, %v954_v25 }
  0xfb   : > { %v731_v28 = vpop.f32.mrf.mxu0  ;;  %v956_v29 = vpop.f32.mrf.mxu1 }
  0xfc   : > { %v1170_v30 = vmax.f32 %v730_v26, 0.0  ;;  %v1215_v31 = vmax.f32 %v955_v27, 0.0 }
  0xfd   : > { %v734_v32 = vpop.f32.mrf.mxu0  ;;  %v959_v33 = vpop.f32.mrf.mxu1 }
  0xfe   : > { %1260 = vst [vmem:[%s1969_s8 + $0x10] sm:$0xff] %v1170_v30  ;;  %1305 = vst [vmem:[%s1969_s8 + $0x178] sm:$0xff] %v1215_v31  ;;  %v735_v34 = vadd.f32 %v1961_v7, %v734_v32  ;;  %v960_v35 = vadd.f32 %v1961_v7, %v959_v33 }
  0xff   : > { %v736_v36 = vpop.f32.mrf.mxu0  ;;  %v961_v37 = vpop.f32.mrf.mxu1 }
 0x100   : > { %v1171_v38 = vmax.f32 %v735_v34, 0.0  ;;  %v1216_v39 = vmax.f32 %v960_v35, 0.0 }
 0x101   : > { %v739_v40 = vpop.f32.mrf.mxu0  ;;  %v964_v41 = vpop.f32.mrf.mxu1 }
 0x102   : > { %1261 = vst [vmem:[%s1969_s8 + $0x18] sm:$0xff] %v1171_v38  ;;  %1306 = vst [vmem:[%s1969_s8 + $0x180] sm:$0xff] %v1216_v39  ;;  %v740_v42 = vadd.f32 %v1961_v7, %v739_v40  ;;  %v965_v43 = vadd.f32 %v1961_v7, %v964_v41 }
 0x103   : > { %v741_v44 = vpop.f32.mrf.mxu0  ;;  %v966_v45 = vpop.f32.mrf.mxu1 }
 0x104   : > { %v1172_v46 = vmax.f32 %v740_v42, 0.0  ;;  %v1217_v47 = vmax.f32 %v965_v43, 0.0 }
 0x105   : > { %v744_v48 = vpop.f32.mrf.mxu0  ;;  %v969_v49 = vpop.f32.mrf.mxu1 }
 0x106   : > { %1262 = vst [vmem:[%s1969_s8 + $0x20] sm:$0xff] %v1172_v46  ;;  %1307 = vst [vmem:[%s1969_s8 + $0x188] sm:$0xff] %v1217_v47  ;;  %v745_v50 = vadd.f32 %v1961_v7, %v744_v48  ;;  %v970_v51 = vadd.f32 %v1961_v7, %v969_v49 }
 0x107   : > { %v746_v52 = vpop.f32.mrf.mxu0  ;;  %v971_v53 = vpop.f32.mrf.mxu1 }
 0x108   : > { %v1173_v54 = vmax.f32 %v745_v50, 0.0  ;;  %v1218_v55 = vmax.f32 %v970_v51, 0.0 }
 0x109   : > { %v749_v56 = vpop.f32.mrf.mxu0  ;;  %v974_v57 = vpop.f32.mrf.mxu1 }
 0x10a   : > { %1263 = vst [vmem:[%s1969_s8 + $0x28] sm:$0xff] %v1173_v54  ;;  %1308 = vst [vmem:[%s1969_s8 + $0x190] sm:$0xff] %v1218_v55  ;;  %v750_v58 = vadd.f32 %v1961_v7, %v749_v56  ;;  %v975_v59 = vadd.f32 %v1961_v7, %v974_v57 }
 0x10b   : > { %v751_v60 = vpop.f32.mrf.mxu0  ;;  %v976_v61 = vpop.f32.mrf.mxu1 }
 0x10c   : > { %v1174_v62 = vmax.f32 %v750_v58, 0.0  ;;  %v1219_v63 = vmax.f32 %v975_v59, 0.0 }
 0x10d   : > { %v754_v0 = vpop.f32.mrf.mxu0  ;;  %v979_v1 = vpop.f32.mrf.mxu1 }
 0x10e   : > { %1264 = vst [vmem:[%s1969_s8 + $0x30] sm:$0xff] %v1174_v62  ;;  %1309 = vst [vmem:[%s1969_s8 + $0x198] sm:$0xff] %v1219_v63  ;;  %v755_v2 = vadd.f32 %v1961_v7, %v754_v0  ;;  %v980_v3 = vadd.f32 %v1961_v7, %v979_v1 }
 0x10f   : > { %v756_v4 = vpop.f32.mrf.mxu0  ;;  %v981_v5 = vpop.f32.mrf.mxu1 }
 0x110   : > { %v1175_v6 = vmax.f32 %v755_v2, 0.0  ;;  %v1220_v8 = vmax.f32 %v980_v3, 0.0 }
 0x111   : > { %v759_v9 = vpop.f32.mrf.mxu0  ;;  %v984_v10 = vpop.f32.mrf.mxu1 }
 0x112   : > { %1265 = vst [vmem:[%s1969_s8 + $0x38] sm:$0xff] %v1175_v6  ;;  %1310 = vst [vmem:[%s1969_s8 + $0x1a0] sm:$0xff] %v1220_v8  ;;  %v760_v11 = vadd.f32 %v1961_v7, %v759_v9  ;;  %v985_v12 = vadd.f32 %v1961_v7, %v984_v10 }
 0x113   : > { %v761_v13 = vpop.f32.mrf.mxu0  ;;  %v986_v14 = vpop.f32.mrf.mxu1 }
 0x114   : > { %v1176_v15 = vmax.f32 %v760_v11, 0.0  ;;  %v1221_v16 = vmax.f32 %v985_v12, 0.0 }
 0x115   : > { %v764_v17 = vpop.f32.mrf.mxu0  ;;  %v989_v18 = vpop.f32.mrf.mxu1 }
 0x116   : > { %1266 = vst [vmem:[%s1969_s8 + $0x40] sm:$0xff] %v1176_v15  ;;  %1311 = vst [vmem:[%s1969_s8 + $0x1a8] sm:$0xff] %v1221_v16  ;;  %v765_v19 = vadd.f32 %v1961_v7, %v764_v17  ;;  %v990_v20 = vadd.f32 %v1961_v7, %v989_v18 }
 0x117   : > { %v766_v21 = vpop.f32.mrf.mxu0  ;;  %v991_v22 = vpop.f32.mrf.mxu1 }
 0x118   : > { %v1177_v23 = vmax.f32 %v765_v19, 0.0  ;;  %v1222_v24 = vmax.f32 %v990_v20, 0.0 }
 0x119   : > { %v769_v25 = vpop.f32.mrf.mxu0  ;;  %v994_v26 = vpop.f32.mrf.mxu1 }
 0x11a   : > { %1267 = vst [vmem:[%s1969_s8 + $0x48] sm:$0xff] %v1177_v23  ;;  %1312 = vst [vmem:[%s1969_s8 + $0x1b0] sm:$0xff] %v1222_v24  ;;  %v770_v27 = vadd.f32 %v1961_v7, %v769_v25  ;;  %v995_v28 = vadd.f32 %v1961_v7, %v994_v26 }
 0x11b   : > { %v771_v29 = vpop.f32.mrf.mxu0  ;;  %v996_v30 = vpop.f32.mrf.mxu1 }
 0x11c   : > { %v1178_v31 = vmax.f32 %v770_v27, 0.0  ;;  %v1223_v32 = vmax.f32 %v995_v28, 0.0 }
 0x11d   : > { %v774_v33 = vpop.f32.mrf.mxu0  ;;  %v999_v34 = vpop.f32.mrf.mxu1 }
 0x11e   : > { %1268 = vst [vmem:[%s1969_s8 + $0x50] sm:$0xff] %v1178_v31  ;;  %1313 = vst [vmem:[%s1969_s8 + $0x1b8] sm:$0xff] %v1223_v32  ;;  %v775_v35 = vadd.f32 %v1961_v7, %v774_v33  ;;  %v1000_v36 = vadd.f32 %v1961_v7, %v999_v34 }
 0x11f   : > { %v776_v37 = vpop.f32.mrf.mxu0  ;;  %v1001_v38 = vpop.f32.mrf.mxu1 }
 0x120   : > { %v1179_v39 = vmax.f32 %v775_v35, 0.0  ;;  %v1224_v40 = vmax.f32 %v1000_v36, 0.0 }
 0x121   : > { %v779_v41 = vpop.f32.mrf.mxu0  ;;  %v1004_v42 = vpop.f32.mrf.mxu1 }
 0x122   : > { %1269 = vst [vmem:[%s1969_s8 + $0x58] sm:$0xff] %v1179_v39  ;;  %1314 = vst [vmem:[%s1969_s8 + $0x1c0] sm:$0xff] %v1224_v40  ;;  %v780_v43 = vadd.f32 %v1961_v7, %v779_v41  ;;  %v1005_v44 = vadd.f32 %v1961_v7, %v1004_v42 }
 0x123   : > { %v781_v45 = vpop.f32.mrf.mxu0  ;;  %v1006_v46 = vpop.f32.mrf.mxu1 }
 0x124   : > { %v1180_v47 = vmax.f32 %v780_v43, 0.0  ;;  %v1225_v48 = vmax.f32 %v1005_v44, 0.0 }
 0x125   : > { %v784_v49 = vpop.f32.mrf.mxu0  ;;  %v1009_v50 = vpop.f32.mrf.mxu1 }
 0x126   : > { %1270 = vst [vmem:[%s1969_s8 + $0x60] sm:$0xff] %v1180_v47  ;;  %1315 = vst [vmem:[%s1969_s8 + $0x1c8] sm:$0xff] %v1225_v48  ;;  %v785_v51 = vadd.f32 %v1961_v7, %v784_v49  ;;  %v1010_v52 = vadd.f32 %v1961_v7, %v1009_v50 }
 0x127   : > { %v786_v53 = vpop.f32.mrf.mxu0  ;;  %v1011_v54 = vpop.f32.mrf.mxu1 }
 0x128   : > { %v1181_v55 = vmax.f32 %v785_v51, 0.0  ;;  %v1226_v56 = vmax.f32 %v1010_v52, 0.0 }
 0x129   : > { %v789_v57 = vpop.f32.mrf.mxu0  ;;  %v1014_v58 = vpop.f32.mrf.mxu1 }
 0x12a   : > { %1271 = vst [vmem:[%s1969_s8 + $0x68] sm:$0xff] %v1181_v55  ;;  %1316 = vst [vmem:[%s1969_s8 + $0x1d0] sm:$0xff] %v1226_v56  ;;  %v790_v59 = vadd.f32 %v1961_v7, %v789_v57  ;;  %v1015_v60 = vadd.f32 %v1961_v7, %v1014_v58 }
 0x12b   : > { %v791_v61 = vpop.f32.mrf.mxu0  ;;  %v1016_v62 = vpop.f32.mrf.mxu1 }
 0x12c   : > { %v1182_v63 = vmax.f32 %v790_v59, 0.0  ;;  %v1227_v0 = vmax.f32 %v1015_v60, 0.0 }
 0x12d   : > { %v794_v1 = vpop.f32.mrf.mxu0  ;;  %v1019_v2 = vpop.f32.mrf.mxu1 }
 0x12e   : > { %1272 = vst [vmem:[%s1969_s8 + $0x70] sm:$0xff] %v1182_v63  ;;  %1317 = vst [vmem:[%s1969_s8 + $0x1d8] sm:$0xff] %v1227_v0  ;;  %v795_v3 = vadd.f32 %v1961_v7, %v794_v1  ;;  %v1020_v4 = vadd.f32 %v1961_v7, %v1019_v2 }
 0x12f   : > { %v796_v5 = vpop.f32.mrf.mxu0  ;;  %v1021_v6 = vpop.f32.mrf.mxu1 }
 0x130   : > { %v1183_v8 = vmax.f32 %v795_v3, 0.0  ;;  %v1228_v9 = vmax.f32 %v1020_v4, 0.0 }
 0x131   : > { %v799_v10 = vpop.f32.mrf.mxu0  ;;  %v1024_v11 = vpop.f32.mrf.mxu1 }
 0x132   : > { %1273 = vst [vmem:[%s1969_s8 + $0x78] sm:$0xff] %v1183_v8  ;;  %1318 = vst [vmem:[%s1969_s8 + $0x1e0] sm:$0xff] %v1228_v9  ;;  %v800_v12 = vadd.f32 %v1961_v7, %v799_v10  ;;  %v1025_v13 = vadd.f32 %v1961_v7, %v1024_v11 }
 0x133   : > { %v801_v14 = vpop.f32.mrf.mxu0  ;;  %v1026_v15 = vpop.f32.mrf.mxu1 }
 0x134   : > { %v1184_v16 = vmax.f32 %v800_v12, 0.0  ;;  %v1229_v17 = vmax.f32 %v1025_v13, 0.0 }
 0x135   : > { %v804_v18 = vpop.f32.mrf.mxu0  ;;  %v1029_v19 = vpop.f32.mrf.mxu1 }
 0x136   : > { %1274 = vst [vmem:[%s1969_s8 + $0x80] sm:$0xff] %v1184_v16  ;;  %1319 = vst [vmem:[%s1969_s8 + $0x1e8] sm:$0xff] %v1229_v17  ;;  %v805_v20 = vadd.f32 %v1961_v7, %v804_v18  ;;  %v1030_v21 = vadd.f32 %v1961_v7, %v1029_v19 }
 0x137   : > { %v806_v22 = vpop.f32.mrf.mxu0  ;;  %v1031_v23 = vpop.f32.mrf.mxu1 }
 0x138   : > { %v1185_v24 = vmax.f32 %v805_v20, 0.0  ;;  %v1230_v25 = vmax.f32 %v1030_v21, 0.0 }
 0x139   : > { %v809_v26 = vpop.f32.mrf.mxu0  ;;  %v1034_v27 = vpop.f32.mrf.mxu1 }
 0x13a   : > { %1275 = vst [vmem:[%s1969_s8 + $0x88] sm:$0xff] %v1185_v24  ;;  %1320 = vst [vmem:[%s1969_s8 + $0x1f0] sm:$0xff] %v1230_v25  ;;  %v810_v28 = vadd.f32 %v1961_v7, %v809_v26  ;;  %v1035_v29 = vadd.f32 %v1961_v7, %v1034_v27 }
 0x13b   : > { %v811_v30 = vpop.f32.mrf.mxu0  ;;  %v1036_v31 = vpop.f32.mrf.mxu1 }
 0x13c   : > { %v1186_v32 = vmax.f32 %v810_v28, 0.0  ;;  %v1231_v33 = vmax.f32 %v1035_v29, 0.0 }
 0x13d   : > { %v814_v34 = vpop.f32.mrf.mxu0  ;;  %v1039_v35 = vpop.f32.mrf.mxu1 }
 0x13e   : > { %1276 = vst [vmem:[%s1969_s8 + $0x90] sm:$0xff] %v1186_v32  ;;  %1321 = vst [vmem:[%s1969_s8 + $0x1f8] sm:$0xff] %v1231_v33  ;;  %v815_v36 = vadd.f32 %v1961_v7, %v814_v34  ;;  %v1040_v37 = vadd.f32 %v1961_v7, %v1039_v35 }
 0x13f   : > { %v816_v38 = vpop.f32.mrf.mxu0  ;;  %v1041_v39 = vpop.f32.mrf.mxu1 }
 0x140   : > { %v1187_v40 = vmax.f32 %v815_v36, 0.0  ;;  %v1232_v41 = vmax.f32 %v1040_v37, 0.0 }
 0x141   : > { %v819_v42 = vpop.f32.mrf.mxu0  ;;  %v1044_v43 = vpop.f32.mrf.mxu1 }
 0x142   : > { %1277 = vst [vmem:[%s1969_s8 + $0x98] sm:$0xff] %v1187_v40  ;;  %1322 = vst [vmem:[%s1969_s8 + $0x200] sm:$0xff] %v1232_v41  ;;  %v820_v44 = vadd.f32 %v1961_v7, %v819_v42  ;;  %v1045_v45 = vadd.f32 %v1961_v7, %v1044_v43 }
 0x143   : > { %v821_v46 = vpop.f32.mrf.mxu0  ;;  %v1046_v47 = vpop.f32.mrf.mxu1 }
 0x144   : > { %v1188_v48 = vmax.f32 %v820_v44, 0.0  ;;  %v1233_v49 = vmax.f32 %v1045_v45, 0.0 }
 0x145   : > { %v824_v50 = vpop.f32.mrf.mxu0  ;;  %v1049_v51 = vpop.f32.mrf.mxu1 }
 0x146   : > { %1278 = vst [vmem:[%s1969_s8 + $0xa0] sm:$0xff] %v1188_v48  ;;  %1323 = vst [vmem:[%s1969_s8 + $0x208] sm:$0xff] %v1233_v49  ;;  %v825_v52 = vadd.f32 %v1961_v7, %v824_v50  ;;  %v1050_v53 = vadd.f32 %v1961_v7, %v1049_v51 }
 0x147   : > { %v826_v54 = vpop.f32.mrf.mxu0  ;;  %v1051_v55 = vpop.f32.mrf.mxu1 }
 0x148   : > { %v1189_v56 = vmax.f32 %v825_v52, 0.0  ;;  %v1234_v57 = vmax.f32 %v1050_v53, 0.0 }
 0x149   : > { %v829_v58 = vpop.f32.mrf.mxu0  ;;  %v1054_v59 = vpop.f32.mrf.mxu1 }
 0x14a   : > { %1279 = vst [vmem:[%s1969_s8 + $0xa8] sm:$0xff] %v1189_v56  ;;  %1324 = vst [vmem:[%s1969_s8 + $0x210] sm:$0xff] %v1234_v57  ;;  %v830_v60 = vadd.f32 %v1961_v7, %v829_v58  ;;  %v1055_v61 = vadd.f32 %v1961_v7, %v1054_v59 }
 0x14b   : > { %v831_v62 = vpop.f32.mrf.mxu0  ;;  %v1056_v63 = vpop.f32.mrf.mxu1 }
 0x14c   : > { %v1190_v0 = vmax.f32 %v830_v60, 0.0  ;;  %v1235_v1 = vmax.f32 %v1055_v61, 0.0 }
 0x14d   : > { %v834_v2 = vpop.f32.mrf.mxu0  ;;  %v1059_v3 = vpop.f32.mrf.mxu1 }
 0x14e   : > { %1280 = vst [vmem:[%s1969_s8 + $0xb0] sm:$0xff] %v1190_v0  ;;  %1325 = vst [vmem:[%s1969_s8 + $0x218] sm:$0xff] %v1235_v1  ;;  %v835_v4 = vadd.f32 %v1961_v7, %v834_v2  ;;  %v1060_v5 = vadd.f32 %v1961_v7, %v1059_v3 }
 0x14f   : > { %v836_v6 = vpop.f32.mrf.mxu0  ;;  %v1061_v8 = vpop.f32.mrf.mxu1 }
 0x150   : > { %v1191_v9 = vmax.f32 %v835_v4, 0.0  ;;  %v1236_v10 = vmax.f32 %v1060_v5, 0.0 }
 0x151   : > { %v839_v11 = vpop.f32.mrf.mxu0  ;;  %v1064_v12 = vpop.f32.mrf.mxu1 }
 0x152   : > { %1281 = vst [vmem:[%s1969_s8 + $0xb8] sm:$0xff] %v1191_v9  ;;  %1326 = vst [vmem:[%s1969_s8 + $0x220] sm:$0xff] %v1236_v10  ;;  %v840_v13 = vadd.f32 %v1961_v7, %v839_v11  ;;  %v1065_v14 = vadd.f32 %v1961_v7, %v1064_v12 }
 0x153   : > { %v841_v15 = vpop.f32.mrf.mxu0  ;;  %v1066_v16 = vpop.f32.mrf.mxu1 }
 0x154   : > { %v1192_v17 = vmax.f32 %v840_v13, 0.0  ;;  %v1237_v18 = vmax.f32 %v1065_v14, 0.0 }
 0x155   : > { %v844_v19 = vpop.f32.mrf.mxu0  ;;  %v1069_v20 = vpop.f32.mrf.mxu1 }
 0x156   : > { %1282 = vst [vmem:[%s1969_s8 + $0xc0] sm:$0xff] %v1192_v17  ;;  %1327 = vst [vmem:[%s1969_s8 + $0x228] sm:$0xff] %v1237_v18  ;;  %v845_v21 = vadd.f32 %v1961_v7, %v844_v19  ;;  %v1070_v22 = vadd.f32 %v1961_v7, %v1069_v20 }
 0x157   : > { %v846_v23 = vpop.f32.mrf.mxu0  ;;  %v1071_v24 = vpop.f32.mrf.mxu1 }
 0x158   : > { %v1193_v25 = vmax.f32 %v845_v21, 0.0  ;;  %v1238_v26 = vmax.f32 %v1070_v22, 0.0 }
 0x159   : > { %v849_v27 = vpop.f32.mrf.mxu0  ;;  %v1074_v28 = vpop.f32.mrf.mxu1 }
 0x15a   : > { %1283 = vst [vmem:[%s1969_s8 + $0xc8] sm:$0xff] %v1193_v25  ;;  %1328 = vst [vmem:[%s1969_s8 + $0x230] sm:$0xff] %v1238_v26  ;;  %v850_v29 = vadd.f32 %v1961_v7, %v849_v27  ;;  %v1075_v30 = vadd.f32 %v1961_v7, %v1074_v28 }
 0x15b   : > { %v851_v31 = vpop.f32.mrf.mxu0  ;;  %v1076_v32 = vpop.f32.mrf.mxu1 }
 0x15c   : > { %v1194_v33 = vmax.f32 %v850_v29, 0.0  ;;  %v1239_v34 = vmax.f32 %v1075_v30, 0.0 }
 0x15d   : > { %v854_v35 = vpop.f32.mrf.mxu0  ;;  %v1079_v36 = vpop.f32.mrf.mxu1 }
 0x15e   : > { %1284 = vst [vmem:[%s1969_s8 + $0xd0] sm:$0xff] %v1194_v33  ;;  %1329 = vst [vmem:[%s1969_s8 + $0x238] sm:$0xff] %v1239_v34  ;;  %v855_v37 = vadd.f32 %v1961_v7, %v854_v35  ;;  %v1080_v38 = vadd.f32 %v1961_v7, %v1079_v36 }
 0x15f   : > { %v856_v39 = vpop.f32.mrf.mxu0  ;;  %v1081_v40 = vpop.f32.mrf.mxu1 }
 0x160   : > { %v1195_v41 = vmax.f32 %v855_v37, 0.0  ;;  %v1240_v42 = vmax.f32 %v1080_v38, 0.0 }
 0x161   : > { %v859_v43 = vpop.f32.mrf.mxu0  ;;  %v1084_v44 = vpop.f32.mrf.mxu1 }
 0x162   : > { %1285 = vst [vmem:[%s1969_s8 + $0xd8] sm:$0xff] %v1195_v41  ;;  %1330 = vst [vmem:[%s1969_s8 + $0x240] sm:$0xff] %v1240_v42  ;;  %v860_v45 = vadd.f32 %v1961_v7, %v859_v43  ;;  %v1085_v46 = vadd.f32 %v1961_v7, %v1084_v44 }
 0x163   : > { %v861_v47 = vpop.f32.mrf.mxu0  ;;  %v1086_v48 = vpop.f32.mrf.mxu1 }
 0x164   : > { %v1196_v49 = vmax.f32 %v860_v45, 0.0  ;;  %v1241_v50 = vmax.f32 %v1085_v46, 0.0 }
 0x165   : > { %v864_v51 = vpop.f32.mrf.mxu0  ;;  %v1089_v52 = vpop.f32.mrf.mxu1 }
 0x166   : > { %1286 = vst [vmem:[%s1969_s8 + $0xe0] sm:$0xff] %v1196_v49  ;;  %1331 = vst [vmem:[%s1969_s8 + $0x248] sm:$0xff] %v1241_v50  ;;  %v865_v53 = vadd.f32 %v1961_v7, %v864_v51  ;;  %v1090_v54 = vadd.f32 %v1961_v7, %v1089_v52 }
 0x167   : > { %v866_v55 = vpop.f32.mrf.mxu0  ;;  %v1091_v56 = vpop.f32.mrf.mxu1 }
 0x168   : > { %v1197_v57 = vmax.f32 %v865_v53, 0.0  ;;  %v1242_v58 = vmax.f32 %v1090_v54, 0.0 }
 0x169   : > { %v869_v59 = vpop.f32.mrf.mxu0  ;;  %v1094_v60 = vpop.f32.mrf.mxu1 }
 0x16a   : > { %1287 = vst [vmem:[%s1969_s8 + $0xe8] sm:$0xff] %v1197_v57  ;;  %1332 = vst [vmem:[%s1969_s8 + $0x250] sm:$0xff] %v1242_v58  ;;  %v870_v61 = vadd.f32 %v1961_v7, %v869_v59  ;;  %v1095_v62 = vadd.f32 %v1961_v7, %v1094_v60 }
 0x16b   : > { %v871_v63 = vpop.f32.mrf.mxu0  ;;  %v1096_v0 = vpop.f32.mrf.mxu1 }
 0x16c   : > { %v1198_v1 = vmax.f32 %v870_v61, 0.0  ;;  %v1243_v2 = vmax.f32 %v1095_v62, 0.0 }
 0x16d   : > { %v874_v3 = vpop.f32.mrf.mxu0  ;;  %v1099_v4 = vpop.f32.mrf.mxu1 }
 0x16e   : > { %1288 = vst [vmem:[%s1969_s8 + $0xf0] sm:$0xff] %v1198_v1  ;;  %1333 = vst [vmem:[%s1969_s8 + $0x258] sm:$0xff] %v1243_v2  ;;  %v875_v5 = vadd.f32 %v1961_v7, %v874_v3  ;;  %v1100_v6 = vadd.f32 %v1961_v7, %v1099_v4 }
 0x16f   : > { %v876_v8 = vpop.f32.mrf.mxu0  ;;  %v1101_v9 = vpop.f32.mrf.mxu1 }
 0x170   : > { %v1199_v10 = vmax.f32 %v875_v5, 0.0  ;;  %v1244_v11 = vmax.f32 %v1100_v6, 0.0 }
 0x171   : > { %v879_v12 = vpop.f32.mrf.mxu0  ;;  %v1104_v13 = vpop.f32.mrf.mxu1 }
 0x172   : > { %1289 = vst [vmem:[%s1969_s8 + $0xf8] sm:$0xff] %v1199_v10  ;;  %1334 = vst [vmem:[%s1969_s8 + $0x260] sm:$0xff] %v1244_v11  ;;  %v880_v14 = vadd.f32 %v1961_v7, %v879_v12  ;;  %v1105_v15 = vadd.f32 %v1961_v7, %v1104_v13 }
 0x173   : > { %v881_v16 = vpop.f32.mrf.mxu0  ;;  %v1106_v17 = vpop.f32.mrf.mxu1 }
 0x174   : > { %v1200_v18 = vmax.f32 %v880_v14, 0.0  ;;  %v1245_v19 = vmax.f32 %v1105_v15, 0.0 }
 0x175   : > { %v884_v20 = vpop.f32.mrf.mxu0  ;;  %v1109_v21 = vpop.f32.mrf.mxu1 }
 0x176   : > { %1290 = vst [vmem:[%s1969_s8 + $0x100] sm:$0xff] %v1200_v18  ;;  %1335 = vst [vmem:[%s1969_s8 + $0x268] sm:$0xff] %v1245_v19  ;;  %v885_v22 = vadd.f32 %v1961_v7, %v884_v20  ;;  %v1110_v23 = vadd.f32 %v1961_v7, %v1109_v21 }
 0x177   : > { %v886_v24 = vpop.f32.mrf.mxu0  ;;  %v1111_v25 = vpop.f32.mrf.mxu1 }
 0x178   : > { %v1201_v26 = vmax.f32 %v885_v22, 0.0  ;;  %v1246_v27 = vmax.f32 %v1110_v23, 0.0 }
 0x179   : > { %v889_v28 = vpop.f32.mrf.mxu0  ;;  %v1114_v29 = vpop.f32.mrf.mxu1 }
 0x17a   : > { %1291 = vst [vmem:[%s1969_s8 + $0x108] sm:$0xff] %v1201_v26  ;;  %1336 = vst [vmem:[%s1969_s8 + $0x270] sm:$0xff] %v1246_v27  ;;  %v890_v30 = vadd.f32 %v1961_v7, %v889_v28  ;;  %v1115_v31 = vadd.f32 %v1961_v7, %v1114_v29 }
 0x17b   : > { %v891_v32 = vpop.f32.mrf.mxu0  ;;  %v1116_v33 = vpop.f32.mrf.mxu1 }
 0x17c   : > { %v1202_v34 = vmax.f32 %v890_v30, 0.0  ;;  %v1247_v35 = vmax.f32 %v1115_v31, 0.0 }
 0x17d   : > { %v894_v36 = vpop.f32.mrf.mxu0  ;;  %v1119_v37 = vpop.f32.mrf.mxu1 }
 0x17e   : > { %1292 = vst [vmem:[%s1969_s8 + $0x110] sm:$0xff] %v1202_v34  ;;  %1337 = vst [vmem:[%s1969_s8 + $0x278] sm:$0xff] %v1247_v35  ;;  %v895_v38 = vadd.f32 %v1961_v7, %v894_v36  ;;  %v1120_v39 = vadd.f32 %v1961_v7, %v1119_v37 }
 0x17f   : > { %v896_v40 = vpop.f32.mrf.mxu0  ;;  %v1121_v41 = vpop.f32.mrf.mxu1 }
 0x180   : > { %v1203_v42 = vmax.f32 %v895_v38, 0.0  ;;  %v1248_v43 = vmax.f32 %v1120_v39, 0.0 }
 0x181   : > { %v899_v44 = vpop.f32.mrf.mxu0  ;;  %v1124_v45 = vpop.f32.mrf.mxu1 }
 0x182   : > { %1293 = vst [vmem:[%s1969_s8 + $0x118] sm:$0xff] %v1203_v42  ;;  %1338 = vst [vmem:[%s1969_s8 + $0x280] sm:$0xff] %v1248_v43  ;;  %v900_v46 = vadd.f32 %v1961_v7, %v899_v44  ;;  %v1125_v47 = vadd.f32 %v1961_v7, %v1124_v45 }
 0x183   : > { %v901_v48 = vpop.f32.mrf.mxu0  ;;  %v1126_v49 = vpop.f32.mrf.mxu1 }
 0x184   : > { %v1204_v50 = vmax.f32 %v900_v46, 0.0  ;;  %v1249_v51 = vmax.f32 %v1125_v47, 0.0 }
 0x185   : > { %v904_v52 = vpop.f32.mrf.mxu0  ;;  %v1129_v53 = vpop.f32.mrf.mxu1 }
 0x186   : > { %1294 = vst [vmem:[%s1969_s8 + $0x120] sm:$0xff] %v1204_v50  ;;  %1339 = vst [vmem:[%s1969_s8 + $0x288] sm:$0xff] %v1249_v51  ;;  %v905_v54 = vadd.f32 %v1961_v7, %v904_v52  ;;  %v1130_v55 = vadd.f32 %v1961_v7, %v1129_v53 }
 0x187   : > { %v906_v56 = vpop.f32.mrf.mxu0  ;;  %v1131_v57 = vpop.f32.mrf.mxu1 }
 0x188   : > { %v1205_v58 = vmax.f32 %v905_v54, 0.0  ;;  %v1250_v59 = vmax.f32 %v1130_v55, 0.0 }
 0x189   : > { %v909_v60 = vpop.f32.mrf.mxu0  ;;  %v1134_v61 = vpop.f32.mrf.mxu1 }
 0x18a   : > { %1295 = vst [vmem:[%s1969_s8 + $0x128] sm:$0xff] %v1205_v58  ;;  %1340 = vst [vmem:[%s1969_s8 + $0x290] sm:$0xff] %v1250_v59  ;;  %v910_v62 = vadd.f32 %v1961_v7, %v909_v60  ;;  %v1135_v63 = vadd.f32 %v1961_v7, %v1134_v61 }
 0x18b   : > { %v911_v0 = vpop.f32.mrf.mxu0  ;;  %v1136_v1 = vpop.f32.mrf.mxu1 }
 0x18c   : > { %v1206_v2 = vmax.f32 %v910_v62, 0.0  ;;  %v1251_v3 = vmax.f32 %v1135_v63, 0.0 }
 0x18d   : > { %v914_v4 = vpop.f32.mrf.mxu0  ;;  %v1139_v5 = vpop.f32.mrf.mxu1 }
 0x18e   : > { %1296 = vst [vmem:[%s1969_s8 + $0x130] sm:$0xff] %v1206_v2  ;;  %1341 = vst [vmem:[%s1969_s8 + $0x298] sm:$0xff] %v1251_v3  ;;  %v915_v6 = vadd.f32 %v1961_v7, %v914_v4  ;;  %v1140_v8 = vadd.f32 %v1961_v7, %v1139_v5 }
 0x18f   : > { %v916_v9 = vpop.f32.mrf.mxu0  ;;  %v1141_v10 = vpop.f32.mrf.mxu1 }
 0x190   : > { %v1207_v11 = vmax.f32 %v915_v6, 0.0  ;;  %v1252_v12 = vmax.f32 %v1140_v8, 0.0 }
 0x191   : > { %v919_v13 = vpop.f32.mrf.mxu0  ;;  %v1144_v14 = vpop.f32.mrf.mxu1 }
 0x192   : > { %1297 = vst [vmem:[%s1969_s8 + $0x138] sm:$0xff] %v1207_v11  ;;  %1342 = vst [vmem:[%s1969_s8 + $0x2a0] sm:$0xff] %v1252_v12  ;;  %v920_v15 = vadd.f32 %v1961_v7, %v919_v13  ;;  %v1145_v16 = vadd.f32 %v1961_v7, %v1144_v14 }
 0x193   : > { %v921_v17 = vpop.f32.mrf.mxu0  ;;  %v1146_v18 = vpop.f32.mrf.mxu1 }
 0x194   : > { %v1208_v19 = vmax.f32 %v920_v15, 0.0  ;;  %v1253_v20 = vmax.f32 %v1145_v16, 0.0 }
 0x195   : > { %v924_v21 = vpop.f32.mrf.mxu0  ;;  %v1149_v22 = vpop.f32.mrf.mxu1 }
 0x196   : > { %1298 = vst [vmem:[%s1969_s8 + $0x140] sm:$0xff] %v1208_v19  ;;  %1343 = vst [vmem:[%s1969_s8 + $0x2a8] sm:$0xff] %v1253_v20  ;;  %v925_v23 = vadd.f32 %v1961_v7, %v924_v21  ;;  %v1150_v24 = vadd.f32 %v1961_v7, %v1149_v22 }
 0x197   : > { %v926_v25 = vpop.f32.mrf.mxu0  ;;  %v1151_v26 = vpop.f32.mrf.mxu1 }
 0x198   : > { %v1209_v27 = vmax.f32 %v925_v23, 0.0  ;;  %v1254_v28 = vmax.f32 %v1150_v24, 0.0 }
 0x199   : > { %v929_v29 = vpop.f32.mrf.mxu0  ;;  %v1154_v30 = vpop.f32.mrf.mxu1 }
 0x19a   : > { %1299 = vst [vmem:[%s1969_s8 + $0x148] sm:$0xff] %v1209_v27  ;;  %1344 = vst [vmem:[%s1969_s8 + $0x2b0] sm:$0xff] %v1254_v28  ;;  %v930_v31 = vadd.f32 %v1961_v7, %v929_v29  ;;  %v1155_v32 = vadd.f32 %v1961_v7, %v1154_v30 }
 0x19b   : > { %v931_v33 = vpop.f32.mrf.mxu0  ;;  %v1156_v34 = vpop.f32.mrf.mxu1 }
 0x19c   : > { %v1210_v35 = vmax.f32 %v930_v31, 0.0  ;;  %v1255_v36 = vmax.f32 %v1155_v32, 0.0 }
 0x19d   : > { %v934_v37 = vpop.f32.mrf.mxu0  ;;  %v1159_v38 = vpop.f32.mrf.mxu1 }
 0x19e   : > { %1300 = vst [vmem:[%s1969_s8 + $0x150] sm:$0xff] %v1210_v35  ;;  %1345 = vst [vmem:[%s1969_s8 + $0x2b8] sm:$0xff] %v1255_v36  ;;  %v935_v39 = vadd.f32 %v1961_v7, %v934_v37  ;;  %v1160_v40 = vadd.f32 %v1961_v7, %v1159_v38 }
 0x19f   : > { %v936_v41 = vpop.f32.mrf.mxu0  ;;  %v1161_v42 = vpop.f32.mrf.mxu1 }
 0x1a0   : > { %v1211_v43 = vmax.f32 %v935_v39, 0.0  ;;  %v1256_v44 = vmax.f32 %v1160_v40, 0.0 }
 0x1a1   : > { %v939_v45 = vpop.f32.mrf.mxu0  ;;  %v1164_v46 = vpop.f32.mrf.mxu1 }
 0x1a2   : > { %1301 = vst [vmem:[%s1969_s8 + $0x158] sm:$0xff] %v1211_v43  ;;  %1346 = vst [vmem:[%s1969_s8 + $0x2c0] sm:$0xff] %v1256_v44  ;;  %v940_v47 = vadd.f32 %v1961_v7, %v939_v45  ;;  %v1165_v48 = vadd.f32 %v1961_v7, %v1164_v46 }
 0x1a3   : > { %v941_v49 = vpop.f32.mrf.mxu0  ;;  %v1166_v50 = vpop.f32.mrf.mxu1 }
 0x1a4   : > { %v1212_v51 = vmax.f32 %v940_v47, 0.0  ;;  %v1257_v52 = vmax.f32 %v1165_v48, 0.0 }
 0x1a6   : > { %1302 = vst [vmem:[%s1969_s8 + $0x160] sm:$0xff] %v1212_v51  ;;  %1347 = vst [vmem:[%s1969_s8 + $0x2c8] sm:$0xff] %v1257_v52 }
 0x1a7 PF: > { %s13_s12 = sadd.s32 1, %s1557_s12  }
 0x1a8   : > { %p10_p4 = scmp.ge.s32.totalorder %s13_s12, 12  }
 0x1aa   :  { %12 = sbr.rel (!%p10_p4) target bundleno = 1 (0x1), region = 62 }

// kernel: forward.6
= control target key start
LH: loop header
LB: loop body
LE: loop exit
PB: predicated region body
PF: predicated region fallthrough
CT: control target
= control target key end

     0   :  { %vm123_vm0 = vcmask 1041408   ;;  %vm124_vm1 = vcmask 912386   ;;  %s369_s0 = inlined_call_operand.vmem [shape: f32[9,2,2800], index: 0, kind: input, shape index: {}]   ;;  %s370_s1 = inlined_call_operand.vmem [shape: f32[2,2800], index: 1, kind: output, shape index: {}]  }
   0x1   :  { %v8_v0 = vld [vmem:[%s369_s0] sm:$0xff]  ;;  %v131_v1 = vld [vmem:[%s369_s0 + $0x2c] sm:$0xff]  ;;  %v137_v2 = vld [vmem:[%s369_s0 + $0x58] sm:$0xff] }
   0x2   :  { %v21_v3 = vmax.f32 %v8_v0, %v131_v1  ;;  %v143_v4 = vld [vmem:[%s369_s0 + $0x84] sm:$0xff]  ;;  %v132_v7 = vld [vmem:[%s369_s0 + $0x34] sm:$0xff]  ;;  %v155_v12 = vld [vmem:[%s369_s0 + $0xdc] sm:$0xff] }
   0x3   :  { %v9_v6 = vld [vmem:[%s369_s0 + $0x8] sm:$0xff]  ;;  %v138_v8 = vld [vmem:[%s369_s0 + $0x60] sm:$0xff]  ;;  %v149_v9 = vld [vmem:[%s369_s0 + $0xb0] sm:$0xff] }
   0x4   :  { %v34_v5 = vmax.f32 %v21_v3, %v137_v2  ;;  %v22_v10 = vmax.f32 %v9_v6, %v132_v7  ;;  %v144_v13 = vld [vmem:[%s369_s0 + $0x8c] sm:$0xff]  ;;  %v133_v16 = vld [vmem:[%s369_s0 + $0x3c] sm:$0xff]  ;;  %v156_v23 = vld [vmem:[%s369_s0 + $0xe4] sm:$0xff] }
   0x5   :  { %v10_v15 = vld [vmem:[%s369_s0 + $0x10] sm:$0xff]  ;;  %v139_v17 = vld [vmem:[%s369_s0 + $0x68] sm:$0xff]  ;;  %v150_v19 = vld [vmem:[%s369_s0 + $0xb8] sm:$0xff] }
   0x6   :  { %v47_v11 = vmax.f32 %v34_v5, %v143_v4  ;;  %v35_v14 = vmax.f32 %v22_v10, %v138_v8  ;;  %v23_v20 = vmax.f32 %v10_v15, %v133_v16  ;;  %v161_v21 = vld [vmem:[%s369_s0 + $0x108] sm:$0xff]  ;;  %v145_v24 = vld [vmem:[%s369_s0 + $0x94] sm:$0xff]  ;;  %v173_v31 = vld [vmem:[%s369_s0 + $0x160] sm:$0xff] }
   0x7   :  { %v11_v27 = vld [vmem:[%s369_s0 + $0x18] sm:$0xff]  ;;  %v134_v28 = vld [vmem:[%s369_s0 + $0x44] sm:$0xff]  ;;  %v140_v29 = vld [vmem:[%s369_s0 + $0x70] sm:$0xff] }
   0x8   :  { %v60_v18 = vmax.f32 %v47_v11, %v149_v9  ;;  %v48_v22 = vmax.f32 %v35_v14, %v144_v13  ;;  %v36_v26 = vmax.f32 %v23_v20, %v139_v17  ;;  %v167_v30 = vld [vmem:[%s369_s0 + $0x134] sm:$0xff]  ;;  %v151_v33 = vld [vmem:[%s369_s0 + $0xc0] sm:$0xff]  ;;  %v24_v34 = vmax.f32 %v11_v27, %v134_v28  ;;  %v157_v38 = vld [vmem:[%s369_s0 + $0xec] sm:$0xff] }
   0x9   :  { %v162_v36 = vld [vmem:[%s369_s0 + $0x110] sm:$0xff]  ;;  %v146_v39 = vld [vmem:[%s369_s0 + $0x9c] sm:$0xff]  ;;  %v174_v47 = vld [vmem:[%s369_s0 + $0x168] sm:$0xff] }
   0xa   :  { %v73_v25 = vmax.f32 %v60_v18, %v155_v12  ;;  %v61_v32 = vmax.f32 %v48_v22, %v150_v19  ;;  %v49_v37 = vmax.f32 %v36_v26, %v145_v24  ;;  %v37_v41 = vmax.f32 %v24_v34, %v140_v29  ;;  %v12_v42 = vld [vmem:[%s369_s0 + $0x20] sm:$0xff]  ;;  %v135_v43 = vld [vmem:[%s369_s0 + $0x4c] sm:$0xff]  ;;  %v141_v44 = vld [vmem:[%s369_s0 + $0x78] sm:$0xff] }
   0xb   :  { %v168_v46 = vld [vmem:[%s369_s0 + $0x13c] sm:$0xff]  ;;  %v152_v49 = vld [vmem:[%s369_s0 + $0xc8] sm:$0xff]  ;;  %v25_v50 = vmax.f32 %v12_v42, %v135_v43  ;;  %v158_v54 = vld [vmem:[%s369_s0 + $0xf4] sm:$0xff] }
   0xc   :  { %v86_v35 = vmax.f32 %v73_v25, %v161_v21  ;;  %v74_v40 = vmax.f32 %v61_v32, %v156_v23  ;;  %v62_v48 = vmax.f32 %v49_v37, %v151_v33  ;;  %v163_v52 = vld [vmem:[%s369_s0 + $0x118] sm:$0xff]  ;;  %v50_v53 = vmax.f32 %v37_v41, %v146_v39  ;;  %v147_v55 = vld [vmem:[%s369_s0 + $0xa4] sm:$0xff]  ;;  %v136_v60 = vld [vmem:[%s369_s0 + $0x54] sm:$0xf] }
   0xd   :  { %v38_v58 = vmax.f32 %v25_v50, %v141_v44  ;;  %v13_v59 = vld [vmem:[%s369_s0 + $0x28] sm:$0xf]  ;;  %v142_v61 = vld [vmem:[%s369_s0 + $0x80] sm:$0xf]  ;;  %v153_v1 = vld [vmem:[%s369_s0 + $0xd0] sm:$0xff] }
   0xe   :  { %v99_v45 = vmax.f32 %v86_v35, %v167_v30  ;;  %v87_v51 = vmax.f32 %v74_v40, %v162_v36  ;;  %v75_v57 = vmax.f32 %v62_v48, %v157_v38  ;;  %v169_v63 = vld [vmem:[%s369_s0 + $0x144] sm:$0xff]  ;;  %v63_v0 = vmax.f32 %v50_v53, %v152_v49  ;;  %v148_v6 = vld [vmem:[%s369_s0 + $0xac] sm:$0xf]  ;;  %v175_v8 = vld [vmem:[%s369_s0 + $0x170] sm:$0xff] }
   0xf   :  { %v26_v2 = vmax.f32 %v13_v59, %v136_v60  ;;  %v164_v4 = vld [vmem:[%s369_s0 + $0x120] sm:$0xff]  ;;  %v51_v5 = vmax.f32 %v38_v58, %v147_v55  ;;  %v170_v13 = vld [vmem:[%s369_s0 + $0x14c] sm:$0xff]  ;;  %v154_v15 = vld [vmem:[%s369_s0 + $0xd8] sm:$0xf] }
  0x10   :  { %v112_v56 = vmax.f32 %v99_v45, %v173_v31  ;;  %v100_v62 = vmax.f32 %v87_v51, %v168_v46  ;;  %v88_v3 = vmax.f32 %v75_v57, %v163_v52  ;;  %v76_v9 = vmax.f32 %v63_v0, %v158_v54  ;;  %v159_v10 = vld [vmem:[%s369_s0 + $0xfc] sm:$0xff]  ;;  %v165_v17 = vld [vmem:[%s369_s0 + $0x128] sm:$0xff]  ;;  %v160_v22 = vld [vmem:[%s369_s0 + $0x104] sm:$0xf] }
  0x11   :  { %v39_v11 = vmax.f32 %v26_v2, %v142_v61  ;;  %v64_v14 = vmax.f32 %v51_v5, %v153_v1  ;;  %v176_v20 = vld [vmem:[%s369_s0 + $0x178] sm:$0xff]  ;;  %v166_v27 = vld [vmem:[%s369_s0 + $0x130] sm:$0xf]  ;;  %v177_v29 = vld [vmem:[%s369_s0 + $0x180] sm:$0xff] }
  0x12   :  { %118 = vst [vmem:[%s370_s1] sm:$0xff] %v112_v56  ;;  %v113_v7 = vmax.f32 %v100_v62, %v174_v47  ;;  %v101_v12 = vmax.f32 %v88_v3, %v169_v63  ;;  %v89_v16 = vmax.f32 %v76_v9, %v164_v4  ;;  %v171_v24 = vld [vmem:[%s369_s0 + $0x154] sm:$0xff]  ;;  %v172_v32 = vld [vmem:[%s369_s0 + $0x15c] sm:$0xf]  ;;  %v178_v35 = vld [vmem:[%s369_s0 + $0x188] sm:$0xf] }
  0x13   :  { %v52_v18 = vmax.f32 %v39_v11, %v148_v6  ;;  %v77_v21 = vmax.f32 %v64_v14, %v159_v10  ;;  %vm125_vm2 = vmor %vm124_vm1, %vm123_vm0 }
  0x14   :  { %119 = vst [vmem:[%s370_s1 + $0x8] sm:$0xff] %v113_v7  ;;  %v114_v19 = vmax.f32 %v101_v12, %v175_v8  ;;  %v102_v23 = vmax.f32 %v89_v16, %v170_v13 }
  0x15   :  { %v65_v25 = vmax.f32 %v52_v18, %v154_v15  ;;  %v90_v26 = vmax.f32 %v77_v21, %v165_v17 }
  0x16   :  { %120 = vst [vmem:[%s370_s1 + $0x10] sm:$0xff] %v114_v19  ;;  %v115_v28 = vmax.f32 %v102_v23, %v176_v20 }
  0x17   :  { %v78_v30 = vmax.f32 %v65_v25, %v160_v22  ;;  %v103_v31 = vmax.f32 %v90_v26, %v171_v24 }
  0x18   :  { %121 = vst [vmem:[%s370_s1 + $0x18] sm:$0xff] %v115_v28 }
  0x19   :  { %v91_v33 = vmax.f32 %v78_v30, %v166_v27  ;;  %v116_v34 = vmax.f32 %v103_v31, %v177_v29 }
  0x1b   :  { %v104_v36 = vmax.f32 %v91_v33, %v172_v32  ;;  %122 = vst [vmem:[%s370_s1 + $0x20] sm:$0xff] %v116_v34 }
  0x1d   :  { %v117_v37 = vmax.f32 %v104_v36, %v178_v35 }
  0x1f   :  { %126 = vst.msk [vmem:[%s370_s1 + $0x28] sm:$0xf] %vm125_vm2, %v117_v37 }

// kernel: forward.7
= control target key start
LH: loop header
LB: loop body
LE: loop exit
PB: predicated region body
PF: predicated region fallthrough
CT: control target
= control target key end

     0   :  { %v935_v0 = vmov 0.0   ;;  %vm339_vm0 = vcmask 1043456   ;;  %vm167_vm1 = vcmask 1014784   ;;  %s1748_s1 = inlined_call_operand.vmem [shape: f32[252,128], index: 1, kind: input, shape index: {}]   ;;  %s1749_s0 = inlined_call_operand.vmem [shape: f32[450,252], index: 0, kind: input, shape index: {}]   ;;  %s1750_s2 = inlined_call_operand.vmem [shape: f32[1,128], index: 2, kind: input, shape index: {}]   ;;  %s1751_s3 = inlined_call_operand.vmem [shape: f32[450,128], index: 3, kind: output, shape index: {}]  }
   0x1   :  { %343 = vmatprep.subr.mxu0 %v935_v0  ;;  %v143_v1 = vld [vmem:[%s1748_s1 + $0x78] sm:$0xff]  ;;  %870 = vmatprep.subr.mxu1 %v935_v0  ;;  %v142_v2 = vld [vmem:[%s1748_s1 + $0x70] sm:$0xff]  ;;  %v141_v3 = vld [vmem:[%s1748_s1 + $0x68] sm:$0xff] }
   0x2   :  { %344 = vmatpush1.msra.mxu0 %v143_v1  ;;  %902 = vmatpush1.msra.mxu1 %v143_v1  ;;  %v140_v4 = vld [vmem:[%s1748_s1 + $0x60] sm:$0xff]  ;;  %v139_v5 = vld [vmem:[%s1748_s1 + $0x58] sm:$0xff]  ;;  %v138_v6 = vld [vmem:[%s1748_s1 + $0x50] sm:$0xff] }
   0x3   :  { %345 = vmatprep.subr.mxu0 %v935_v0  ;;  %871 = vmatprep.subr.mxu1 %v935_v0  ;;  %v137_v7 = vld [vmem:[%s1748_s1 + $0x48] sm:$0xff]  ;;  %v136_v8 = vld [vmem:[%s1748_s1 + $0x40] sm:$0xff]  ;;  %v135_v9 = vld [vmem:[%s1748_s1 + $0x38] sm:$0xff] }
   0x4   :  { %346 = vmatpush1.msra.mxu0 %v142_v2  ;;  %903 = vmatpush1.msra.mxu1 %v142_v2  ;;  %v134_v10 = vld [vmem:[%s1748_s1 + $0x30] sm:$0xff]  ;;  %v133_v11 = vld [vmem:[%s1748_s1 + $0x28] sm:$0xff]  ;;  %v132_v12 = vld [vmem:[%s1748_s1 + $0x20] sm:$0xff] }
   0x5   :  { %347 = vmatprep.subr.mxu0 %v935_v0  ;;  %872 = vmatprep.subr.mxu1 %v935_v0  ;;  %v131_v13 = vld [vmem:[%s1748_s1 + $0x18] sm:$0xff]  ;;  %v130_v14 = vld [vmem:[%s1748_s1 + $0x10] sm:$0xff]  ;;  %v129_v15 = vld [vmem:[%s1748_s1 + $0x8] sm:$0xff] }
   0x6   :  { %348 = vmatpush1.msra.mxu0 %v141_v3  ;;  %904 = vmatpush1.msra.mxu1 %v141_v3  ;;  %v128_v16 = vld [vmem:[%s1748_s1] sm:$0xff]  ;;  %v159_v17 = vld [vmem:[%s1748_s1 + $0xf8] sm:$0xf]  ;;  %v158_v18 = vld [vmem:[%s1748_s1 + $0xf0] sm:$0xff] }
   0x7   :  { %349 = vmatprep.subr.mxu0 %v935_v0  ;;  %873 = vmatprep.subr.mxu1 %v935_v0  ;;  %v157_v19 = vld [vmem:[%s1748_s1 + $0xe8] sm:$0xff]  ;;  %v156_v20 = vld [vmem:[%s1748_s1 + $0xe0] sm:$0xff]  ;;  %v155_v21 = vld [vmem:[%s1748_s1 + $0xd8] sm:$0xff] }
   0x8   :  { %350 = vmatpush1.msra.mxu0 %v140_v4  ;;  %905 = vmatpush1.msra.mxu1 %v140_v4  ;;  %v154_v22 = vld [vmem:[%s1748_s1 + $0xd0] sm:$0xff]  ;;  %v153_v23 = vld [vmem:[%s1748_s1 + $0xc8] sm:$0xff]  ;;  %v152_v24 = vld [vmem:[%s1748_s1 + $0xc0] sm:$0xff] }
   0x9   :  { %351 = vmatprep.subr.mxu0 %v935_v0  ;;  %874 = vmatprep.subr.mxu1 %v935_v0  ;;  %v151_v25 = vld [vmem:[%s1748_s1 + $0xb8] sm:$0xff]  ;;  %v150_v26 = vld [vmem:[%s1748_s1 + $0xb0] sm:$0xff]  ;;  %v149_v27 = vld [vmem:[%s1748_s1 + $0xa8] sm:$0xff] }
   0xa   :  { %352 = vmatpush1.msra.mxu0 %v139_v5  ;;  %906 = vmatpush1.msra.mxu1 %v139_v5  ;;  %v148_v28 = vld [vmem:[%s1748_s1 + $0xa0] sm:$0xff]  ;;  %v147_v29 = vld [vmem:[%s1748_s1 + $0x98] sm:$0xff]  ;;  %v146_v30 = vld [vmem:[%s1748_s1 + $0x90] sm:$0xff] }
   0xb   :  { %353 = vmatprep.subr.mxu0 %v935_v0  ;;  %875 = vmatprep.subr.mxu1 %v935_v0  ;;  %v145_v31 = vld [vmem:[%s1748_s1 + $0x88] sm:$0xff]  ;;  %v144_v33 = vld [vmem:[%s1748_s1 + $0x80] sm:$0xff]  ;;  %v73_v35 = vld [vmem:[%s1749_s0 + $0x1d8] sm:$0xff] }
   0xc   :  { %354 = vmatpush1.msra.mxu0 %v138_v6  ;;  %907 = vmatpush1.msra.mxu1 %v138_v6  ;;  %v15_v32 = vld [vmem:[%s1749_s0 + $0x8] sm:$0xff]  ;;  %v14_v34 = vld [vmem:[%s1749_s0] sm:$0xff]  ;;  %v17_v36 = vld [vmem:[%s1749_s0 + $0x18] sm:$0xff] }
   0xd   :  { %355 = vmatprep.subr.mxu0 %v935_v0  ;;  %876 = vmatprep.subr.mxu1 %v935_v0  ;;  %v72_v37 = vld [vmem:[%s1749_s0 + $0x1d0] sm:$0xff]  ;;  %v75_v38 = vld [vmem:[%s1749_s0 + $0x1e8] sm:$0xff]  ;;  %v74_v41 = vld [vmem:[%s1749_s0 + $0x1e0] sm:$0xff] }
   0xe   :  { %356 = vmatpush1.msra.mxu0 %v137_v7  ;;  %908 = vmatpush1.msra.mxu1 %v137_v7  ;;  %v16_v39 = vld [vmem:[%s1749_s0 + $0x10] sm:$0xff]  ;;  %v19_v40 = vld [vmem:[%s1749_s0 + $0x28] sm:$0xff]  ;;  %v77_v42 = vld [vmem:[%s1749_s0 + $0x1f8] sm:$0xff] }
   0xf   :  { %357 = vmatprep.subr.mxu0 %v935_v0  ;;  %877 = vmatprep.subr.mxu1 %v935_v0  ;;  %v18_v43 = vld [vmem:[%s1749_s0 + $0x20] sm:$0xff]  ;;  %v21_v44 = vld [vmem:[%s1749_s0 + $0x38] sm:$0xff]  ;;  %v76_v45 = vld [vmem:[%s1749_s0 + $0x1f0] sm:$0xff] }
  0x10   :  { %358 = vmatpush1.msra.mxu0 %v136_v8  ;;  %909 = vmatpush1.msra.mxu1 %v136_v8  ;;  %v79_v46 = vld [vmem:[%s1749_s0 + $0x208] sm:$0xff]  ;;  %v20_v47 = vld [vmem:[%s1749_s0 + $0x30] sm:$0xff]  ;;  %v78_v49 = vld [vmem:[%s1749_s0 + $0x200] sm:$0xff] }
  0x11   :  { %359 = vmatprep.subr.mxu0 %v935_v0  ;;  %878 = vmatprep.subr.mxu1 %v935_v0  ;;  %v23_v48 = vld [vmem:[%s1749_s0 + $0x48] sm:$0xff]  ;;  %v81_v50 = vld [vmem:[%s1749_s0 + $0x218] sm:$0xff]  ;;  %v22_v51 = vld [vmem:[%s1749_s0 + $0x40] sm:$0xff] }
  0x12   :  { %360 = vmatpush1.msra.mxu0 %v135_v9  ;;  %910 = vmatpush1.msra.mxu1 %v135_v9  ;;  %v25_v52 = vld [vmem:[%s1749_s0 + $0x58] sm:$0xff]  ;;  %v80_v53 = vld [vmem:[%s1749_s0 + $0x210] sm:$0xff]  ;;  %v83_v54 = vld [vmem:[%s1749_s0 + $0x228] sm:$0xff] }
  0x13   :  { %361 = vmatprep.subr.mxu0 %v935_v0  ;;  %879 = vmatprep.subr.mxu1 %v935_v0  ;;  %v24_v55 = vld [vmem:[%s1749_s0 + $0x50] sm:$0xff]  ;;  %v27_v56 = vld [vmem:[%s1749_s0 + $0x68] sm:$0xff]  ;;  %v82_v57 = vld [vmem:[%s1749_s0 + $0x220] sm:$0xff] }
  0x14   :  { %362 = vmatpush1.msra.mxu0 %v134_v10  ;;  %911 = vmatpush1.msra.mxu1 %v134_v10  ;;  %v85_v58 = vld [vmem:[%s1749_s0 + $0x238] sm:$0xff]  ;;  %v26_v59 = vld [vmem:[%s1749_s0 + $0x60] sm:$0xff]  ;;  %v84_v61 = vld [vmem:[%s1749_s0 + $0x230] sm:$0xff] }
  0x15   :  { %363 = vmatprep.subr.mxu0 %v935_v0  ;;  %880 = vmatprep.subr.mxu1 %v935_v0  ;;  %v29_v60 = vld [vmem:[%s1749_s0 + $0x78] sm:$0xff]  ;;  %v87_v62 = vld [vmem:[%s1749_s0 + $0x248] sm:$0xff]  ;;  %v28_v63 = vld [vmem:[%s1749_s0 + $0x70] sm:$0xff] }
  0x16   :  { %364 = vmatpush1.msra.mxu0 %v133_v11  ;;  %912 = vmatpush1.msra.mxu1 %v133_v11  ;;  %v86_v1 = vld [vmem:[%s1749_s0 + $0x240] sm:$0xff]  ;;  %v89_v2 = vld [vmem:[%s1749_s0 + $0x258] sm:$0xff]  ;;  %v88_v5 = vld [vmem:[%s1749_s0 + $0x250] sm:$0xff] }
  0x17   :  { %365 = vmatprep.subr.mxu0 %v935_v0  ;;  %881 = vmatprep.subr.mxu1 %v935_v0  ;;  %v30_v3 = vld [vmem:[%s1749_s0 + $0x80] sm:$0xff]  ;;  %v33_v4 = vld [vmem:[%s1749_s0 + $0x98] sm:$0xff]  ;;  %v91_v6 = vld [vmem:[%s1749_s0 + $0x268] sm:$0xff] }
  0x18   :  { %366 = vmatpush1.msra.mxu0 %v132_v12  ;;  %913 = vmatpush1.msra.mxu1 %v132_v12  ;;  %v32_v7 = vld [vmem:[%s1749_s0 + $0x90] sm:$0xff]  ;;  %v35_v8 = vld [vmem:[%s1749_s0 + $0xa8] sm:$0xff]  ;;  %v90_v9 = vld [vmem:[%s1749_s0 + $0x260] sm:$0xff] }
  0x19   :  { %367 = vmatprep.subr.mxu0 %v935_v0  ;;  %882 = vmatprep.subr.mxu1 %v935_v0  ;;  %v93_v10 = vld [vmem:[%s1749_s0 + $0x278] sm:$0xff]  ;;  %v34_v11 = vld [vmem:[%s1749_s0 + $0xa0] sm:$0xff] }
  0x1a   :  { %368 = vmatpush1.msra.mxu0 %v131_v13  ;;  %914 = vmatpush1.msra.mxu1 %v131_v13  ;;  %v37_v12 = vld [vmem:[%s1749_s0 + $0xb8] sm:$0xff]  ;;  %v92_v13 = vld [vmem:[%s1749_s0 + $0x270] sm:$0xff] }
  0x1b   :  { %369 = vmatprep.subr.mxu0 %v935_v0  ;;  %883 = vmatprep.subr.mxu1 %v935_v0 }
  0x1c   :  { %370 = vmatpush1.msra.mxu0 %v130_v14  ;;  %915 = vmatpush1.msra.mxu1 %v130_v14  ;;  %v95_v14 = vld [vmem:[%s1749_s0 + $0x288] sm:$0xff] }
  0x1d   :  { %371 = vmatprep.subr.mxu0 %v935_v0  ;;  %884 = vmatprep.subr.mxu1 %v935_v0 }
  0x1e   :  { %372 = vmatpush1.msra.mxu0 %v129_v15  ;;  %916 = vmatpush1.msra.mxu1 %v129_v15  ;;  %v36_v15 = vld [vmem:[%s1749_s0 + $0xb0] sm:$0xff] }
  0x1f   :  { %373 = vmatprep.subr.mxu0 %v935_v0  ;;  %885 = vmatprep.subr.mxu1 %v935_v0 }
  0x20   :  { %374 = vmatpush1.msra.mxu0 %v128_v16  ;;  %917 = vmatpush1.msra.mxu1 %v128_v16  ;;  %v39_v16 = vld [vmem:[%s1749_s0 + $0xc8] sm:$0xff] }
  0x21   :  { %375 = vmatprep.subr.mxu0 %v935_v0  ;;  %886 = vmatprep.subr.mxu1 %v935_v0 }
  0x22   :  { %812 = vmatpush2.msk.msra.mxu0 %vm339_vm0, %v159_v17  ;;  %918 = vmatpush2.msk.msra.mxu1 %vm339_vm0, %v159_v17  ;;  %v94_v17 = vld [vmem:[%s1749_s0 + $0x280] sm:$0xff] }
  0x23   :  { %377 = vmatprep.subr.mxu0 %v935_v0  ;;  %887 = vmatprep.subr.mxu1 %v935_v0 }
  0x24   :  { %378 = vmatpush2.msra.mxu0 %v158_v18  ;;  %919 = vmatpush2.msra.mxu1 %v158_v18  ;;  %v97_v18 = vld [vmem:[%s1749_s0 + $0x298] sm:$0xff] }
  0x25   :  { %379 = vmatprep.subr.mxu0 %v935_v0  ;;  %888 = vmatprep.subr.mxu1 %v935_v0 }
  0x26   :  { %380 = vmatpush2.msra.mxu0 %v157_v19  ;;  %920 = vmatpush2.msra.mxu1 %v157_v19  ;;  %v38_v19 = vld [vmem:[%s1749_s0 + $0xc0] sm:$0xff] }
  0x27   :  { %381 = vmatprep.subr.mxu0 %v935_v0  ;;  %889 = vmatprep.subr.mxu1 %v935_v0 }
  0x28   :  { %382 = vmatpush2.msra.mxu0 %v156_v20  ;;  %921 = vmatpush2.msra.mxu1 %v156_v20  ;;  %v41_v20 = vld [vmem:[%s1749_s0 + $0xd8] sm:$0xff] }
  0x29   :  { %383 = vmatprep.subr.mxu0 %v935_v0  ;;  %890 = vmatprep.subr.mxu1 %v935_v0 }
  0x2a   :  { %384 = vmatpush2.msra.mxu0 %v155_v21  ;;  %922 = vmatpush2.msra.mxu1 %v155_v21  ;;  %v96_v21 = vld [vmem:[%s1749_s0 + $0x290] sm:$0xff] }
  0x2b   :  { %385 = vmatprep.subr.mxu0 %v935_v0  ;;  %891 = vmatprep.subr.mxu1 %v935_v0 }
  0x2c   :  { %386 = vmatpush2.msra.mxu0 %v154_v22  ;;  %923 = vmatpush2.msra.mxu1 %v154_v22  ;;  %v99_v22 = vld [vmem:[%s1749_s0 + $0x2a8] sm:$0xff] }
  0x2d   :  { %387 = vmatprep.subr.mxu0 %v935_v0  ;;  %892 = vmatprep.subr.mxu1 %v935_v0 }
  0x2e   :  { %388 = vmatpush2.msra.mxu0 %v153_v23  ;;  %924 = vmatpush2.msra.mxu1 %v153_v23  ;;  %v40_v23 = vld [vmem:[%s1749_s0 + $0xd0] sm:$0xff] }
  0x2f   :  { %389 = vmatprep.subr.mxu0 %v935_v0  ;;  %893 = vmatprep.subr.mxu1 %v935_v0 }
  0x30   :  { %390 = vmatpush2.msra.mxu0 %v152_v24  ;;  %925 = vmatpush2.msra.mxu1 %v152_v24  ;;  %v43_v24 = vld [vmem:[%s1749_s0 + $0xe8] sm:$0xff] }
  0x31   :  { %391 = vmatprep.subr.mxu0 %v935_v0  ;;  %894 = vmatprep.subr.mxu1 %v935_v0 }
  0x32   :  { %392 = vmatpush2.msra.mxu0 %v151_v25  ;;  %926 = vmatpush2.msra.mxu1 %v151_v25  ;;  %v98_v25 = vld [vmem:[%s1749_s0 + $0x2a0] sm:$0xff] }
  0x33   :  { %393 = vmatprep.subr.mxu0 %v935_v0  ;;  %895 = vmatprep.subr.mxu1 %v935_v0 }
  0x34   :  { %394 = vmatpush2.msra.mxu0 %v150_v26  ;;  %927 = vmatpush2.msra.mxu1 %v150_v26  ;;  %v101_v26 = vld [vmem:[%s1749_s0 + $0x2b8] sm:$0xff] }
  0x35   :  { %395 = vmatprep.subr.mxu0 %v935_v0  ;;  %896 = vmatprep.subr.mxu1 %v935_v0 }
  0x36   :  { %396 = vmatpush2.msra.mxu0 %v149_v27  ;;  %928 = vmatpush2.msra.mxu1 %v149_v27  ;;  %v42_v27 = vld [vmem:[%s1749_s0 + $0xe0] sm:$0xff] }
  0x37   :  { %397 = vmatprep.subr.mxu0 %v935_v0  ;;  %897 = vmatprep.subr.mxu1 %v935_v0 }
  0x38   :  { %398 = vmatpush2.msra.mxu0 %v148_v28  ;;  %929 = vmatpush2.msra.mxu1 %v148_v28  ;;  %v45_v28 = vld [vmem:[%s1749_s0 + $0xf8] sm:$0xff] }
  0x39   :  { %399 = vmatprep.subr.mxu0 %v935_v0  ;;  %898 = vmatprep.subr.mxu1 %v935_v0 }
  0x3a   :  { %400 = vmatpush2.msra.mxu0 %v147_v29  ;;  %930 = vmatpush2.msra.mxu1 %v147_v29  ;;  %v100_v29 = vld [vmem:[%s1749_s0 + $0x2b0] sm:$0xff] }
  0x3b   :  { %401 = vmatprep.subr.mxu0 %v935_v0  ;;  %899 = vmatprep.subr.mxu1 %v935_v0 }
  0x3c   :  { %402 = vmatpush2.msra.mxu0 %v146_v30  ;;  %931 = vmatpush2.msra.mxu1 %v146_v30  ;;  %v103_v30 = vld [vmem:[%s1749_s0 + $0x2c8] sm:$0xff] }
  0x3d   :  { %403 = vmatprep.subr.mxu0 %v935_v0  ;;  %900 = vmatprep.subr.mxu1 %v935_v0 }
  0x3e   :  { %404 = vmatpush2.msra.mxu0 %v145_v31  ;;  %932 = vmatpush2.msra.mxu1 %v145_v31  ;;  %v44_v31 = vld [vmem:[%s1749_s0 + $0xf0] sm:$0xff] }
  0x3f   :  { %405 = vmatprep.subr.mxu0 %v935_v0  ;;  %813 = vmatprep.mubr.msk.f32.mxu0 %vm167_vm1, %v15_v32  ;;  %v47_v32 = vld [vmem:[%s1749_s0 + $0x108] sm:$0xff] }
  0x40   :  { %406 = vmatpush2.msra.mxu0 %v144_v33  ;;  %901 = vmatprep.subr.mxu1 %v935_v0  ;;  %v31_v0 = vld [vmem:[%s1749_s0 + $0x88] sm:$0xff] }
  0x41   :  { %408 = vmatmul.mubr.f32.vlgmr.msra.gmra.mxu0 %v14_v34  ;;  %933 = vmatpush2.msra.mxu1 %v144_v33  ;;  %v102_v33 = vld [vmem:[%s1749_s0 + $0x2c0] sm:$0xff]  ;;  %v105_v34 = vld [vmem:[%s1749_s0 + $0x2d8] sm:$0xff] }
  0x42   :  { %842 = vmatprep.mubr.msk.f32.mxu1 %vm167_vm1, %v73_v35  ;;  %814 = vmatprep.mubr.msk.f32.mxu0 %vm167_vm1, %v17_v36  ;;  %v46_v35 = vld [vmem:[%s1749_s0 + $0x100] sm:$0xff]  ;;  %v49_v36 = vld [vmem:[%s1749_s0 + $0x118] sm:$0xff] }
  0x43   :  { %553 = vmatmul.mubr.f32.vlgmr.msra.gmra.mxu1 %v72_v37  ;;  %v104_v37 = vld [vmem:[%s1749_s0 + $0x2d0] sm:$0xff] }
  0x44   :  { %843 = vmatprep.mubr.msk.f32.mxu1 %vm167_vm1, %v75_v38  ;;  %v107_v38 = vld [vmem:[%s1749_s0 + $0x2e8] sm:$0xff] }
  0x45   :  { %413 = vmatmul.mubr.f32.gmra.mxu0 %v16_v39  ;;  %v48_v39 = vld [vmem:[%s1749_s0 + $0x110] sm:$0xff] }
  0x46   :  { %815 = vmatprep.mubr.msk.f32.mxu0 %vm167_vm1, %v19_v40  ;;  %v51_v40 = vld [vmem:[%s1749_s0 + $0x128] sm:$0xff] }
  0x47   :  { %558 = vmatmul.mubr.f32.gmra.mxu1 %v74_v41  ;;  %v106_v41 = vld [vmem:[%s1749_s0 + $0x2e0] sm:$0xff] }
  0x48   :  { %844 = vmatprep.mubr.msk.f32.mxu1 %vm167_vm1, %v77_v42  ;;  %v109_v42 = vld [vmem:[%s1749_s0 + $0x2f8] sm:$0xff] }
  0x49   :  { %418 = vmatmul.mubr.f32.gmra.mxu0 %v18_v43  ;;  %v50_v43 = vld [vmem:[%s1749_s0 + $0x120] sm:$0xff] }
  0x4a   :  { %816 = vmatprep.mubr.msk.f32.mxu0 %vm167_vm1, %v21_v44  ;;  %v53_v44 = vld [vmem:[%s1749_s0 + $0x138] sm:$0xff] }
  0x4b   :  { %563 = vmatmul.mubr.f32.gmra.mxu1 %v76_v45  ;;  %v108_v45 = vld [vmem:[%s1749_s0 + $0x2f0] sm:$0xff] }
  0x4c   :  { %845 = vmatprep.mubr.msk.f32.mxu1 %vm167_vm1, %v79_v46  ;;  %v111_v46 = vld [vmem:[%s1749_s0 + $0x308] sm:$0xff] }
  0x4d   :  { %423 = vmatmul.mubr.f32.gmra.mxu0 %v20_v47  ;;  %v52_v47 = vld [vmem:[%s1749_s0 + $0x130] sm:$0xff] }
  0x4e   :  { %817 = vmatprep.mubr.msk.f32.mxu0 %vm167_vm1, %v23_v48  ;;  %v55_v48 = vld [vmem:[%s1749_s0 + $0x148] sm:$0xff] }
  0x4f   :  { %568 = vmatmul.mubr.f32.gmra.mxu1 %v78_v49  ;;  %v110_v49 = vld [vmem:[%s1749_s0 + $0x300] sm:$0xff] }
  0x50   :  { %846 = vmatprep.mubr.msk.f32.mxu1 %vm167_vm1, %v81_v50  ;;  %v113_v50 = vld [vmem:[%s1749_s0 + $0x318] sm:$0xff] }
  0x51   :  { %428 = vmatmul.mubr.f32.gmra.mxu0 %v22_v51  ;;  %v54_v51 = vld [vmem:[%s1749_s0 + $0x140] sm:$0xff] }
  0x52   :  { %818 = vmatprep.mubr.msk.f32.mxu0 %vm167_vm1, %v25_v52  ;;  %v57_v52 = vld [vmem:[%s1749_s0 + $0x158] sm:$0xff] }
  0x53   :  { %573 = vmatmul.mubr.f32.gmra.mxu1 %v80_v53  ;;  %v112_v53 = vld [vmem:[%s1749_s0 + $0x310] sm:$0xff] }
  0x54   :  { %847 = vmatprep.mubr.msk.f32.mxu1 %vm167_vm1, %v83_v54  ;;  %v115_v54 = vld [vmem:[%s1749_s0 + $0x328] sm:$0xff] }
  0x55   :  { %433 = vmatmul.mubr.f32.gmra.mxu0 %v24_v55  ;;  %v56_v55 = vld [vmem:[%s1749_s0 + $0x150] sm:$0xff] }
  0x56   :  { %819 = vmatprep.mubr.msk.f32.mxu0 %vm167_vm1, %v27_v56  ;;  %v59_v56 = vld [vmem:[%s1749_s0 + $0x168] sm:$0xff] }
  0x57   :  { %578 = vmatmul.mubr.f32.gmra.mxu1 %v82_v57  ;;  %v114_v57 = vld [vmem:[%s1749_s0 + $0x320] sm:$0xff] }
  0x58   :  { %848 = vmatprep.mubr.msk.f32.mxu1 %vm167_vm1, %v85_v58  ;;  %v117_v58 = vld [vmem:[%s1749_s0 + $0x338] sm:$0xff] }
  0x59   :  { %438 = vmatmul.mubr.f32.gmra.mxu0 %v26_v59  ;;  %v58_v59 = vld [vmem:[%s1749_s0 + $0x160] sm:$0xff] }
  0x5a   :  { %820 = vmatprep.mubr.msk.f32.mxu0 %vm167_vm1, %v29_v60  ;;  %v61_v60 = vld [vmem:[%s1749_s0 + $0x178] sm:$0xff] }
  0x5b   :  { %583 = vmatmul.mubr.f32.gmra.mxu1 %v84_v61  ;;  %v116_v61 = vld [vmem:[%s1749_s0 + $0x330] sm:$0xff] }
  0x5c   :  { %849 = vmatprep.mubr.msk.f32.mxu1 %vm167_vm1, %v87_v62  ;;  %v119_v62 = vld [vmem:[%s1749_s0 + $0x348] sm:$0xff] }
  0x5d   :  { %443 = vmatmul.mubr.f32.gmra.mxu0 %v28_v63  ;;  %v60_v63 = vld [vmem:[%s1749_s0 + $0x170] sm:$0xff] }
  0x5e   :  { %821 = vmatprep.mubr.msk.f32.mxu0 %vm167_vm1, %v31_v0  ;;  %v63_v0 = vld [vmem:[%s1749_s0 + $0x188] sm:$0xff] }
  0x5f   :  { %588 = vmatmul.mubr.f32.gmra.mxu1 %v86_v1  ;;  %v118_v1 = vld [vmem:[%s1749_s0 + $0x340] sm:$0xff] }
  0x60   :  { %850 = vmatprep.mubr.msk.f32.mxu1 %vm167_vm1, %v89_v2  ;;  %v121_v2 = vld [vmem:[%s1749_s0 + $0x358] sm:$0xff] }
  0x61   :  { %448 = vmatmul.mubr.f32.gmra.mxu0 %v30_v3  ;;  %v62_v3 = vld [vmem:[%s1749_s0 + $0x180] sm:$0xff] }
  0x62   :  { %822 = vmatprep.mubr.msk.f32.mxu0 %vm167_vm1, %v33_v4  ;;  %v65_v4 = vld [vmem:[%s1749_s0 + $0x198] sm:$0xff] }
  0x63   :  { %593 = vmatmul.mubr.f32.gmra.mxu1 %v88_v5  ;;  %v120_v5 = vld [vmem:[%s1749_s0 + $0x350] sm:$0xff] }
  0x64   :  { %851 = vmatprep.mubr.msk.f32.mxu1 %vm167_vm1, %v91_v6  ;;  %v123_v6 = vld [vmem:[%s1749_s0 + $0x368] sm:$0xff] }
  0x65   :  { %453 = vmatmul.mubr.f32.gmra.mxu0 %v32_v7  ;;  %v64_v7 = vld [vmem:[%s1749_s0 + $0x190] sm:$0xff] }
  0x66   :  { %823 = vmatprep.mubr.msk.f32.mxu0 %vm167_vm1, %v35_v8  ;;  %v67_v8 = vld [vmem:[%s1749_s0 + $0x1a8] sm:$0xff] }
  0x67   :  { %598 = vmatmul.mubr.f32.gmra.mxu1 %v90_v9  ;;  %v122_v9 = vld [vmem:[%s1749_s0 + $0x360] sm:$0xff] }
  0x68   :  { %852 = vmatprep.mubr.msk.f32.mxu1 %vm167_vm1, %v93_v10  ;;  %v125_v10 = vld [vmem:[%s1749_s0 + $0x378] sm:$0xff] }
  0x69   :  { %458 = vmatmul.mubr.f32.gmra.mxu0 %v34_v11  ;;  %v66_v11 = vld [vmem:[%s1749_s0 + $0x1a0] sm:$0xff] }
  0x6a   :  { %824 = vmatprep.mubr.msk.f32.mxu0 %vm167_vm1, %v37_v12  ;;  %v69_v12 = vld [vmem:[%s1749_s0 + $0x1b8] sm:$0xff] }
  0x6b   :  { %603 = vmatmul.mubr.f32.gmra.mxu1 %v92_v13  ;;  %v124_v13 = vld [vmem:[%s1749_s0 + $0x370] sm:$0xff] }
  0x6c   :  { %853 = vmatprep.mubr.msk.f32.mxu1 %vm167_vm1, %v95_v14  ;;  %v127_v14 = vld [vmem:[%s1749_s0 + $0x388] sm:$0x3] }
  0x6d   :  { %463 = vmatmul.mubr.f32.gmra.mxu0 %v36_v15  ;;  %v68_v15 = vld [vmem:[%s1749_s0 + $0x1b0] sm:$0xff] }
  0x6e   :  { %825 = vmatprep.mubr.msk.f32.mxu0 %vm167_vm1, %v39_v16  ;;  %v71_v16 = vld [vmem:[%s1749_s0 + $0x1c8] sm:$0xff] }
  0x6f   :  { %608 = vmatmul.mubr.f32.gmra.mxu1 %v94_v17  ;;  %v126_v17 = vld [vmem:[%s1749_s0 + $0x380] sm:$0x3] }
  0x70   :  { %854 = vmatprep.mubr.msk.f32.mxu1 %vm167_vm1, %v97_v18  ;;  %v70_v18 = vld [vmem:[%s1749_s0 + $0x1c0] sm:$0xff] }
  0x71   :  { %468 = vmatmul.mubr.f32.gmra.mxu0 %v38_v19  ;;  %v1518_v19 = vld [vmem:[%s1750_s2] ss:$0 sm:$0xff] }
  0x72   :  { %826 = vmatprep.mubr.msk.f32.mxu0 %vm167_vm1, %v41_v20 }
  0x73   :  { %613 = vmatmul.mubr.f32.gmra.mxu1 %v96_v21 }
  0x74   :  { %855 = vmatprep.mubr.msk.f32.mxu1 %vm167_vm1, %v99_v22 }
  0x75   :  { %473 = vmatmul.mubr.f32.gmra.mxu0 %v40_v23 }
  0x76   :  { %827 = vmatprep.mubr.msk.f32.mxu0 %vm167_vm1, %v43_v24 }
  0x77   :  { %618 = vmatmul.mubr.f32.gmra.mxu1 %v98_v25 }
  0x78   :  { %856 = vmatprep.mubr.msk.f32.mxu1 %vm167_vm1, %v101_v26 }
  0x79   :  { %478 = vmatmul.mubr.f32.gmra.mxu0 %v42_v27 }
  0x7a   :  { %828 = vmatprep.mubr.msk.f32.mxu0 %vm167_vm1, %v45_v28 }
  0x7b   :  { %623 = vmatmul.mubr.f32.gmra.mxu1 %v100_v29 }
  0x7c   :  { %857 = vmatprep.mubr.msk.f32.mxu1 %vm167_vm1, %v103_v30 }
  0x7d   :  { %483 = vmatmul.mubr.f32.gmra.mxu0 %v44_v31 }
  0x7e   :  { %829 = vmatprep.mubr.msk.f32.mxu0 %vm167_vm1, %v47_v32 }
  0x7f   :  { %628 = vmatmul.mubr.f32.gmra.mxu1 %v102_v33 }
  0x80   :  { %858 = vmatprep.mubr.msk.f32.mxu1 %vm167_vm1, %v105_v34 }
  0x81   :  { %488 = vmatmul.mubr.f32.gmra.mxu0 %v46_v35 }
  0x82   :  { %830 = vmatprep.mubr.msk.f32.mxu0 %vm167_vm1, %v49_v36 }
  0x83   :  { %633 = vmatmul.mubr.f32.gmra.mxu1 %v104_v37 }
  0x84   :  { %859 = vmatprep.mubr.msk.f32.mxu1 %vm167_vm1, %v107_v38 }
  0x85   :  { %493 = vmatmul.mubr.f32.gmra.mxu0 %v48_v39 }
  0x86   :  { %831 = vmatprep.mubr.msk.f32.mxu0 %vm167_vm1, %v51_v40 }
  0x87   :  { %638 = vmatmul.mubr.f32.gmra.mxu1 %v106_v41 }
  0x88   :  { %860 = vmatprep.mubr.msk.f32.mxu1 %vm167_vm1, %v109_v42 }
  0x89   :  { %498 = vmatmul.mubr.f32.gmra.mxu0 %v50_v43 }
  0x8a   :  { %832 = vmatprep.mubr.msk.f32.mxu0 %vm167_vm1, %v53_v44 }
  0x8b   :  { %643 = vmatmul.mubr.f32.gmra.mxu1 %v108_v45 }
  0x8c   :  { %861 = vmatprep.mubr.msk.f32.mxu1 %vm167_vm1, %v111_v46 }
  0x8d   :  { %503 = vmatmul.mubr.f32.gmra.mxu0 %v52_v47 }
  0x8e   :  { %833 = vmatprep.mubr.msk.f32.mxu0 %vm167_vm1, %v55_v48 }
  0x8f   :  { %648 = vmatmul.mubr.f32.gmra.mxu1 %v110_v49 }
  0x90   :  { %862 = vmatprep.mubr.msk.f32.mxu1 %vm167_vm1, %v113_v50 }
  0x91   :  { %508 = vmatmul.mubr.f32.gmra.mxu0 %v54_v51 }
  0x92   :  { %834 = vmatprep.mubr.msk.f32.mxu0 %vm167_vm1, %v57_v52 }
  0x93   :  { %653 = vmatmul.mubr.f32.gmra.mxu1 %v112_v53 }
  0x94   :  { %863 = vmatprep.mubr.msk.f32.mxu1 %vm167_vm1, %v115_v54 }
  0x95   :  { %513 = vmatmul.mubr.f32.gmra.mxu0 %v56_v55 }
  0x96   :  { %835 = vmatprep.mubr.msk.f32.mxu0 %vm167_vm1, %v59_v56 }
  0x97   :  { %658 = vmatmul.mubr.f32.gmra.mxu1 %v114_v57 }
  0x98   :  { %864 = vmatprep.mubr.msk.f32.mxu1 %vm167_vm1, %v117_v58 }
  0x99   :  { %518 = vmatmul.mubr.f32.gmra.mxu0 %v58_v59 }
  0x9a   :  { %836 = vmatprep.mubr.msk.f32.mxu0 %vm167_vm1, %v61_v60 }
  0x9b   :  { %663 = vmatmul.mubr.f32.gmra.mxu1 %v116_v61 }
  0x9c   :  { %865 = vmatprep.mubr.msk.f32.mxu1 %vm167_vm1, %v119_v62 }
  0x9d   :  { %523 = vmatmul.mubr.f32.gmra.mxu0 %v60_v63 }
  0x9e   :  { %837 = vmatprep.mubr.msk.f32.mxu0 %vm167_vm1, %v63_v0 }
  0x9f   :  { %668 = vmatmul.mubr.f32.gmra.mxu1 %v118_v1 }
  0xa0   :  { %866 = vmatprep.mubr.msk.f32.mxu1 %vm167_vm1, %v121_v2 }
  0xa1   :  { %528 = vmatmul.mubr.f32.gmra.mxu0 %v62_v3 }
  0xa2   :  { %838 = vmatprep.mubr.msk.f32.mxu0 %vm167_vm1, %v65_v4 }
  0xa3   :  { %673 = vmatmul.mubr.f32.gmra.mxu1 %v120_v5 }
  0xa4   :  { %867 = vmatprep.mubr.msk.f32.mxu1 %vm167_vm1, %v123_v6 }
  0xa5   :  { %533 = vmatmul.mubr.f32.gmra.mxu0 %v64_v7 }
  0xa6   :  { %839 = vmatprep.mubr.msk.f32.mxu0 %vm167_vm1, %v67_v8 }
  0xa7   :  { %678 = vmatmul.mubr.f32.gmra.mxu1 %v122_v9 }
  0xa8   :  { %868 = vmatprep.mubr.msk.f32.mxu1 %vm167_vm1, %v125_v10 }
  0xa9   :  { %538 = vmatmul.mubr.f32.gmra.mxu0 %v66_v11 }
  0xaa   :  { %840 = vmatprep.mubr.msk.f32.mxu0 %vm167_vm1, %v69_v12 }
  0xab   :  { %683 = vmatmul.mubr.f32.gmra.mxu1 %v124_v13 }
  0xac   :  { %869 = vmatprep.mubr.msk.f32.mxu1 %vm167_vm1, %v127_v14 }
  0xad   :  { %543 = vmatmul.mubr.f32.gmra.mxu0 %v68_v15 }
  0xae   :  { %841 = vmatprep.mubr.msk.f32.mxu0 %vm167_vm1, %v71_v16 }
  0xaf   :  { %688 = vmatmul.mubr.f32.gmra.mxu1 %v126_v17 }
  0xb1   :  { %548 = vmatmul.mubr.f32.gmra.mxu0 %v70_v18 }
 0x101   :  { %v409_v20 = vpop.f32.mrf.mxu0 }
 0x102   :  { %v410_v21 = vadd.f32 %v1518_v19, %v409_v20 }
 0x103   :  { %v411_v22 = vpop.f32.mrf.mxu0  ;;  %v554_v23 = vpop.f32.mrf.mxu1 }
 0x104   :  { %v693_v24 = vmax.f32 %v410_v21, 0.0  ;;  %v555_v25 = vadd.f32 %v1518_v19, %v554_v23 }
 0x105   :  { %v414_v26 = vpop.f32.mrf.mxu0  ;;  %v556_v27 = vpop.f32.mrf.mxu1 }
 0x106   :  { %750 = vst [vmem:[%s1751_s3] sm:$0xff] %v693_v24  ;;  %v722_v28 = vmax.f32 %v555_v25, 0.0  ;;  %v415_v29 = vadd.f32 %v1518_v19, %v414_v26 }
 0x107   :  { %v416_v30 = vpop.f32.mrf.mxu0  ;;  %v559_v31 = vpop.f32.mrf.mxu1 }
 0x108   :  { %779 = vst [vmem:[%s1751_s3 + $0xe8] sm:$0xff] %v722_v28  ;;  %v694_v32 = vmax.f32 %v415_v29, 0.0  ;;  %v560_v33 = vadd.f32 %v1518_v19, %v559_v31 }
 0x109   :  { %v419_v34 = vpop.f32.mrf.mxu0  ;;  %v561_v35 = vpop.f32.mrf.mxu1 }
 0x10a   :  { %751 = vst [vmem:[%s1751_s3 + $0x8] sm:$0xff] %v694_v32  ;;  %v723_v36 = vmax.f32 %v560_v33, 0.0  ;;  %v420_v37 = vadd.f32 %v1518_v19, %v419_v34 }
 0x10b   :  { %v421_v38 = vpop.f32.mrf.mxu0  ;;  %v564_v39 = vpop.f32.mrf.mxu1 }
 0x10c   :  { %780 = vst [vmem:[%s1751_s3 + $0xf0] sm:$0xff] %v723_v36  ;;  %v695_v40 = vmax.f32 %v420_v37, 0.0  ;;  %v565_v41 = vadd.f32 %v1518_v19, %v564_v39 }
 0x10d   :  { %v424_v42 = vpop.f32.mrf.mxu0  ;;  %v566_v43 = vpop.f32.mrf.mxu1 }
 0x10e   :  { %752 = vst [vmem:[%s1751_s3 + $0x10] sm:$0xff] %v695_v40  ;;  %v724_v44 = vmax.f32 %v565_v41, 0.0  ;;  %v425_v45 = vadd.f32 %v1518_v19, %v424_v42 }
 0x10f   :  { %v426_v46 = vpop.f32.mrf.mxu0  ;;  %v569_v47 = vpop.f32.mrf.mxu1 }
 0x110   :  { %781 = vst [vmem:[%s1751_s3 + $0xf8] sm:$0xff] %v724_v44  ;;  %v696_v48 = vmax.f32 %v425_v45, 0.0  ;;  %v570_v49 = vadd.f32 %v1518_v19, %v569_v47 }
 0x111   :  { %v429_v50 = vpop.f32.mrf.mxu0  ;;  %v571_v51 = vpop.f32.mrf.mxu1 }
 0x112   :  { %753 = vst [vmem:[%s1751_s3 + $0x18] sm:$0xff] %v696_v48  ;;  %v725_v52 = vmax.f32 %v570_v49, 0.0  ;;  %v430_v53 = vadd.f32 %v1518_v19, %v429_v50 }
 0x113   :  { %v431_v54 = vpop.f32.mrf.mxu0  ;;  %v574_v55 = vpop.f32.mrf.mxu1 }
 0x114   :  { %782 = vst [vmem:[%s1751_s3 + $0x100] sm:$0xff] %v725_v52  ;;  %v697_v56 = vmax.f32 %v430_v53, 0.0  ;;  %v575_v57 = vadd.f32 %v1518_v19, %v574_v55 }
 0x115   :  { %v434_v58 = vpop.f32.mrf.mxu0  ;;  %v576_v59 = vpop.f32.mrf.mxu1 }
 0x116   :  { %754 = vst [vmem:[%s1751_s3 + $0x20] sm:$0xff] %v697_v56  ;;  %v726_v60 = vmax.f32 %v575_v57, 0.0  ;;  %v435_v61 = vadd.f32 %v1518_v19, %v434_v58 }
 0x117   :  { %v436_v62 = vpop.f32.mrf.mxu0  ;;  %v579_v63 = vpop.f32.mrf.mxu1 }
 0x118   :  { %783 = vst [vmem:[%s1751_s3 + $0x108] sm:$0xff] %v726_v60  ;;  %v698_v0 = vmax.f32 %v435_v61, 0.0  ;;  %v580_v1 = vadd.f32 %v1518_v19, %v579_v63 }
 0x119   :  { %v439_v2 = vpop.f32.mrf.mxu0  ;;  %v581_v3 = vpop.f32.mrf.mxu1 }
 0x11a   :  { %755 = vst [vmem:[%s1751_s3 + $0x28] sm:$0xff] %v698_v0  ;;  %v727_v4 = vmax.f32 %v580_v1, 0.0  ;;  %v440_v5 = vadd.f32 %v1518_v19, %v439_v2 }
 0x11b   :  { %v441_v6 = vpop.f32.mrf.mxu0  ;;  %v584_v7 = vpop.f32.mrf.mxu1 }
 0x11c   :  { %784 = vst [vmem:[%s1751_s3 + $0x110] sm:$0xff] %v727_v4  ;;  %v699_v8 = vmax.f32 %v440_v5, 0.0  ;;  %v585_v9 = vadd.f32 %v1518_v19, %v584_v7 }
 0x11d   :  { %v444_v10 = vpop.f32.mrf.mxu0  ;;  %v586_v11 = vpop.f32.mrf.mxu1 }
 0x11e   :  { %756 = vst [vmem:[%s1751_s3 + $0x30] sm:$0xff] %v699_v8  ;;  %v728_v12 = vmax.f32 %v585_v9, 0.0  ;;  %v445_v13 = vadd.f32 %v1518_v19, %v444_v10 }
 0x11f   :  { %v446_v14 = vpop.f32.mrf.mxu0  ;;  %v589_v15 = vpop.f32.mrf.mxu1 }
 0x120   :  { %785 = vst [vmem:[%s1751_s3 + $0x118] sm:$0xff] %v728_v12  ;;  %v700_v16 = vmax.f32 %v445_v13, 0.0  ;;  %v590_v17 = vadd.f32 %v1518_v19, %v589_v15 }
 0x121   :  { %v449_v18 = vpop.f32.mrf.mxu0  ;;  %v591_v20 = vpop.f32.mrf.mxu1 }
 0x122   :  { %757 = vst [vmem:[%s1751_s3 + $0x38] sm:$0xff] %v700_v16  ;;  %v729_v21 = vmax.f32 %v590_v17, 0.0  ;;  %v450_v22 = vadd.f32 %v1518_v19, %v449_v18 }
 0x123   :  { %v451_v23 = vpop.f32.mrf.mxu0  ;;  %v594_v24 = vpop.f32.mrf.mxu1 }
 0x124   :  { %786 = vst [vmem:[%s1751_s3 + $0x120] sm:$0xff] %v729_v21  ;;  %v701_v25 = vmax.f32 %v450_v22, 0.0  ;;  %v595_v26 = vadd.f32 %v1518_v19, %v594_v24 }
 0x125   :  { %v454_v27 = vpop.f32.mrf.mxu0  ;;  %v596_v28 = vpop.f32.mrf.mxu1 }
 0x126   :  { %758 = vst [vmem:[%s1751_s3 + $0x40] sm:$0xff] %v701_v25  ;;  %v730_v29 = vmax.f32 %v595_v26, 0.0  ;;  %v455_v30 = vadd.f32 %v1518_v19, %v454_v27 }
 0x127   :  { %v456_v31 = vpop.f32.mrf.mxu0  ;;  %v599_v32 = vpop.f32.mrf.mxu1 }
 0x128   :  { %787 = vst [vmem:[%s1751_s3 + $0x128] sm:$0xff] %v730_v29  ;;  %v702_v33 = vmax.f32 %v455_v30, 0.0  ;;  %v600_v34 = vadd.f32 %v1518_v19, %v599_v32 }
 0x129   :  { %v459_v35 = vpop.f32.mrf.mxu0  ;;  %v601_v36 = vpop.f32.mrf.mxu1 }
 0x12a   :  { %759 = vst [vmem:[%s1751_s3 + $0x48] sm:$0xff] %v702_v33  ;;  %v731_v37 = vmax.f32 %v600_v34, 0.0  ;;  %v460_v38 = vadd.f32 %v1518_v19, %v459_v35 }
 0x12b   :  { %v461_v39 = vpop.f32.mrf.mxu0  ;;  %v604_v40 = vpop.f32.mrf.mxu1 }
 0x12c   :  { %788 = vst [vmem:[%s1751_s3 + $0x130] sm:$0xff] %v731_v37  ;;  %v703_v41 = vmax.f32 %v460_v38, 0.0  ;;  %v605_v42 = vadd.f32 %v1518_v19, %v604_v40 }
 0x12d   :  { %v464_v43 = vpop.f32.mrf.mxu0  ;;  %v606_v44 = vpop.f32.mrf.mxu1 }
 0x12e   :  { %760 = vst [vmem:[%s1751_s3 + $0x50] sm:$0xff] %v703_v41  ;;  %v732_v45 = vmax.f32 %v605_v42, 0.0  ;;  %v465_v46 = vadd.f32 %v1518_v19, %v464_v43 }
 0x12f   :  { %v466_v47 = vpop.f32.mrf.mxu0  ;;  %v609_v48 = vpop.f32.mrf.mxu1 }
 0x130   :  { %789 = vst [vmem:[%s1751_s3 + $0x138] sm:$0xff] %v732_v45  ;;  %v704_v49 = vmax.f32 %v465_v46, 0.0  ;;  %v610_v50 = vadd.f32 %v1518_v19, %v609_v48 }
 0x131   :  { %v469_v51 = vpop.f32.mrf.mxu0  ;;  %v611_v52 = vpop.f32.mrf.mxu1 }
 0x132   :  { %761 = vst [vmem:[%s1751_s3 + $0x58] sm:$0xff] %v704_v49  ;;  %v733_v53 = vmax.f32 %v610_v50, 0.0  ;;  %v470_v54 = vadd.f32 %v1518_v19, %v469_v51 }
 0x133   :  { %v471_v55 = vpop.f32.mrf.mxu0  ;;  %v614_v56 = vpop.f32.mrf.mxu1 }
 0x134   :  { %790 = vst [vmem:[%s1751_s3 + $0x140] sm:$0xff] %v733_v53  ;;  %v705_v57 = vmax.f32 %v470_v54, 0.0  ;;  %v615_v58 = vadd.f32 %v1518_v19, %v614_v56 }
 0x135   :  { %v474_v59 = vpop.f32.mrf.mxu0  ;;  %v616_v60 = vpop.f32.mrf.mxu1 }
 0x136   :  { %762 = vst [vmem:[%s1751_s3 + $0x60] sm:$0xff] %v705_v57  ;;  %v734_v61 = vmax.f32 %v615_v58, 0.0  ;;  %v475_v62 = vadd.f32 %v1518_v19, %v474_v59 }
 0x137   :  { %v476_v63 = vpop.f32.mrf.mxu0  ;;  %v619_v0 = vpop.f32.mrf.mxu1 }
 0x138   :  { %791 = vst [vmem:[%s1751_s3 + $0x148] sm:$0xff] %v734_v61  ;;  %v706_v1 = vmax.f32 %v475_v62, 0.0  ;;  %v620_v2 = vadd.f32 %v1518_v19, %v619_v0 }
 0x139   :  { %v479_v3 = vpop.f32.mrf.mxu0  ;;  %v621_v4 = vpop.f32.mrf.mxu1 }
 0x13a   :  { %763 = vst [vmem:[%s1751_s3 + $0x68] sm:$0xff] %v706_v1  ;;  %v735_v5 = vmax.f32 %v620_v2, 0.0  ;;  %v480_v6 = vadd.f32 %v1518_v19, %v479_v3 }
 0x13b   :  { %v481_v7 = vpop.f32.mrf.mxu0  ;;  %v624_v8 = vpop.f32.mrf.mxu1 }
 0x13c   :  { %792 = vst [vmem:[%s1751_s3 + $0x150] sm:$0xff] %v735_v5  ;;  %v707_v9 = vmax.f32 %v480_v6, 0.0  ;;  %v625_v10 = vadd.f32 %v1518_v19, %v624_v8 }
 0x13d   :  { %v484_v11 = vpop.f32.mrf.mxu0  ;;  %v626_v12 = vpop.f32.mrf.mxu1 }
 0x13e   :  { %764 = vst [vmem:[%s1751_s3 + $0x70] sm:$0xff] %v707_v9  ;;  %v736_v13 = vmax.f32 %v625_v10, 0.0  ;;  %v485_v14 = vadd.f32 %v1518_v19, %v484_v11 }
 0x13f   :  { %v486_v15 = vpop.f32.mrf.mxu0  ;;  %v629_v16 = vpop.f32.mrf.mxu1 }
 0x140   :  { %793 = vst [vmem:[%s1751_s3 + $0x158] sm:$0xff] %v736_v13  ;;  %v708_v17 = vmax.f32 %v485_v14, 0.0  ;;  %v630_v18 = vadd.f32 %v1518_v19, %v629_v16 }
 0x141   :  { %v489_v20 = vpop.f32.mrf.mxu0  ;;  %v631_v21 = vpop.f32.mrf.mxu1 }
 0x142   :  { %765 = vst [vmem:[%s1751_s3 + $0x78] sm:$0xff] %v708_v17  ;;  %v737_v22 = vmax.f32 %v630_v18, 0.0  ;;  %v490_v23 = vadd.f32 %v1518_v19, %v489_v20 }
 0x143   :  { %v491_v24 = vpop.f32.mrf.mxu0  ;;  %v634_v25 = vpop.f32.mrf.mxu1 }
 0x144   :  { %794 = vst [vmem:[%s1751_s3 + $0x160] sm:$0xff] %v737_v22  ;;  %v709_v26 = vmax.f32 %v490_v23, 0.0  ;;  %v635_v27 = vadd.f32 %v1518_v19, %v634_v25 }
 0x145   :  { %v494_v28 = vpop.f32.mrf.mxu0  ;;  %v636_v29 = vpop.f32.mrf.mxu1 }
 0x146   :  { %766 = vst [vmem:[%s1751_s3 + $0x80] sm:$0xff] %v709_v26  ;;  %v738_v30 = vmax.f32 %v635_v27, 0.0  ;;  %v495_v31 = vadd.f32 %v1518_v19, %v494_v28 }
 0x147   :  { %v496_v32 = vpop.f32.mrf.mxu0  ;;  %v639_v33 = vpop.f32.mrf.mxu1 }
 0x148   :  { %795 = vst [vmem:[%s1751_s3 + $0x168] sm:$0xff] %v738_v30  ;;  %v710_v34 = vmax.f32 %v495_v31, 0.0  ;;  %v640_v35 = vadd.f32 %v1518_v19, %v639_v33 }
 0x149   :  { %v499_v36 = vpop.f32.mrf.mxu0  ;;  %v641_v37 = vpop.f32.mrf.mxu1 }
 0x14a   :  { %767 = vst [vmem:[%s1751_s3 + $0x88] sm:$0xff] %v710_v34  ;;  %v739_v38 = vmax.f32 %v640_v35, 0.0  ;;  %v500_v39 = vadd.f32 %v1518_v19, %v499_v36 }
 0x14b   :  { %v501_v40 = vpop.f32.mrf.mxu0  ;;  %v644_v41 = vpop.f32.mrf.mxu1 }
 0x14c   :  { %796 = vst [vmem:[%s1751_s3 + $0x170] sm:$0xff] %v739_v38  ;;  %v711_v42 = vmax.f32 %v500_v39, 0.0  ;;  %v645_v43 = vadd.f32 %v1518_v19, %v644_v41 }
 0x14d   :  { %v504_v44 = vpop.f32.mrf.mxu0  ;;  %v646_v45 = vpop.f32.mrf.mxu1 }
 0x14e   :  { %768 = vst [vmem:[%s1751_s3 + $0x90] sm:$0xff] %v711_v42  ;;  %v740_v46 = vmax.f32 %v645_v43, 0.0  ;;  %v505_v47 = vadd.f32 %v1518_v19, %v504_v44 }
 0x14f   :  { %v506_v48 = vpop.f32.mrf.mxu0  ;;  %v649_v49 = vpop.f32.mrf.mxu1 }
 0x150   :  { %797 = vst [vmem:[%s1751_s3 + $0x178] sm:$0xff] %v740_v46  ;;  %v712_v50 = vmax.f32 %v505_v47, 0.0  ;;  %v650_v51 = vadd.f32 %v1518_v19, %v649_v49 }
 0x151   :  { %v509_v52 = vpop.f32.mrf.mxu0  ;;  %v651_v53 = vpop.f32.mrf.mxu1 }
 0x152   :  { %769 = vst [vmem:[%s1751_s3 + $0x98] sm:$0xff] %v712_v50  ;;  %v741_v54 = vmax.f32 %v650_v51, 0.0  ;;  %v510_v55 = vadd.f32 %v1518_v19, %v509_v52 }
 0x153   :  { %v511_v56 = vpop.f32.mrf.mxu0  ;;  %v654_v57 = vpop.f32.mrf.mxu1 }
 0x154   :  { %798 = vst [vmem:[%s1751_s3 + $0x180] sm:$0xff] %v741_v54  ;;  %v713_v58 = vmax.f32 %v510_v55, 0.0  ;;  %v655_v59 = vadd.f32 %v1518_v19, %v654_v57 }
 0x155   :  { %v514_v60 = vpop.f32.mrf.mxu0  ;;  %v656_v61 = vpop.f32.mrf.mxu1 }
 0x156   :  { %770 = vst [vmem:[%s1751_s3 + $0xa0] sm:$0xff] %v713_v58  ;;  %v742_v62 = vmax.f32 %v655_v59, 0.0  ;;  %v515_v63 = vadd.f32 %v1518_v19, %v514_v60 }
 0x157   :  { %v516_v0 = vpop.f32.mrf.mxu0  ;;  %v659_v1 = vpop.f32.mrf.mxu1 }
 0x158   :  { %799 = vst [vmem:[%s1751_s3 + $0x188] sm:$0xff] %v742_v62  ;;  %v714_v2 = vmax.f32 %v515_v63, 0.0  ;;  %v660_v3 = vadd.f32 %v1518_v19, %v659_v1 }
 0x159   :  { %v519_v4 = vpop.f32.mrf.mxu0  ;;  %v661_v5 = vpop.f32.mrf.mxu1 }
 0x15a   :  { %771 = vst [vmem:[%s1751_s3 + $0xa8] sm:$0xff] %v714_v2  ;;  %v743_v6 = vmax.f32 %v660_v3, 0.0  ;;  %v520_v7 = vadd.f32 %v1518_v19, %v519_v4 }
 0x15b   :  { %v521_v8 = vpop.f32.mrf.mxu0  ;;  %v664_v9 = vpop.f32.mrf.mxu1 }
 0x15c   :  { %800 = vst [vmem:[%s1751_s3 + $0x190] sm:$0xff] %v743_v6  ;;  %v715_v10 = vmax.f32 %v520_v7, 0.0  ;;  %v665_v11 = vadd.f32 %v1518_v19, %v664_v9 }
 0x15d   :  { %v524_v12 = vpop.f32.mrf.mxu0  ;;  %v666_v13 = vpop.f32.mrf.mxu1 }
 0x15e   :  { %772 = vst [vmem:[%s1751_s3 + $0xb0] sm:$0xff] %v715_v10  ;;  %v744_v14 = vmax.f32 %v665_v11, 0.0  ;;  %v525_v15 = vadd.f32 %v1518_v19, %v524_v12 }
 0x15f   :  { %v526_v16 = vpop.f32.mrf.mxu0  ;;  %v669_v17 = vpop.f32.mrf.mxu1 }
 0x160   :  { %801 = vst [vmem:[%s1751_s3 + $0x198] sm:$0xff] %v744_v14  ;;  %v716_v18 = vmax.f32 %v525_v15, 0.0  ;;  %v670_v20 = vadd.f32 %v1518_v19, %v669_v17 }
 0x161   :  { %v529_v21 = vpop.f32.mrf.mxu0  ;;  %v671_v22 = vpop.f32.mrf.mxu1 }
 0x162   :  { %773 = vst [vmem:[%s1751_s3 + $0xb8] sm:$0xff] %v716_v18  ;;  %v745_v23 = vmax.f32 %v670_v20, 0.0  ;;  %v530_v24 = vadd.f32 %v1518_v19, %v529_v21 }
 0x163   :  { %v531_v25 = vpop.f32.mrf.mxu0  ;;  %v674_v26 = vpop.f32.mrf.mxu1 }
 0x164   :  { %802 = vst [vmem:[%s1751_s3 + $0x1a0] sm:$0xff] %v745_v23  ;;  %v717_v27 = vmax.f32 %v530_v24, 0.0  ;;  %v675_v28 = vadd.f32 %v1518_v19, %v674_v26 }
 0x165   :  { %v534_v29 = vpop.f32.mrf.mxu0  ;;  %v676_v30 = vpop.f32.mrf.mxu1 }
 0x166   :  { %774 = vst [vmem:[%s1751_s3 + $0xc0] sm:$0xff] %v717_v27  ;;  %v746_v31 = vmax.f32 %v675_v28, 0.0  ;;  %v535_v32 = vadd.f32 %v1518_v19, %v534_v29 }
 0x167   :  { %v536_v33 = vpop.f32.mrf.mxu0  ;;  %v679_v34 = vpop.f32.mrf.mxu1 }
 0x168   :  { %803 = vst [vmem:[%s1751_s3 + $0x1a8] sm:$0xff] %v746_v31  ;;  %v718_v35 = vmax.f32 %v535_v32, 0.0  ;;  %v680_v36 = vadd.f32 %v1518_v19, %v679_v34 }
 0x169   :  { %v539_v37 = vpop.f32.mrf.mxu0  ;;  %v681_v38 = vpop.f32.mrf.mxu1 }
 0x16a   :  { %775 = vst [vmem:[%s1751_s3 + $0xc8] sm:$0xff] %v718_v35  ;;  %v747_v39 = vmax.f32 %v680_v36, 0.0  ;;  %v540_v40 = vadd.f32 %v1518_v19, %v539_v37 }
 0x16b   :  { %v541_v41 = vpop.f32.mrf.mxu0  ;;  %v684_v42 = vpop.f32.mrf.mxu1 }
 0x16c   :  { %804 = vst [vmem:[%s1751_s3 + $0x1b0] sm:$0xff] %v747_v39  ;;  %v719_v43 = vmax.f32 %v540_v40, 0.0  ;;  %v685_v44 = vadd.f32 %v1518_v19, %v684_v42 }
 0x16d   :  { %v544_v45 = vpop.f32.mrf.mxu0  ;;  %v686_v46 = vpop.f32.mrf.mxu1 }
 0x16e   :  { %776 = vst [vmem:[%s1751_s3 + $0xd0] sm:$0xff] %v719_v43  ;;  %v748_v47 = vmax.f32 %v685_v44, 0.0  ;;  %v545_v48 = vadd.f32 %v1518_v19, %v544_v45 }
 0x16f   :  { %v546_v49 = vpop.f32.mrf.mxu0  ;;  %v689_v50 = vpop.f32.mrf.mxu1 }
 0x170   :  { %805 = vst [vmem:[%s1751_s3 + $0x1b8] sm:$0xff] %v748_v47  ;;  %v720_v51 = vmax.f32 %v545_v48, 0.0  ;;  %v690_v52 = vadd.f32 %v1518_v19, %v689_v50 }
 0x171   :  { %v549_v53 = vpop.f32.mrf.mxu0  ;;  %v691_v54 = vpop.f32.mrf.mxu1 }
 0x172   :  { %777 = vst [vmem:[%s1751_s3 + $0xd8] sm:$0xff] %v720_v51  ;;  %v749_v55 = vmax.f32 %v690_v52, 0.0  ;;  %v550_v56 = vadd.f32 %v1518_v19, %v549_v53 }
 0x173   :  { %v551_v57 = vpop.f32.mrf.mxu0 }
 0x174   :  { %806 = vst [vmem:[%s1751_s3 + $0x1c0] sm:$0x3] %v749_v55  ;;  %v721_v58 = vmax.f32 %v550_v56, 0.0 }
 0x176   :  { %778 = vst [vmem:[%s1751_s3 + $0xe0] sm:$0xff] %v721_v58 }

// kernel: forward.8
= control target key start
LH: loop header
LB: loop body
LE: loop exit
PB: predicated region body
PF: predicated region fallthrough
CT: control target
= control target key end

     0   :  { %vm33_vm0 = vcmask 1041408   ;;  %vm34_vm1 = vcmask 1043458   ;;  %vm36_vm3 = vcmask 1045508   ;;  %vm38_vm5 = vcmask 334854   ;;  %s93_s0 = inlined_call_operand.vmem [shape: f32[9,2,425], index: 0, kind: input, shape index: {}]   ;;  %s94_s1 = inlined_call_operand.vmem [shape: f32[2,425], index: 1, kind: output, shape index: {}]  }
   0x1   :  { %v8_v0 = vld [vmem:[%s93_s0] sm:$0xff]  ;;  %v45_v1 = vld [vmem:[%s93_s0 + $0x8] sm:$0xff]  ;;  %v46_v2 = vld [vmem:[%s93_s0 + $0x10] sm:$0xff] }
   0x2   :  { %v11_v3 = vmax.f32 %v8_v0, %v45_v1  ;;  %v47_v4 = vld [vmem:[%s93_s0 + $0x18] sm:$0xff]  ;;  %v48_v6 = vld [vmem:[%s93_s0 + $0x20] sm:$0xff]  ;;  %v49_v8 = vld [vmem:[%s93_s0 + $0x28] sm:$0xff] }
   0x3   :  { %v50_v10 = vld [vmem:[%s93_s0 + $0x30] sm:$0xff]  ;;  %vm35_vm2 = vmor %vm34_vm1, %vm33_vm0  ;;  %v51_v12 = vld [vmem:[%s93_s0 + $0x38] sm:$0xff] }
   0x4   :  { %v14_v5 = vmax.f32 %v11_v3, %v46_v2  ;;  %vm37_vm4 = vmor %vm36_vm3, %vm35_vm2  ;;  %v52_v14 = vld [vmem:[%s93_s0 + $0x40] sm:$0xff] }
   0x5   :  { %vm39_vm6 = vmor %vm38_vm5, %vm37_vm4 }
   0x6   :  { %v17_v7 = vmax.f32 %v14_v5, %v47_v4 }
   0x8   :  { %v20_v9 = vmax.f32 %v17_v7, %v48_v6 }
   0xa   :  { %v23_v11 = vmax.f32 %v20_v9, %v49_v8 }
   0xc   :  { %v26_v13 = vmax.f32 %v23_v11, %v50_v10 }
   0xe   :  { %v29_v15 = vmax.f32 %v26_v13, %v51_v12 }
  0x10   :  { %v32_v16 = vmax.f32 %v29_v15, %v52_v14 }
  0x12   :  { %40 = vst.msk [vmem:[%s94_s1] sm:$0xff] %vm39_vm6, %v32_v16 }

// kernel: forward.9
= control target key start
LH: loop header
LB: loop body
LE: loop exit
PB: predicated region body
PF: predicated region fallthrough
CT: control target
= control target key end

     0   :  { %v631_v2 = vmov 0.0   ;;  %v632_v25 = vmov 1983009808   ;;  %v94_v27 = vlaneseq  ;;  %s1004_s0 = inlined_call_operand.vmem [shape: f32[2,425], index: 0, kind: input, shape index: {}]   ;;  %s1005_s1 = inlined_call_operand.vmem [shape: f32[425,128], index: 1, kind: input, shape index: {}]   ;;  %s1006_s2 = inlined_call_operand.vmem [shape: f32[1,128], index: 2, kind: input, shape index: {}]   ;;  %s1007_s3 = inlined_call_operand.vmem [shape: f32[128,128], index: 3, kind: input, shape index: {}]   ;;  %s1008_s4 = inlined_call_operand.vmem [shape: f32[1,128], index: 4, kind: input, shape index: {}]   ;;  %s1009_s5 = inlined_call_operand.vmem [shape: f32[128,128], index: 5, kind: input, shape index: {}]   ;;  %s1010_s6 = inlined_call_operand.vmem [shape: f32[1,128], index: 6, kind: input, shape index: {}]   ;;  %s1011_s7 = inlined_call_operand.hbm [shape: f32[2,128], index: 7, kind: output, shape index: {}]  }
   0x1   :  { %v75_v0 = vld [vmem:[%s1005_s1 + $0x178] sm:$0xff]  ;;  %187 = vmatprep.subr.mxu1 %v631_v2  ;;  %v74_v3 = vld [vmem:[%s1005_s1 + $0x170] sm:$0xff]  ;;  %v57_v7 = vld [vmem:[%s1005_s1 + $0xe8] sm:$0xff]  ;;  %v92_v26 = vunpack.c.l.s4 %v632_v25 }
   0x2   :  { %v59_v1 = vld [vmem:[%s1005_s1 + $0xf8] sm:$0xff]  ;;  %v58_v5 = vld [vmem:[%s1005_s1 + $0xf0] sm:$0xff]  ;;  %188 = vmatpush1.msra.mxu1 %v75_v0  ;;  %v73_v8 = vld [vmem:[%s1005_s1 + $0x168] sm:$0xff]  ;;  %v95_v35 = vshrl.u32 %v94_v27, 7 }
   0x3   :  { %465 = vmatprep.subr.mxu0 %v59_v1  ;;  %v43_v4 = vld [vmem:[%s1005_s1 + $0x78] sm:$0xff]  ;;  %v42_v6 = vld [vmem:[%s1005_s1 + $0x70] sm:$0xff]  ;;  %189 = vmatprep.subr.mxu1 %v631_v2  ;;  %v41_v9 = vld [vmem:[%s1005_s1 + $0x68] sm:$0xff]  ;;  %v93_v34 = vunpack.c.0.s8 %v92_v26 }
   0x4   :  { %466 = vmatpush3.msra.mxu0 %v43_v4  ;;  %190 = vmatpush1.msra.mxu1 %v74_v3  ;;  %v56_v10 = vld [vmem:[%s1005_s1 + $0xe0] sm:$0xff]  ;;  %v55_v13 = vld [vmem:[%s1005_s1 + $0xd8] sm:$0xff]  ;;  %v54_v16 = vld [vmem:[%s1005_s1 + $0xd0] sm:$0xff] }
   0x5   :  { %467 = vmatprep.subr.mxu0 %v58_v5  ;;  %191 = vmatprep.subr.mxu1 %v631_v2  ;;  %v72_v11 = vld [vmem:[%s1005_s1 + $0x160] sm:$0xff]  ;;  %v71_v14 = vld [vmem:[%s1005_s1 + $0x158] sm:$0xff]  ;;  %v70_v17 = vld [vmem:[%s1005_s1 + $0x150] sm:$0xff]  ;;  %v96_v42 = vsub.s32 %v93_v34, %v95_v35 }
   0x6   :  { %468 = vmatpush3.msra.mxu0 %v42_v6  ;;  %v40_v12 = vld [vmem:[%s1005_s1 + $0x60] sm:$0xff]  ;;  %192 = vmatpush1.msra.mxu1 %v73_v8  ;;  %v39_v15 = vld [vmem:[%s1005_s1 + $0x58] sm:$0xff]  ;;  %v38_v18 = vld [vmem:[%s1005_s1 + $0x50] sm:$0xff] }
   0x7   :  { %469 = vmatprep.subr.mxu0 %v57_v7  ;;  %193 = vmatprep.subr.mxu1 %v631_v2  ;;  %v53_v19 = vld [vmem:[%s1005_s1 + $0xc8] sm:$0xff]  ;;  %v52_v22 = vld [vmem:[%s1005_s1 + $0xc0] sm:$0xff]  ;;  %v51_v28 = vld [vmem:[%s1005_s1 + $0xb8] sm:$0xff] }
   0x8   :  { %470 = vmatpush3.msra.mxu0 %v41_v9  ;;  %194 = vmatpush1.msra.mxu1 %v72_v11  ;;  %v69_v20 = vld [vmem:[%s1005_s1 + $0x148] sm:$0xff]  ;;  %v68_v23 = vld [vmem:[%s1005_s1 + $0x140] sm:$0xff]  ;;  %v67_v29 = vld [vmem:[%s1005_s1 + $0x138] sm:$0xff] }
   0x9   :  { %471 = vmatprep.subr.mxu0 %v56_v10  ;;  %195 = vmatprep.subr.mxu1 %v631_v2  ;;  %v37_v21 = vld [vmem:[%s1005_s1 + $0x48] sm:$0xff]  ;;  %v36_v24 = vld [vmem:[%s1005_s1 + $0x40] sm:$0xff]  ;;  %v35_v30 = vld [vmem:[%s1005_s1 + $0x38] sm:$0xff] }
   0xa   :  { %472 = vmatpush3.msra.mxu0 %v40_v12  ;;  %196 = vmatpush1.msra.mxu1 %v71_v14  ;;  %v50_v31 = vld [vmem:[%s1005_s1 + $0xb0] sm:$0xff]  ;;  %v49_v36 = vld [vmem:[%s1005_s1 + $0xa8] sm:$0xff]  ;;  %v48_v39 = vld [vmem:[%s1005_s1 + $0xa0] sm:$0xff] }
   0xb   :  { %473 = vmatprep.subr.mxu0 %v55_v13  ;;  %197 = vmatprep.subr.mxu1 %v631_v2  ;;  %v66_v32 = vld [vmem:[%s1005_s1 + $0x130] sm:$0xff]  ;;  %v65_v37 = vld [vmem:[%s1005_s1 + $0x128] sm:$0xff]  ;;  %v64_v40 = vld [vmem:[%s1005_s1 + $0x120] sm:$0xff] }
   0xc   :  { %474 = vmatpush3.msra.mxu0 %v39_v15  ;;  %198 = vmatpush1.msra.mxu1 %v70_v17  ;;  %v34_v33 = vld [vmem:[%s1005_s1 + $0x30] sm:$0xff]  ;;  %v33_v38 = vld [vmem:[%s1005_s1 + $0x28] sm:$0xff]  ;;  %v32_v41 = vld [vmem:[%s1005_s1 + $0x20] sm:$0xff] }
   0xd   :  { %475 = vmatprep.subr.mxu0 %v54_v16  ;;  %199 = vmatprep.subr.mxu1 %v631_v2 }
   0xe   :  { %476 = vmatpush3.msra.mxu0 %v38_v18  ;;  %200 = vmatpush1.msra.mxu1 %v69_v20 }
   0xf   :  { %477 = vmatprep.subr.mxu0 %v53_v19  ;;  %201 = vmatprep.subr.mxu1 %v631_v2 }
  0x10   :  { %478 = vmatpush3.msra.mxu0 %v37_v21  ;;  %202 = vmatpush1.msra.mxu1 %v68_v23 }
  0x11   :  { %479 = vmatprep.subr.mxu0 %v52_v22  ;;  %203 = vmatprep.subr.mxu1 %v631_v2 }
  0x12   :  { %480 = vmatpush3.msra.mxu0 %v36_v24  ;;  %204 = vmatpush1.msra.mxu1 %v67_v29 }
  0x13   :  { %481 = vmatprep.subr.mxu0 %v51_v28  ;;  %205 = vmatprep.subr.mxu1 %v631_v2 }
  0x14   :  { %482 = vmatpush3.msra.mxu0 %v35_v30  ;;  %206 = vmatpush1.msra.mxu1 %v66_v32 }
  0x15   :  { %483 = vmatprep.subr.mxu0 %v50_v31  ;;  %207 = vmatprep.subr.mxu1 %v631_v2 }
  0x16   :  { %484 = vmatpush3.msra.mxu0 %v34_v33 }
  0x17   :  { %485 = vmatprep.subr.mxu0 %v49_v36 }
  0x18   :  { %12 = vsyncpa [#allocation3], 0  ;;  %208 = vmatpush1.msra.mxu1 %v65_v37  ;;  %486 = vmatpush3.msra.mxu0 %v33_v38  ;;  %v47_v43 = vld [vmem:[%s1005_s1 + $0x98] sm:$0xff]  ;;  %v27_v44 = vld [vmem:[%s1004_s0] sm:$0xff]  ;;  %vm113_vm0 = vcmask 1040384   ;;  %vm110_vm1 = vcmask 334848  }
  0x19   :  { %209 = vmatprep.subr.mxu1 %v631_v2  ;;  %v63_v45 = vld [vmem:[%s1005_s1 + $0x118] sm:$0xff]  ;;  %487 = vmatprep.subr.mxu0 %v48_v39  ;;  %v90_v47 = vcombine.high %v27_v44, %v27_v44  ;;  %v46_v48 = vld [vmem:[%s1005_s1 + $0x90] sm:$0xff]  ;;  %v97_v51 = vrot.slane %v27_v44, %v96_v42  ;;  %v45_v52 = vld [vmem:[%s1005_s1 + $0x88] sm:$0xff]  ;;  %vm633_vm2 = vmmov 0   ;;  %s634_s10 = smov [#allocation2]  }
  0x1a   :  { %v31_v46 = vld [vmem:[%s1005_s1 + $0x18] sm:$0xff]  ;;  %210 = vmatpush1.msra.mxu1 %v64_v40  ;;  %488 = vmatpush3.msra.mxu0 %v32_v41  ;;  %v62_v49 = vld [vmem:[%s1005_s1 + $0x110] sm:$0xff]  ;;  %v61_v53 = vld [vmem:[%s1005_s1 + $0x108] sm:$0xff]  ;;  %s452_s11 = sshll.u32 %s634_s10, 4  ;;  %s453_s11 = int_to_ptr.vmem [resolvable:$true] %s452_s11 }
  0x1b   :  { %211 = vmatprep.subr.mxu1 %v631_v2  ;;  %489 = vmatprep.subr.mxu0 %v47_v43  ;;  %v30_v50 = vld [vmem:[%s1005_s1 + $0x10] sm:$0xff]  ;;  %v29_v54 = vld [vmem:[%s1005_s1 + $0x8] sm:$0xff]  ;;  %v104_v55 = vrot.slane %v90_v47, %v96_v42  ;;  %v44_v56 = vld [vmem:[%s1005_s1 + $0x80] sm:$0xff]  ;;  %v105_v59 = vcombine.high %v97_v51, %v97_v51  ;;  %p614_p1 = scmp.lt.s32.totalorder %s453_s11, %s453_s11 }
  0x1c   :  { %212 = vmatpush1.msra.mxu1 %v63_v45  ;;  %490 = vmatpush3.msra.mxu0 %v31_v46  ;;  %v60_v57 = vld [vmem:[%s1005_s1 + $0x100] sm:$0xff]  ;;  %v81_v60 = vld [vmem:[%s1005_s1 + $0x1a8] sm:$0x1]  ;;  %v273_v63 = vld [vmem:[%s1007_s3 + $0x78] sm:$0xff] }
  0x1d   :  { %213 = vmatprep.subr.mxu1 %v631_v2  ;;  %491 = vmatprep.subr.mxu0 %v46_v48  ;;  %v28_v58 = vld [vmem:[%s1005_s1] sm:$0xff]  ;;  %v106_v61 = vcombine.high %v104_v55, %v104_v55  ;;  %v79_v0 = vld [vmem:[%s1005_s1 + $0x198] sm:$0xff]  ;;  %v272_v1 = vld [vmem:[%s1007_s3 + $0x70] sm:$0xff] }
  0x1e   :  { %214 = vmatpush1.msra.mxu1 %v62_v49  ;;  %492 = vmatpush3.msra.mxu0 %v30_v50  ;;  %v80_v62 = vld [vmem:[%s1005_s1 + $0x1a0] sm:$0xff]  ;;  %v78_v3 = vld [vmem:[%s1005_s1 + $0x190] sm:$0xff]  ;;  %v271_v4 = vld [vmem:[%s1007_s3 + $0x68] sm:$0xff] }
  0x1f   :  { %215 = vmatprep.subr.mxu1 %v631_v2  ;;  %493 = vmatprep.subr.mxu0 %v45_v52  ;;  %v77_v5 = vld [vmem:[%s1005_s1 + $0x188] sm:$0xff]  ;;  %v270_v6 = vld [vmem:[%s1007_s3 + $0x60] sm:$0xff]  ;;  %v269_v8 = vld [vmem:[%s1007_s3 + $0x58] sm:$0xff] }
  0x20   :  { %216 = vmatpush1.msra.mxu1 %v61_v53  ;;  %494 = vmatpush3.msra.mxu0 %v29_v54  ;;  %v76_v7 = vld [vmem:[%s1005_s1 + $0x180] sm:$0xff]  ;;  %v268_v9 = vld [vmem:[%s1007_s3 + $0x50] sm:$0xff]  ;;  %v267_v10 = vld [vmem:[%s1007_s3 + $0x48] sm:$0xff] }
  0x21   :  { %217 = vmatprep.subr.mxu1 %v631_v2  ;;  %495 = vmatprep.subr.mxu0 %v44_v56  ;;  %v266_v11 = vld [vmem:[%s1007_s3 + $0x40] sm:$0xff]  ;;  %v265_v12 = vld [vmem:[%s1007_s3 + $0x38] sm:$0xff]  ;;  %v264_v13 = vld [vmem:[%s1007_s3 + $0x30] sm:$0xff] }
  0x22   :  { %218 = vmatpush1.msra.mxu1 %v60_v57  ;;  %496 = vmatpush3.msra.mxu0 %v28_v58  ;;  %v263_v14 = vld [vmem:[%s1007_s3 + $0x28] sm:$0xff]  ;;  %v262_v15 = vld [vmem:[%s1007_s3 + $0x20] sm:$0xff]  ;;  %v261_v16 = vld [vmem:[%s1007_s3 + $0x18] sm:$0xff] }
  0x23   :  { %239 = vmatprep.subr.mxu1 %v631_v2  ;;  %181 = vmatprep.mubr.f32.mxu0 %v105_v59  ;;  %v260_v17 = vld [vmem:[%s1007_s3 + $0x10] sm:$0xff]  ;;  %v259_v18 = vld [vmem:[%s1007_s3 + $0x8] sm:$0xff]  ;;  %v258_v19 = vld [vmem:[%s1007_s3] sm:$0xff] }
  0x24   :  { %461 = vmatpush2.msk.msra.mxu1 %vm113_vm0, %v81_v60  ;;  %182 = vmatmul.mubr.f32.vlgmr.msra.gmra.mxu0 %v97_v51  ;;  %v367_v20 = vld [vmem:[%s1009_s5 + $0x78] sm:$0xff]  ;;  %v366_v21 = vld [vmem:[%s1009_s5 + $0x70] sm:$0xff]  ;;  %v365_v22 = vld [vmem:[%s1009_s5 + $0x68] sm:$0xff] }
  0x25   :  { %241 = vmatprep.subr.mxu1 %v631_v2  ;;  %462 = vmatprep.mubr.msk.f32.mxu1 %vm110_vm1, %v106_v61  ;;  %v364_v23 = vld [vmem:[%s1009_s5 + $0x60] sm:$0xff]  ;;  %v363_v24 = vld [vmem:[%s1009_s5 + $0x58] sm:$0xff]  ;;  %v362_v25 = vld [vmem:[%s1009_s5 + $0x50] sm:$0xff] }
  0x26   :  { %242 = vmatpush2.msra.mxu1 %v80_v62  ;;  %534 = vmatprep.subr.mxu0 %v631_v2  ;;  %v361_v26 = vld [vmem:[%s1009_s5 + $0x48] sm:$0xff]  ;;  %v360_v27 = vld [vmem:[%s1009_s5 + $0x40] sm:$0xff]  ;;  %v359_v28 = vld [vmem:[%s1009_s5 + $0x38] sm:$0xff] }
  0x27   :  { %243 = vmatprep.subr.mxu1 %v631_v2  ;;  %535 = vmatpush3.msra.mxu0 %v273_v63  ;;  %v358_v29 = vld [vmem:[%s1009_s5 + $0x30] sm:$0xff]  ;;  %v357_v30 = vld [vmem:[%s1009_s5 + $0x28] sm:$0xff]  ;;  %v356_v31 = vld [vmem:[%s1009_s5 + $0x20] sm:$0xff] }
  0x28   :  { %244 = vmatpush2.msra.mxu1 %v79_v0  ;;  %536 = vmatprep.subr.mxu0 %v631_v2  ;;  %v355_v32 = vld [vmem:[%s1009_s5 + $0x18] sm:$0xff]  ;;  %v460_v36 = vld [vmem:[%s1006_s2] ss:$0 sm:$0xff]  ;;  %v354_v42 = vld [vmem:[%s1009_s5 + $0x10] sm:$0xff] }
  0x29   :  { %245 = vmatprep.subr.mxu1 %v631_v2  ;;  %537 = vmatpush3.msra.mxu0 %v272_v1  ;;  %v353_v43 = vld [vmem:[%s1009_s5 + $0x8] sm:$0xff]  ;;  %v352_v44 = vld [vmem:[%s1009_s5] sm:$0xff]  ;;  %s609_s5 = scalar_lea.vmem %s453_s11, 32 }
  0x2a   :  { %246 = vmatpush2.msra.mxu1 %v78_v3  ;;  %538 = vmatprep.subr.mxu0 %v631_v2  ;;  %v463_v45 = vld [vmem:[%s1008_s4] ss:$0 sm:$0xff]  ;;  %p610_p0 = scmp.ne.s32.totalorder %s453_s11, %s609_s5  ;;  %p615_p2 = scmp.lt.s32.totalorder %s609_s5, %s609_s5 }
  0x2b   :  { %247 = vmatprep.subr.mxu1 %v631_v2  ;;  %539 = vmatpush3.msra.mxu0 %v271_v4  ;;  %v464_v50 = vld [vmem:[%s1010_s6] ss:$0 sm:$0xff] }
  0x2c   :  { %248 = vmatpush2.msra.mxu1 %v77_v5  ;;  %540 = vmatprep.subr.mxu0 %v631_v2  ;;  %p616_p3 = por %p615_p2, %p614_p1 }
  0x2d   :  { %249 = vmatprep.subr.mxu1 %v631_v2  ;;  %541 = vmatpush3.msra.mxu0 %v270_v6 }
  0x2e   :  { %250 = vmatpush2.msra.mxu1 %v76_v7  ;;  %542 = vmatprep.subr.mxu0 %v631_v2  ;;  %p617_p4 = pnand %p616_p3, %p610_p0 }
  0x2f   :  { %252 = vmatmul.mubr.f32.vlgmr.msra.gmra.mxu1 %v104_v55  ;;  %543 = vmatpush3.msra.mxu0 %v269_v8 }
  0x30   :  { %544 = vmatprep.subr.mxu0 %v631_v2  ;;  %569 = vmatprep.subr.mxu1 %v631_v2 }
  0x31   :  { %545 = vmatpush3.msra.mxu0 %v268_v9  ;;  %566 = vmatprep.mubr.msk.f32.mxu0 %vm633_vm2, %v631_v2 }
  0x32   :  { %546 = vmatprep.subr.mxu0 %v631_v2  ;;  %601 = vmatprep.mubr.msk.f32.mxu1 %vm633_vm2, %v631_v2 }
  0x33   :  { %547 = vmatpush3.msra.mxu0 %v267_v10  ;;  %570 = vmatpush3.msra.mxu1 %v367_v20 }
  0x34   :  { %548 = vmatprep.subr.mxu0 %v631_v2  ;;  %571 = vmatprep.subr.mxu1 %v631_v2 }
  0x35   :  { %549 = vmatpush3.msra.mxu0 %v266_v11  ;;  %572 = vmatpush3.msra.mxu1 %v366_v21 }
  0x36   :  { %550 = vmatprep.subr.mxu0 %v631_v2  ;;  %573 = vmatprep.subr.mxu1 %v631_v2 }
  0x37   :  { %551 = vmatpush3.msra.mxu0 %v265_v12  ;;  %574 = vmatpush3.msra.mxu1 %v365_v22 }
  0x38   :  { %552 = vmatprep.subr.mxu0 %v631_v2  ;;  %575 = vmatprep.subr.mxu1 %v631_v2 }
  0x39   :  { %553 = vmatpush3.msra.mxu0 %v264_v13  ;;  %576 = vmatpush3.msra.mxu1 %v364_v23 }
  0x3a   :  { %554 = vmatprep.subr.mxu0 %v631_v2  ;;  %577 = vmatprep.subr.mxu1 %v631_v2 }
  0x3b   :  { %555 = vmatpush3.msra.mxu0 %v263_v14  ;;  %578 = vmatpush3.msra.mxu1 %v363_v24 }
  0x3c   :  { %556 = vmatprep.subr.mxu0 %v631_v2  ;;  %579 = vmatprep.subr.mxu1 %v631_v2 }
  0x3d   :  { %557 = vmatpush3.msra.mxu0 %v262_v15  ;;  %580 = vmatpush3.msra.mxu1 %v362_v25 }
  0x3e   :  { %558 = vmatprep.subr.mxu0 %v631_v2  ;;  %581 = vmatprep.subr.mxu1 %v631_v2 }
  0x3f   :  { %559 = vmatpush3.msra.mxu0 %v261_v16  ;;  %582 = vmatpush3.msra.mxu1 %v361_v26 }
  0x40   :  { %560 = vmatprep.subr.mxu0 %v631_v2  ;;  %583 = vmatprep.subr.mxu1 %v631_v2 }
  0x41   :  { %561 = vmatpush3.msra.mxu0 %v260_v17  ;;  %584 = vmatpush3.msra.mxu1 %v360_v27 }
  0x42   :  { %562 = vmatprep.subr.mxu0 %v631_v2  ;;  %585 = vmatprep.subr.mxu1 %v631_v2 }
  0x43   :  { %563 = vmatpush3.msra.mxu0 %v259_v18  ;;  %586 = vmatpush3.msra.mxu1 %v359_v28 }
  0x44   :  { %564 = vmatprep.subr.mxu0 %v631_v2  ;;  %587 = vmatprep.subr.mxu1 %v631_v2 }
  0x45   :  { %565 = vmatpush3.msra.mxu0 %v258_v19  ;;  %588 = vmatpush3.msra.mxu1 %v358_v29 }
  0x46   :  { %589 = vmatprep.subr.mxu1 %v631_v2 }
  0x47   :  { %590 = vmatpush3.msra.mxu1 %v357_v30 }
  0x48   :  { %591 = vmatprep.subr.mxu1 %v631_v2 }
  0x49   :  { %592 = vmatpush3.msra.mxu1 %v356_v31 }
  0x4a   :  { %593 = vmatprep.subr.mxu1 %v631_v2 }
  0x4b   :  { %594 = vmatpush3.msra.mxu1 %v355_v32 }
  0x4c   :  { %595 = vmatprep.subr.mxu1 %v631_v2 }
  0x4d   :  { %596 = vmatpush3.msra.mxu1 %v354_v42 }
  0x4e   :  { %597 = vmatprep.subr.mxu1 %v631_v2 }
  0x4f   :  { %598 = vmatpush3.msra.mxu1 %v353_v43 }
  0x50   :  { %599 = vmatprep.subr.mxu1 %v631_v2 }
  0x51   :  { %600 = vmatpush3.msra.mxu1 %v352_v44 }
  0xe4   :  { %v497_v33 = vpop.f32.mrf.mxu0 }
  0xe6   :  { %v498_v34 = vpop.f32.mrf.mxu0 }
  0xe7   :  { %v499_v35 = vadd.f32 %v498_v34, %v497_v33 }
  0xe9   :  { %v184_v37 = vadd.f32 %v499_v35, %v460_v36 }
  0xef   :  { %v253_v38 = vpop.f32.mrf.mxu1 }
  0xf0   :  { %v254_v39 = vadd.f32 %v253_v38, %v184_v37 }
  0xf1   :  { %v255_v40 = vpop.f32.mrf.mxu1 }
  0xf2   :  { %v257_v41 = vmax.f32 %v254_v39, 0.0 }
  0xf4   :  { %567 = vmatmul.mubr.f32.vlgmr.msra.gmra.mxu0 %v257_v41 }
 0x1b4   :  { %v347_v46 = vpop.f32.mrf.mxu0 }
 0x1b5   :  { %v348_v47 = vadd.f32 %v463_v45, %v347_v46 }
 0x1b6   :  { %v568_v48 = vpop.f32.mrf.mxu0 }
 0x1b7   :  { %v351_v49 = vmax.f32 %v348_v47, 0.0 }
 0x1b9   :  { %602 = vmatmul.mubr.f32.vlgmr.msra.gmra.mxu1 %v351_v49 }
 0x279   :  { %v441_v2 = vpop.f32.mrf.mxu1 }
 0x27a   :  { %v442_v51 = vadd.f32 %v464_v50, %v441_v2 }
 0x27b   :  { %v603_v52 = vpop.f32.mrf.mxu1 }
 0x27c   :  { %445 = vst [vmem:[#allocation2] sm:$0x3] %v442_v51 }
 0x27d   :  { %620 = shalt.err (!%p617_p4)
}
 0x27e   :  { %455 = dma.vmem_to_hbm [thread:$0]  %s453_s11, 32, %s1011_s7, [#allocation3]  }
 0x27f   :  { %629 = dma.done.wait [#allocation3], 32  }
 0x280   :  { %630 = vsyncadd [#allocation3], 4294967264 }
 0x281   :  { %459 = vsyncpa [#allocation3], 1 }

</bundles_post_ra>
